<compile_context>
chip_gen: v5e
topology: v5e:2x2
jax: 0.10.0
libtpu: 0.0.40
codegen_flags: <defaults>
</compile_context>

<pallas_src>
import functools
import math

import jax
import jax.numpy as jnp
from jax import lax
from jax.experimental import pallas as pl
from jax.experimental.pallas import tpu as pltpu


# ----------------------------- in-kernel helpers -----------------------------

def _layernorm(x, w, b, eps=1e-5):
    # Single-pass statistics (one reduce pair, no subtract-then-square second pass).
    mu = jnp.mean(x, axis=-1, keepdims=True)
    ex2 = jnp.mean(x * x, axis=-1, keepdims=True)
    var = ex2 - mu * mu
    return (x - mu) * lax.rsqrt(var + eps) * w + b


def _gelu_exact(x):
    # PyTorch 'gelu' activation = exact erf-based GELU.
    return 0.5 * x * (1.0 + lax.erf(x * 0.7071067811865476))


# ------------------------------ fused Pallas kernel ---------------------------

def transformer_layer_kernel(x_ref, pos_ref, te_ref, cond_ref,
                             wqkv_ref, bqkv_ref, wo_ref, bo_ref,
                             ln1w_ref, ln1b_ref, w1_ref, b1_ref,
                             w2_ref, b2_ref, ln2w_ref, ln2b_ref,
                             o_ref, x_scr, ctx_scr, *, n_head):
    B, L, D = x_ref.shape
    BL = B * L
    hd = D // n_head
    scale = 1.0 / math.sqrt(hd)
    layer = pl.program_id(0)

    # ---- layer 0: fused embedding add, flatten batch into the matmul row dim ----
    @pl.when(layer == 0)
    def _():
        xb = x_ref[...] + pos_ref[...][None, :, :]
        xb = xb + te_ref[...][:, None, :] + cond_ref[...][:, None, :]
        x_scr[...] = xb.reshape(BL, D)

    x = x_scr[...]                                        # [B*L, D] residual stream

    wqkv = wqkv_ref[0]      # [D, 3D]
    bqkv = bqkv_ref[0]      # [1, 3D]
    wo = wo_ref[0]          # [D, D]
    bo = bo_ref[0]          # [1, D]
    ln1w = ln1w_ref[0]
    ln1b = ln1b_ref[0]
    w1 = w1_ref[0]          # [D, 4D]
    b1 = b1_ref[0]          # [1, 4D]
    w2 = w2_ref[0]          # [4D, D]
    b2 = b2_ref[0]          # [1, D]
    ln2w = ln2w_ref[0]
    ln2b = ln2b_ref[0]

    # -- self-attention: one big QKV matmul over all B*L rows --
    qkv = jnp.dot(x, wqkv, preferred_element_type=jnp.float32) + bqkv
    q = qkv[:, 0:D] * scale            # fold 1/sqrt(hd) into q once
    k = qkv[:, D:2 * D]
    v = qkv[:, 2 * D:3 * D]

    # Per-batch, per-head attention; contexts written into ctx_scr columns so the
    # out-projection below is a single full-width (K = D) matmul.
    dn = (((1,), (1,)), ((), ()))      # contract last dims: q @ k^T, no XLU transpose
    for b in range(B):                 # static unroll; removes cross-batch mask/waste
        r0 = b * L
        qb = q[r0:r0 + L, :]
        kb = k[r0:r0 + L, :]
        vb = v[r0:r0 + L, :]
        for h in range(n_head):        # static unroll
            c0 = h * hd
            s = lax.dot_general(qb[:, c0:c0 + hd], kb[:, c0:c0 + hd], dn,
                                preferred_element_type=jnp.float32)       # [L, L]
            s = s - jnp.max(s, axis=-1, keepdims=True)
            p = jnp.exp(s)
            p = p * pl.reciprocal(jnp.sum(p, axis=-1, keepdims=True), approx=True)
            ctx_scr[r0:r0 + L, c0:c0 + hd] = jnp.dot(
                p, vb[:, c0:c0 + hd], preferred_element_type=jnp.float32)  # [L, hd]

    # Single full-K out-projection over all B*L rows.
    attn = jnp.dot(ctx_scr[...], wo, preferred_element_type=jnp.float32) + bo

    # -- residual + norm1 --
    x = _layernorm(x + attn, ln1w, ln1b)

    # -- feed-forward (linear1 -> exact gelu -> linear2) --
    h1 = _gelu_exact(jnp.dot(x, w1, preferred_element_type=jnp.float32) + b1)
    ff = jnp.dot(h1, w2, preferred_element_type=jnp.float32) + b2

    # -- residual + norm2 --
    x = _layernorm(x + ff, ln2w, ln2b)

    x_scr[...] = x

    @pl.when(layer == pl.num_programs(0) - 1)
    def _():
        o_ref[...] = x.reshape(B, L, D)


# ------------------------------ pallas wrapper --------------------------------

def noise_prediction_transformer(x_t, t, condition, params):
    """x_t: [B, L, D] float32, t: [B] int32, condition: [B, D] float32 -> [B, L, D]."""
    B, L, D = x_t.shape
    n_head = params["n_head"]
    n_layer = len(params["layers"])
    BL = B * L
    hd = D // n_head

    pos = params["pos_emb"][0, :L, :]        # [L, D]
    time_e = params["time_emb"][t]           # [B, D] embedding gather (plain-JAX glue)

    # Stack per-layer weights into [n_layer, ...] arrays; the grid axis streams them.
    stacked = [jnp.stack([lp[i] for lp in params["layers"]]) for i in range(12)]

    def invariant_spec(a):
        nd = a.ndim
        return pl.BlockSpec(a.shape, lambda l, _nd=nd: (0,) * _nd)

    def per_layer_spec(a):
        nd = a.ndim
        return pl.BlockSpec((1,) + a.shape[1:],
                            lambda l, _nd=nd: (l,) + (0,) * (_nd - 1))

    in_specs = ([invariant_spec(a) for a in (x_t, pos, time_e, condition)]
                + [per_layer_spec(a) for a in stacked])

    # Cost hint so XLA schedules the surrounding gather/stack glue around the kernel.
    dense_flops = 2 * BL * D * (12 * D)                    # qkv + out-proj + ffn up/down
    attn_flops = B * n_head * (4 * L * L * hd)             # scores + p@v
    flops = n_layer * (dense_flops + attn_flops)
    transc = n_layer * (BL * 4 * D + B * n_head * L * L + 2 * BL)
    w_bytes = sum(int(a.size) * 4 for a in stacked)
    io_bytes = 4 * int(x_t.size + pos.size + time_e.size + condition.size + B * L * D)
    cost = pl.CostEstimate(flops=flops, transcendentals=transc,
                           bytes_accessed=w_bytes + io_bytes)

    # VMEM budget: ~2 layers of (double-buffered) weights + activations + headroom,
    # capped below v7x's 64 MiB physical VMEM.
    per_layer_w = w_bytes // max(n_layer, 1)
    vmem_limit = int(min(48 * 1024 * 1024,
                         max(4 * per_layer_w + io_bytes + 16 * 1024 * 1024,
                             32 * 1024 * 1024)))

    kernel = functools.partial(transformer_layer_kernel, n_head=n_head)
    # TODO(synk): on v7x add a leading "parallel" grid axis over B (attention is already
    # per-batch) so the second TensorCore is used; v5e/v6e keep the single fused tile.
    return pl.pallas_call(
        kernel,
        out_shape=jax.ShapeDtypeStruct((B, L, D), x_t.dtype),
        grid=(n_layer,),
        in_specs=in_specs,
        out_specs=pl.BlockSpec((B, L, D), lambda l: (0, 0, 0)),
        scratch_shapes=[pltpu.VMEM((BL, D), jnp.float32),   # residual stream carry
                        pltpu.VMEM((BL, D), jnp.float32)],  # per-head context assembly
        compiler_params=pltpu.CompilerParams(
            dimension_semantics=("arbitrary",),
            vmem_limit_bytes=vmem_limit),
        cost_estimate=cost,
    )(x_t, pos, time_e, condition, *stacked)


# --------------------------- deterministic parameters -------------------------

def init_params(key, vocab_size, max_seq_len, n_layer, n_head, n_embd, max_timesteps):
    D = n_embd
    scale = 0.02
    k_tok, k_pos, k_time, k_layers = jax.random.split(key, 4)
    params = {
        "tok_emb": jax.random.normal(k_tok, (vocab_size, D), jnp.float32) * scale,   # unused in forward
        "pos_emb": jax.random.normal(k_pos, (1, max_seq_len, D), jnp.float32) * scale,
        "time_emb": jax.random.normal(k_time, (max_timesteps, D), jnp.float32) * scale,
        "n_head": n_head,
        "layers": [],
    }
    for lk in jax.random.split(k_layers, n_layer):
        ks = jax.random.split(lk, 8)
        # Linear weights are stored pre-transposed so kernels compute x @ W.
        wqkv = jax.random.normal(ks[0], (D, 3 * D), jnp.float32) * scale   # in_proj_weight.T
        bqkv = jax.random.normal(ks[1], (1, 3 * D), jnp.float32) * scale
        wo = jax.random.normal(ks[2], (D, D), jnp.float32) * scale         # out_proj.weight.T
        bo = jax.random.normal(ks[3], (1, D), jnp.float32) * scale
        ln1w = jnp.ones((1, D), jnp.float32)
        ln1b = jnp.zeros((1, D), jnp.float32)
        w1 = jax.random.normal(ks[4], (D, 4 * D), jnp.float32) * scale     # linear1.weight.T
        b1 = jax.random.normal(ks[5], (1, 4 * D), jnp.float32) * scale
        w2 = jax.random.normal(ks[6], (4 * D, D), jnp.float32) * scale     # linear2.weight.T
        b2 = jax.random.normal(ks[7], (1, D), jnp.float32) * scale
        ln2w = jnp.ones((1, D), jnp.float32)
        ln2b = jnp.zeros((1, D), jnp.float32)
        params["layers"].append((wqkv, bqkv, wo, bo, ln1w, ln1b,
                                 w1, b1, w2, b2, ln2w, ln2b))
    return params


# ------------------------------ pure-JAX reference ----------------------------

def _ref_ln(x, w, b, eps=1e-5):
    mu = jnp.mean(x, axis=-1, keepdims=True)
    var = jnp.mean((x - mu) ** 2, axis=-1, keepdims=True)
    return (x - mu) / jnp.sqrt(var + eps) * w + b


def reference_forward(x_t, t, condition, params):
    B, L, D = x_t.shape
    H = params["n_head"]
    hd = D // H
    hp = jax.lax.Precision.HIGHEST
    x = (x_t + params["pos_emb"][:, :L, :]
         + params["time_emb"][t][:, None, :] + condition[:, None, :])
    for (wqkv, bqkv, wo, bo, ln1w, ln1b, w1, b1, w2, b2, ln2w, ln2b) in params["layers"]:
        qkv = jnp.einsum("bld,de->ble", x, wqkv, precision=hp) + bqkv[0]
        q, k, v = jnp.split(qkv, 3, axis=-1)
        qh = q.reshape(B, L, H, hd).transpose(0, 2, 1, 3)
        kh = k.reshape(B, L, H, hd).transpose(0, 2, 1, 3)
        vh = v.reshape(B, L, H, hd).transpose(0, 2, 1, 3)
        s = jnp.einsum("bhld,bhmd->bhlm", qh, kh, precision=hp) / math.sqrt(hd)
        p = jax.nn.softmax(s, axis=-1)
        o = jnp.einsum("bhlm,bhmd->bhld", p, vh, precision=hp)
        o = o.transpose(0, 2, 1, 3).reshape(B, L, D)
        attn = jnp.einsum("bld,de->ble", o, wo, precision=hp) + bo[0]
        x = _ref_ln(x + attn, ln1w[0], ln1b[0])
        h1 = jax.nn.gelu(jnp.einsum("bld,de->ble", x, w1, precision=hp) + b1[0],
                         approximate=False)
        ff = jnp.einsum("ble,ed->bld", h1, w2, precision=hp) + b2[0]
        x = _ref_ln(x + ff, ln2w[0], ln2b[0])
    return x


# ------------------------------------ main ------------------------------------

if __name__ == "__main__":
    B, L = 2, 8
    vocab_size = 50
    max_seq_len = 16
    n_layer = 3
    n_head = 8
    n_embd = 128
    max_timesteps = 100

    key = jax.random.PRNGKey(0)
    kp, kx, kt, kc = jax.random.split(key, 4)

    params = init_params(kp, vocab_size, max_seq_len, n_layer, n_head, n_embd, max_timesteps)

    x_t = jax.random.normal(kx, (B, L, n_embd), jnp.float32)
    t = jax.random.randint(kt, (B,), 0, max_timesteps, dtype=jnp.int32)
    condition = jax.random.normal(kc, (B, n_embd), jnp.float32)

    out = noise_prediction_transformer(x_t, t, condition, params)
    out = jax.block_until_ready(out)

    assert out.shape == (B, L, n_embd), out.shape
    ref = reference_forward(x_t, t, condition, params)
    assert jnp.allclose(out, ref, atol=1e-3, rtol=1e-3), \
        f"max abs err = {jnp.max(jnp.abs(out - ref))}"

    print("KERNEL_OK")
</pallas_src>

<mosaic_0001>
module attributes {stable_mosaic.version = 11 : i64} {
  func.func @transformer_layer_kernel(%arg0: i32, %arg1: memref<2x8x128xf32, #tpu.memory_space<vmem>>, %arg2: memref<8x128xf32, #tpu.memory_space<vmem>>, %arg3: memref<2x128xf32, #tpu.memory_space<vmem>>, %arg4: memref<2x128xf32, #tpu.memory_space<vmem>>, %arg5: memref<1x128x384xf32, #tpu.memory_space<vmem>>, %arg6: memref<1x1x384xf32, #tpu.memory_space<vmem>>, %arg7: memref<1x128x128xf32, #tpu.memory_space<vmem>>, %arg8: memref<1x1x128xf32, #tpu.memory_space<vmem>>, %arg9: memref<1x1x128xf32, #tpu.memory_space<vmem>>, %arg10: memref<1x1x128xf32, #tpu.memory_space<vmem>>, %arg11: memref<1x128x512xf32, #tpu.memory_space<vmem>>, %arg12: memref<1x1x512xf32, #tpu.memory_space<vmem>>, %arg13: memref<1x512x128xf32, #tpu.memory_space<vmem>>, %arg14: memref<1x1x128xf32, #tpu.memory_space<vmem>>, %arg15: memref<1x1x128xf32, #tpu.memory_space<vmem>>, %arg16: memref<1x1x128xf32, #tpu.memory_space<vmem>>, %arg17: memref<2x8x128xf32, #tpu.memory_space<vmem>>, %arg18: memref<16x128xf32, #tpu.memory_space<vmem>>, %arg19: memref<16x128xf32, #tpu.memory_space<vmem>>) attributes {dimension_semantics = [#tpu.dimension_semantics<arbitrary>], iteration_bounds = array<i64: 3>, scalar_prefetch = 0 : i64, scratch_operands = 2 : i64, tpu.core_type = #tpu.core_type<tc>, window_params = [{pipeline_mode = #tpu.pipeline_mode<synchronous>, transform_indices = @transform_0, window_bounds = array<i64: 2, 8, 128>}, {pipeline_mode = #tpu.pipeline_mode<synchronous>, transform_indices = @transform_1, window_bounds = array<i64: 8, 128>}, {pipeline_mode = #tpu.pipeline_mode<synchronous>, transform_indices = @transform_2, window_bounds = array<i64: 2, 128>}, {pipeline_mode = #tpu.pipeline_mode<synchronous>, transform_indices = @transform_3, window_bounds = array<i64: 2, 128>}, {transform_indices = @transform_4, window_bounds = array<i64: 1, 128, 384>}, {transform_indices = @transform_5, window_bounds = array<i64: 1, 1, 384>}, {transform_indices = @transform_6, window_bounds = array<i64: 1, 128, 128>}, {transform_indices = @transform_7, window_bounds = array<i64: 1, 1, 128>}, {transform_indices = @transform_8, window_bounds = array<i64: 1, 1, 128>}, {transform_indices = @transform_9, window_bounds = array<i64: 1, 1, 128>}, {transform_indices = @transform_10, window_bounds = array<i64: 1, 128, 512>}, {transform_indices = @transform_11, window_bounds = array<i64: 1, 1, 512>}, {transform_indices = @transform_12, window_bounds = array<i64: 1, 512, 128>}, {transform_indices = @transform_13, window_bounds = array<i64: 1, 1, 128>}, {transform_indices = @transform_14, window_bounds = array<i64: 1, 1, 128>}, {transform_indices = @transform_15, window_bounds = array<i64: 1, 1, 128>}, {pipeline_mode = #tpu.pipeline_mode<synchronous>, transform_indices = @transform_16, window_bounds = array<i64: 2, 8, 128>}]} {
    %c0_i32 = arith.constant 0 : i32
    %0 = arith.cmpi eq, %arg0, %c0_i32 : i32
    %1 = arith.extui %0 : i1 to i32
    %c0_i32_0 = arith.constant 0 : i32
    %2 = arith.cmpi ne, %1, %c0_i32_0 : i32
    scf.if %2 {
      %c0_148 = arith.constant 0 : index
      %c0_149 = arith.constant 0 : index
      %c0_150 = arith.constant 0 : index
      %366 = vector.load %arg1[%c0_148, %c0_149, %c0_150] : memref<2x8x128xf32, #tpu.memory_space<vmem>>, vector<2x8x128xf32>
      %c0_151 = arith.constant 0 : index
      %c0_152 = arith.constant 0 : index
      %367 = vector.load %arg2[%c0_151, %c0_152] : memref<8x128xf32, #tpu.memory_space<vmem>>, vector<8x128xf32>
      %368 = vector.shape_cast %367 : vector<8x128xf32> to vector<1x8x128xf32>
      %369 = vector.broadcast %368 : vector<1x8x128xf32> to vector<2x8x128xf32>
      %370 = arith.addf %366, %369 : vector<2x8x128xf32>
      %c0_153 = arith.constant 0 : index
      %c0_154 = arith.constant 0 : index
      %371 = vector.load %arg3[%c0_153, %c0_154] : memref<2x128xf32, #tpu.memory_space<vmem>>, vector<2x128xf32>
      %372 = vector.shape_cast %371 : vector<2x128xf32> to vector<2x1x128xf32>
      %373 = vector.broadcast %372 : vector<2x1x128xf32> to vector<2x8x128xf32>
      %374 = arith.addf %370, %373 : vector<2x8x128xf32>
      %c0_155 = arith.constant 0 : index
      %c0_156 = arith.constant 0 : index
      %375 = vector.load %arg4[%c0_155, %c0_156] : memref<2x128xf32, #tpu.memory_space<vmem>>, vector<2x128xf32>
      %376 = vector.shape_cast %375 : vector<2x128xf32> to vector<2x1x128xf32>
      %377 = vector.broadcast %376 : vector<2x1x128xf32> to vector<2x8x128xf32>
      %378 = arith.addf %374, %377 : vector<2x8x128xf32>
      %379 = vector.shape_cast %378 : vector<2x8x128xf32> to vector<16x128xf32>
      %c0_157 = arith.constant 0 : index
      %c0_158 = arith.constant 0 : index
      %380 = vector.load %arg18[%c0_157, %c0_158] : memref<16x128xf32, #tpu.memory_space<vmem>>, vector<16x128xf32>
      tpu.vector_store %arg18[%c0_157, %c0_158], %379 {strides = array<i32>} : memref<16x128xf32, #tpu.memory_space<vmem>>, vector<16x128xf32>,
    } else {
    }
    %c0 = arith.constant 0 : index
    %c0_1 = arith.constant 0 : index
    %3 = vector.load %arg18[%c0, %c0_1] : memref<16x128xf32, #tpu.memory_space<vmem>>, vector<16x128xf32>
    %c0_2 = arith.constant 0 : index
    %c0_3 = arith.constant 0 : index
    %c0_4 = arith.constant 0 : index
    %4 = vector.load %arg5[%c0_2, %c0_3, %c0_4] : memref<1x128x384xf32, #tpu.memory_space<vmem>>, vector<1x128x384xf32>
    %5 = vector.shape_cast %4 : vector<1x128x384xf32> to vector<128x384xf32>
    %c0_5 = arith.constant 0 : index
    %c0_6 = arith.constant 0 : index
    %c0_7 = arith.constant 0 : index
    %6 = vector.load %arg6[%c0_5, %c0_6, %c0_7] : memref<1x1x384xf32, #tpu.memory_space<vmem>>, vector<1x1x384xf32>
    %7 = vector.shape_cast %6 : vector<1x1x384xf32> to vector<1x384xf32>
    %c0_8 = arith.constant 0 : index
    %c0_9 = arith.constant 0 : index
    %c0_10 = arith.constant 0 : index
    %8 = vector.load %arg7[%c0_8, %c0_9, %c0_10] : memref<1x128x128xf32, #tpu.memory_space<vmem>>, vector<1x128x128xf32>
    %9 = vector.shape_cast %8 : vector<1x128x128xf32> to vector<128x128xf32>
    %c0_11 = arith.constant 0 : index
    %c0_12 = arith.constant 0 : index
    %c0_13 = arith.constant 0 : index
    %10 = vector.load %arg8[%c0_11, %c0_12, %c0_13] : memref<1x1x128xf32, #tpu.memory_space<vmem>>, vector<1x1x128xf32>
    %11 = vector.shape_cast %10 : vector<1x1x128xf32> to vector<1x128xf32>
    %c0_14 = arith.constant 0 : index
    %c0_15 = arith.constant 0 : index
    %c0_16 = arith.constant 0 : index
    %12 = vector.load %arg9[%c0_14, %c0_15, %c0_16] : memref<1x1x128xf32, #tpu.memory_space<vmem>>, vector<1x1x128xf32>
    %13 = vector.shape_cast %12 : vector<1x1x128xf32> to vector<1x128xf32>
    %c0_17 = arith.constant 0 : index
    %c0_18 = arith.constant 0 : index
    %c0_19 = arith.constant 0 : index
    %14 = vector.load %arg10[%c0_17, %c0_18, %c0_19] : memref<1x1x128xf32, #tpu.memory_space<vmem>>, vector<1x1x128xf32>
    %15 = vector.shape_cast %14 : vector<1x1x128xf32> to vector<1x128xf32>
    %c0_20 = arith.constant 0 : index
    %c0_21 = arith.constant 0 : index
    %c0_22 = arith.constant 0 : index
    %16 = vector.load %arg11[%c0_20, %c0_21, %c0_22] : memref<1x128x512xf32, #tpu.memory_space<vmem>>, vector<1x128x512xf32>
    %17 = vector.shape_cast %16 : vector<1x128x512xf32> to vector<128x512xf32>
    %c0_23 = arith.constant 0 : index
    %c0_24 = arith.constant 0 : index
    %c0_25 = arith.constant 0 : index
    %18 = vector.load %arg12[%c0_23, %c0_24, %c0_25] : memref<1x1x512xf32, #tpu.memory_space<vmem>>, vector<1x1x512xf32>
    %19 = vector.shape_cast %18 : vector<1x1x512xf32> to vector<1x512xf32>
    %c0_26 = arith.constant 0 : index
    %c0_27 = arith.constant 0 : index
    %c0_28 = arith.constant 0 : index
    %20 = vector.load %arg13[%c0_26, %c0_27, %c0_28] : memref<1x512x128xf32, #tpu.memory_space<vmem>>, vector<1x512x128xf32>
    %21 = vector.shape_cast %20 : vector<1x512x128xf32> to vector<512x128xf32>
    %c0_29 = arith.constant 0 : index
    %c0_30 = arith.constant 0 : index
    %c0_31 = arith.constant 0 : index
    %22 = vector.load %arg14[%c0_29, %c0_30, %c0_31] : memref<1x1x128xf32, #tpu.memory_space<vmem>>, vector<1x1x128xf32>
    %23 = vector.shape_cast %22 : vector<1x1x128xf32> to vector<1x128xf32>
    %c0_32 = arith.constant 0 : index
    %c0_33 = arith.constant 0 : index
    %c0_34 = arith.constant 0 : index
    %24 = vector.load %arg15[%c0_32, %c0_33, %c0_34] : memref<1x1x128xf32, #tpu.memory_space<vmem>>, vector<1x1x128xf32>
    %25 = vector.shape_cast %24 : vector<1x1x128xf32> to vector<1x128xf32>
    %c0_35 = arith.constant 0 : index
    %c0_36 = arith.constant 0 : index
    %c0_37 = arith.constant 0 : index
    %26 = vector.load %arg16[%c0_35, %c0_36, %c0_37] : memref<1x1x128xf32, #tpu.memory_space<vmem>>, vector<1x1x128xf32>
    %27 = vector.shape_cast %26 : vector<1x1x128xf32> to vector<1x128xf32>
    %cst = arith.constant dense<0.000000e+00> : vector<16x384xf32>
    %28 = tpu.matmul %3, %5, %cst {dimension_numbers = #tpu.dot_dimension_numbers<[1], [0], [0], [1], [0, 0, 1, 1], [], []>} : vector<16x128xf32>, vector<128x384xf32>, vector<16x384xf32> -> vector<16x384xf32>
    %29 = vector.broadcast %7 : vector<1x384xf32> to vector<16x384xf32>
    %30 = arith.addf %28, %29 : vector<16x384xf32>
    %31 = vector.extract_strided_slice %30 {offsets = [0, 0], sizes = [16, 128], strides = [1, 1]} : vector<16x384xf32> to vector<16x128xf32>
    %cst_38 = arith.constant 2.500000e-01 : f32
    %32 = vector.broadcast %cst_38 : f32 to vector<16x128xf32>
    %33 = arith.mulf %31, %32 : vector<16x128xf32>
    %34 = vector.extract_strided_slice %30 {offsets = [0, 128], sizes = [16, 128], strides = [1, 1]} : vector<16x384xf32> to vector<16x128xf32>
    %35 = vector.extract_strided_slice %30 {offsets = [0, 256], sizes = [16, 128], strides = [1, 1]} : vector<16x384xf32> to vector<16x128xf32>
    %36 = vector.extract_strided_slice %33 {offsets = [0, 0], sizes = [8, 128], strides = [1, 1]} : vector<16x128xf32> to vector<8x128xf32>
    %37 = vector.extract_strided_slice %34 {offsets = [0, 0], sizes = [8, 128], strides = [1, 1]} : vector<16x128xf32> to vector<8x128xf32>
    %38 = vector.extract_strided_slice %35 {offsets = [0, 0], sizes = [8, 128], strides = [1, 1]} : vector<16x128xf32> to vector<8x128xf32>
    %39 = vector.extract_strided_slice %36 {offsets = [0, 0], sizes = [8, 16], strides = [1, 1]} : vector<8x128xf32> to vector<8x16xf32>
    %40 = vector.extract_strided_slice %37 {offsets = [0, 0], sizes = [8, 16], strides = [1, 1]} : vector<8x128xf32> to vector<8x16xf32>
    %cst_39 = arith.constant dense<0.000000e+00> : vector<8x8xf32>
    %41 = tpu.matmul %39, %40, %cst_39 {dimension_numbers = #tpu.dot_dimension_numbers<[1], [1], [0], [0], [0, 0, 1, 0], [], []>} : vector<8x16xf32>, vector<8x16xf32>, vector<8x8xf32> -> vector<8x8xf32>
    %cst_40 = arith.constant dense<0xFF800000> : vector<8xf32>
    %42 = vector.multi_reduction <maximumf>, %41, %cst_40 [1] : vector<8x8xf32> to vector<8xf32>
    %43 = vector.shape_cast %42 : vector<8xf32> to vector<8x1xf32>
    %44 = vector.broadcast %43 : vector<8x1xf32> to vector<8x8xf32>
    %45 = arith.subf %41, %44 : vector<8x8xf32>
    %46 = math.exp %45 : vector<8x8xf32>
    %cst_41 = arith.constant dense<0.000000e+00> : vector<8xf32>
    %47 = vector.multi_reduction <add>, %46, %cst_41 [1] : vector<8x8xf32> to vector<8xf32>
    %48 = vector.shape_cast %47 : vector<8xf32> to vector<8x1xf32>
    %49 = tpu.reciprocal %48 {approx = true} : vector<8x1xf32> -> vector<8x1xf32>
    %50 = vector.broadcast %49 : vector<8x1xf32> to vector<8x8xf32>
    %51 = arith.mulf %46, %50 : vector<8x8xf32>
    %52 = vector.extract_strided_slice %38 {offsets = [0, 0], sizes = [8, 16], strides = [1, 1]} : vector<8x128xf32> to vector<8x16xf32>
    %cst_42 = arith.constant dense<0.000000e+00> : vector<8x16xf32>
    %53 = tpu.matmul %51, %52, %cst_42 {dimension_numbers = #tpu.dot_dimension_numbers<[1], [0], [0], [1], [0, 0, 1, 1], [], []>} : vector<8x8xf32>, vector<8x16xf32>, vector<8x16xf32> -> vector<8x16xf32>
    %c0_43 = arith.constant 0 : index
    %c0_44 = arith.constant 0 : index
    %54 = vector.load %arg19[%c0_43, %c0_44] : memref<16x128xf32, #tpu.memory_space<vmem>>, vector<8x16xf32>
    tpu.vector_store %arg19[%c0_43, %c0_44], %53 {strides = array<i32>} : memref<16x128xf32, #tpu.memory_space<vmem>>, vector<8x16xf32>,
    %55 = vector.extract_strided_slice %36 {offsets = [0, 16], sizes = [8, 16], strides = [1, 1]} : vector<8x128xf32> to vector<8x16xf32>
    %56 = vector.extract_strided_slice %37 {offsets = [0, 16], sizes = [8, 16], strides = [1, 1]} : vector<8x128xf32> to vector<8x16xf32>
    %cst_45 = arith.constant dense<0.000000e+00> : vector<8x8xf32>
    %57 = tpu.matmul %55, %56, %cst_45 {dimension_numbers = #tpu.dot_dimension_numbers<[1], [1], [0], [0], [0, 0, 1, 0], [], []>} : vector<8x16xf32>, vector<8x16xf32>, vector<8x8xf32> -> vector<8x8xf32>
    %cst_46 = arith.constant dense<0xFF800000> : vector<8xf32>
    %58 = vector.multi_reduction <maximumf>, %57, %cst_46 [1] : vector<8x8xf32> to vector<8xf32>
    %59 = vector.shape_cast %58 : vector<8xf32> to vector<8x1xf32>
    %60 = vector.broadcast %59 : vector<8x1xf32> to vector<8x8xf32>
    %61 = arith.subf %57, %60 : vector<8x8xf32>
    %62 = math.exp %61 : vector<8x8xf32>
    %cst_47 = arith.constant dense<0.000000e+00> : vector<8xf32>
    %63 = vector.multi_reduction <add>, %62, %cst_47 [1] : vector<8x8xf32> to vector<8xf32>
    %64 = vector.shape_cast %63 : vector<8xf32> to vector<8x1xf32>
    %65 = tpu.reciprocal %64 {approx = true} : vector<8x1xf32> -> vector<8x1xf32>
    %66 = vector.broadcast %65 : vector<8x1xf32> to vector<8x8xf32>
    %67 = arith.mulf %62, %66 : vector<8x8xf32>
    %68 = vector.extract_strided_slice %38 {offsets = [0, 16], sizes = [8, 16], strides = [1, 1]} : vector<8x128xf32> to vector<8x16xf32>
    %cst_48 = arith.constant dense<0.000000e+00> : vector<8x16xf32>
    %69 = tpu.matmul %67, %68, %cst_48 {dimension_numbers = #tpu.dot_dimension_numbers<[1], [0], [0], [1], [0, 0, 1, 1], [], []>} : vector<8x8xf32>, vector<8x16xf32>, vector<8x16xf32> -> vector<8x16xf32>
    %c0_49 = arith.constant 0 : index
    %c16 = arith.constant 16 : index
    %70 = vector.load %arg19[%c0_49, %c16] : memref<16x128xf32, #tpu.memory_space<vmem>>, vector<8x16xf32>
    tpu.vector_store %arg19[%c0_49, %c16], %69 {strides = array<i32>} : memref<16x128xf32, #tpu.memory_space<vmem>>, vector<8x16xf32>,
    %71 = vector.extract_strided_slice %36 {offsets = [0, 32], sizes = [8, 16], strides = [1, 1]} : vector<8x128xf32> to vector<8x16xf32>
    %72 = vector.extract_strided_slice %37 {offsets = [0, 32], sizes = [8, 16], strides = [1, 1]} : vector<8x128xf32> to vector<8x16xf32>
    %cst_50 = arith.constant dense<0.000000e+00> : vector<8x8xf32>
    %73 = tpu.matmul %71, %72, %cst_50 {dimension_numbers = #tpu.dot_dimension_numbers<[1], [1], [0], [0], [0, 0, 1, 0], [], []>} : vector<8x16xf32>, vector<8x16xf32>, vector<8x8xf32> -> vector<8x8xf32>
    %cst_51 = arith.constant dense<0xFF800000> : vector<8xf32>
    %74 = vector.multi_reduction <maximumf>, %73, %cst_51 [1] : vector<8x8xf32> to vector<8xf32>
    %75 = vector.shape_cast %74 : vector<8xf32> to vector<8x1xf32>
    %76 = vector.broadcast %75 : vector<8x1xf32> to vector<8x8xf32>
    %77 = arith.subf %73, %76 : vector<8x8xf32>
    %78 = math.exp %77 : vector<8x8xf32>
    %cst_52 = arith.constant dense<0.000000e+00> : vector<8xf32>
    %79 = vector.multi_reduction <add>, %78, %cst_52 [1] : vector<8x8xf32> to vector<8xf32>
    %80 = vector.shape_cast %79 : vector<8xf32> to vector<8x1xf32>
    %81 = tpu.reciprocal %80 {approx = true} : vector<8x1xf32> -> vector<8x1xf32>
    %82 = vector.broadcast %81 : vector<8x1xf32> to vector<8x8xf32>
    %83 = arith.mulf %78, %82 : vector<8x8xf32>
    %84 = vector.extract_strided_slice %38 {offsets = [0, 32], sizes = [8, 16], strides = [1, 1]} : vector<8x128xf32> to vector<8x16xf32>
    %cst_53 = arith.constant dense<0.000000e+00> : vector<8x16xf32>
    %85 = tpu.matmul %83, %84, %cst_53 {dimension_numbers = #tpu.dot_dimension_numbers<[1], [0], [0], [1], [0, 0, 1, 1], [], []>} : vector<8x8xf32>, vector<8x16xf32>, vector<8x16xf32> -> vector<8x16xf32>
    %c0_54 = arith.constant 0 : index
    %c32 = arith.constant 32 : index
    %86 = vector.load %arg19[%c0_54, %c32] : memref<16x128xf32, #tpu.memory_space<vmem>>, vector<8x16xf32>
    tpu.vector_store %arg19[%c0_54, %c32], %85 {strides = array<i32>} : memref<16x128xf32, #tpu.memory_space<vmem>>, vector<8x16xf32>,
    %87 = vector.extract_strided_slice %36 {offsets = [0, 48], sizes = [8, 16], strides = [1, 1]} : vector<8x128xf32> to vector<8x16xf32>
    %88 = vector.extract_strided_slice %37 {offsets = [0, 48], sizes = [8, 16], strides = [1, 1]} : vector<8x128xf32> to vector<8x16xf32>
    %cst_55 = arith.constant dense<0.000000e+00> : vector<8x8xf32>
    %89 = tpu.matmul %87, %88, %cst_55 {dimension_numbers = #tpu.dot_dimension_numbers<[1], [1], [0], [0], [0, 0, 1, 0], [], []>} : vector<8x16xf32>, vector<8x16xf32>, vector<8x8xf32> -> vector<8x8xf32>
    %cst_56 = arith.constant dense<0xFF800000> : vector<8xf32>
    %90 = vector.multi_reduction <maximumf>, %89, %cst_56 [1] : vector<8x8xf32> to vector<8xf32>
    %91 = vector.shape_cast %90 : vector<8xf32> to vector<8x1xf32>
    %92 = vector.broadcast %91 : vector<8x1xf32> to vector<8x8xf32>
    %93 = arith.subf %89, %92 : vector<8x8xf32>
    %94 = math.exp %93 : vector<8x8xf32>
    %cst_57 = arith.constant dense<0.000000e+00> : vector<8xf32>
    %95 = vector.multi_reduction <add>, %94, %cst_57 [1] : vector<8x8xf32> to vector<8xf32>
    %96 = vector.shape_cast %95 : vector<8xf32> to vector<8x1xf32>
    %97 = tpu.reciprocal %96 {approx = true} : vector<8x1xf32> -> vector<8x1xf32>
    %98 = vector.broadcast %97 : vector<8x1xf32> to vector<8x8xf32>
    %99 = arith.mulf %94, %98 : vector<8x8xf32>
    %100 = vector.extract_strided_slice %38 {offsets = [0, 48], sizes = [8, 16], strides = [1, 1]} : vector<8x128xf32> to vector<8x16xf32>
    %cst_58 = arith.constant dense<0.000000e+00> : vector<8x16xf32>
    %101 = tpu.matmul %99, %100, %cst_58 {dimension_numbers = #tpu.dot_dimension_numbers<[1], [0], [0], [1], [0, 0, 1, 1], [], []>} : vector<8x8xf32>, vector<8x16xf32>, vector<8x16xf32> -> vector<8x16xf32>
    %c0_59 = arith.constant 0 : index
    %c48 = arith.constant 48 : index
    %102 = vector.load %arg19[%c0_59, %c48] : memref<16x128xf32, #tpu.memory_space<vmem>>, vector<8x16xf32>
    tpu.vector_store %arg19[%c0_59, %c48], %101 {strides = array<i32>} : memref<16x128xf32, #tpu.memory_space<vmem>>, vector<8x16xf32>,
    %103 = vector.extract_strided_slice %36 {offsets = [0, 64], sizes = [8, 16], strides = [1, 1]} : vector<8x128xf32> to vector<8x16xf32>
    %104 = vector.extract_strided_slice %37 {offsets = [0, 64], sizes = [8, 16], strides = [1, 1]} : vector<8x128xf32> to vector<8x16xf32>
    %cst_60 = arith.constant dense<0.000000e+00> : vector<8x8xf32>
    %105 = tpu.matmul %103, %104, %cst_60 {dimension_numbers = #tpu.dot_dimension_numbers<[1], [1], [0], [0], [0, 0, 1, 0], [], []>} : vector<8x16xf32>, vector<8x16xf32>, vector<8x8xf32> -> vector<8x8xf32>
    %cst_61 = arith.constant dense<0xFF800000> : vector<8xf32>
    %106 = vector.multi_reduction <maximumf>, %105, %cst_61 [1] : vector<8x8xf32> to vector<8xf32>
    %107 = vector.shape_cast %106 : vector<8xf32> to vector<8x1xf32>
    %108 = vector.broadcast %107 : vector<8x1xf32> to vector<8x8xf32>
    %109 = arith.subf %105, %108 : vector<8x8xf32>
    %110 = math.exp %109 : vector<8x8xf32>
    %cst_62 = arith.constant dense<0.000000e+00> : vector<8xf32>
    %111 = vector.multi_reduction <add>, %110, %cst_62 [1] : vector<8x8xf32> to vector<8xf32>
    %112 = vector.shape_cast %111 : vector<8xf32> to vector<8x1xf32>
    %113 = tpu.reciprocal %112 {approx = true} : vector<8x1xf32> -> vector<8x1xf32>
    %114 = vector.broadcast %113 : vector<8x1xf32> to vector<8x8xf32>
    %115 = arith.mulf %110, %114 : vector<8x8xf32>
    %116 = vector.extract_strided_slice %38 {offsets = [0, 64], sizes = [8, 16], strides = [1, 1]} : vector<8x128xf32> to vector<8x16xf32>
    %cst_63 = arith.constant dense<0.000000e+00> : vector<8x16xf32>
    %117 = tpu.matmul %115, %116, %cst_63 {dimension_numbers = #tpu.dot_dimension_numbers<[1], [0], [0], [1], [0, 0, 1, 1], [], []>} : vector<8x8xf32>, vector<8x16xf32>, vector<8x16xf32> -> vector<8x16xf32>
    %c0_64 = arith.constant 0 : index
    %c64 = arith.constant 64 : index
    %118 = vector.load %arg19[%c0_64, %c64] : memref<16x128xf32, #tpu.memory_space<vmem>>, vector<8x16xf32>
    tpu.vector_store %arg19[%c0_64, %c64], %117 {strides = array<i32>} : memref<16x128xf32, #tpu.memory_space<vmem>>, vector<8x16xf32>,
    %119 = vector.extract_strided_slice %36 {offsets = [0, 80], sizes = [8, 16], strides = [1, 1]} : vector<8x128xf32> to vector<8x16xf32>
    %120 = vector.extract_strided_slice %37 {offsets = [0, 80], sizes = [8, 16], strides = [1, 1]} : vector<8x128xf32> to vector<8x16xf32>
    %cst_65 = arith.constant dense<0.000000e+00> : vector<8x8xf32>
    %121 = tpu.matmul %119, %120, %cst_65 {dimension_numbers = #tpu.dot_dimension_numbers<[1], [1], [0], [0], [0, 0, 1, 0], [], []>} : vector<8x16xf32>, vector<8x16xf32>, vector<8x8xf32> -> vector<8x8xf32>
    %cst_66 = arith.constant dense<0xFF800000> : vector<8xf32>
    %122 = vector.multi_reduction <maximumf>, %121, %cst_66 [1] : vector<8x8xf32> to vector<8xf32>
    %123 = vector.shape_cast %122 : vector<8xf32> to vector<8x1xf32>
    %124 = vector.broadcast %123 : vector<8x1xf32> to vector<8x8xf32>
    %125 = arith.subf %121, %124 : vector<8x8xf32>
    %126 = math.exp %125 : vector<8x8xf32>
    %cst_67 = arith.constant dense<0.000000e+00> : vector<8xf32>
    %127 = vector.multi_reduction <add>, %126, %cst_67 [1] : vector<8x8xf32> to vector<8xf32>
    %128 = vector.shape_cast %127 : vector<8xf32> to vector<8x1xf32>
    %129 = tpu.reciprocal %128 {approx = true} : vector<8x1xf32> -> vector<8x1xf32>
    %130 = vector.broadcast %129 : vector<8x1xf32> to vector<8x8xf32>
    %131 = arith.mulf %126, %130 : vector<8x8xf32>
    %132 = vector.extract_strided_slice %38 {offsets = [0, 80], sizes = [8, 16], strides = [1, 1]} : vector<8x128xf32> to vector<8x16xf32>
    %cst_68 = arith.constant dense<0.000000e+00> : vector<8x16xf32>
    %133 = tpu.matmul %131, %132, %cst_68 {dimension_numbers = #tpu.dot_dimension_numbers<[1], [0], [0], [1], [0, 0, 1, 1], [], []>} : vector<8x8xf32>, vector<8x16xf32>, vector<8x16xf32> -> vector<8x16xf32>
    %c0_69 = arith.constant 0 : index
    %c80 = arith.constant 80 : index
    %134 = vector.load %arg19[%c0_69, %c80] : memref<16x128xf32, #tpu.memory_space<vmem>>, vector<8x16xf32>
    tpu.vector_store %arg19[%c0_69, %c80], %133 {strides = array<i32>} : memref<16x128xf32, #tpu.memory_space<vmem>>, vector<8x16xf32>,
    %135 = vector.extract_strided_slice %36 {offsets = [0, 96], sizes = [8, 16], strides = [1, 1]} : vector<8x128xf32> to vector<8x16xf32>
    %136 = vector.extract_strided_slice %37 {offsets = [0, 96], sizes = [8, 16], strides = [1, 1]} : vector<8x128xf32> to vector<8x16xf32>
    %cst_70 = arith.constant dense<0.000000e+00> : vector<8x8xf32>
    %137 = tpu.matmul %135, %136, %cst_70 {dimension_numbers = #tpu.dot_dimension_numbers<[1], [1], [0], [0], [0, 0, 1, 0], [], []>} : vector<8x16xf32>, vector<8x16xf32>, vector<8x8xf32> -> vector<8x8xf32>
    %cst_71 = arith.constant dense<0xFF800000> : vector<8xf32>
    %138 = vector.multi_reduction <maximumf>, %137, %cst_71 [1] : vector<8x8xf32> to vector<8xf32>
    %139 = vector.shape_cast %138 : vector<8xf32> to vector<8x1xf32>
    %140 = vector.broadcast %139 : vector<8x1xf32> to vector<8x8xf32>
    %141 = arith.subf %137, %140 : vector<8x8xf32>
    %142 = math.exp %141 : vector<8x8xf32>
    %cst_72 = arith.constant dense<0.000000e+00> : vector<8xf32>
    %143 = vector.multi_reduction <add>, %142, %cst_72 [1] : vector<8x8xf32> to vector<8xf32>
    %144 = vector.shape_cast %143 : vector<8xf32> to vector<8x1xf32>
    %145 = tpu.reciprocal %144 {approx = true} : vector<8x1xf32> -> vector<8x1xf32>
    %146 = vector.broadcast %145 : vector<8x1xf32> to vector<8x8xf32>
    %147 = arith.mulf %142, %146 : vector<8x8xf32>
    %148 = vector.extract_strided_slice %38 {offsets = [0, 96], sizes = [8, 16], strides = [1, 1]} : vector<8x128xf32> to vector<8x16xf32>
    %cst_73 = arith.constant dense<0.000000e+00> : vector<8x16xf32>
    %149 = tpu.matmul %147, %148, %cst_73 {dimension_numbers = #tpu.dot_dimension_numbers<[1], [0], [0], [1], [0, 0, 1, 1], [], []>} : vector<8x8xf32>, vector<8x16xf32>, vector<8x16xf32> -> vector<8x16xf32>
    %c0_74 = arith.constant 0 : index
    %c96 = arith.constant 96 : index
    %150 = vector.load %arg19[%c0_74, %c96] : memref<16x128xf32, #tpu.memory_space<vmem>>, vector<8x16xf32>
    tpu.vector_store %arg19[%c0_74, %c96], %149 {strides = array<i32>} : memref<16x128xf32, #tpu.memory_space<vmem>>, vector<8x16xf32>,
    %151 = vector.extract_strided_slice %36 {offsets = [0, 112], sizes = [8, 16], strides = [1, 1]} : vector<8x128xf32> to vector<8x16xf32>
    %152 = vector.extract_strided_slice %37 {offsets = [0, 112], sizes = [8, 16], strides = [1, 1]} : vector<8x128xf32> to vector<8x16xf32>
    %cst_75 = arith.constant dense<0.000000e+00> : vector<8x8xf32>
    %153 = tpu.matmul %151, %152, %cst_75 {dimension_numbers = #tpu.dot_dimension_numbers<[1], [1], [0], [0], [0, 0, 1, 0], [], []>} : vector<8x16xf32>, vector<8x16xf32>, vector<8x8xf32> -> vector<8x8xf32>
    %cst_76 = arith.constant dense<0xFF800000> : vector<8xf32>
    %154 = vector.multi_reduction <maximumf>, %153, %cst_76 [1] : vector<8x8xf32> to vector<8xf32>
    %155 = vector.shape_cast %154 : vector<8xf32> to vector<8x1xf32>
    %156 = vector.broadcast %155 : vector<8x1xf32> to vector<8x8xf32>
    %157 = arith.subf %153, %156 : vector<8x8xf32>
    %158 = math.exp %157 : vector<8x8xf32>
    %cst_77 = arith.constant dense<0.000000e+00> : vector<8xf32>
    %159 = vector.multi_reduction <add>, %158, %cst_77 [1] : vector<8x8xf32> to vector<8xf32>
    %160 = vector.shape_cast %159 : vector<8xf32> to vector<8x1xf32>
    %161 = tpu.reciprocal %160 {approx = true} : vector<8x1xf32> -> vector<8x1xf32>
    %162 = vector.broadcast %161 : vector<8x1xf32> to vector<8x8xf32>
    %163 = arith.mulf %158, %162 : vector<8x8xf32>
    %164 = vector.extract_strided_slice %38 {offsets = [0, 112], sizes = [8, 16], strides = [1, 1]} : vector<8x128xf32> to vector<8x16xf32>
    %cst_78 = arith.constant dense<0.000000e+00> : vector<8x16xf32>
    %165 = tpu.matmul %163, %164, %cst_78 {dimension_numbers = #tpu.dot_dimension_numbers<[1], [0], [0], [1], [0, 0, 1, 1], [], []>} : vector<8x8xf32>, vector<8x16xf32>, vector<8x16xf32> -> vector<8x16xf32>
    %c0_79 = arith.constant 0 : index
    %c112 = arith.constant 112 : index
    %166 = vector.load %arg19[%c0_79, %c112] : memref<16x128xf32, #tpu.memory_space<vmem>>, vector<8x16xf32>
    tpu.vector_store %arg19[%c0_79, %c112], %165 {strides = array<i32>} : memref<16x128xf32, #tpu.memory_space<vmem>>, vector<8x16xf32>,
    %167 = vector.extract_strided_slice %33 {offsets = [8, 0], sizes = [8, 128], strides = [1, 1]} : vector<16x128xf32> to vector<8x128xf32>
    %168 = vector.extract_strided_slice %34 {offsets = [8, 0], sizes = [8, 128], strides = [1, 1]} : vector<16x128xf32> to vector<8x128xf32>
    %169 = vector.extract_strided_slice %35 {offsets = [8, 0], sizes = [8, 128], strides = [1, 1]} : vector<16x128xf32> to vector<8x128xf32>
    %170 = vector.extract_strided_slice %167 {offsets = [0, 0], sizes = [8, 16], strides = [1, 1]} : vector<8x128xf32> to vector<8x16xf32>
    %171 = vector.extract_strided_slice %168 {offsets = [0, 0], sizes = [8, 16], strides = [1, 1]} : vector<8x128xf32> to vector<8x16xf32>
    %cst_80 = arith.constant dense<0.000000e+00> : vector<8x8xf32>
    %172 = tpu.matmul %170, %171, %cst_80 {dimension_numbers = #tpu.dot_dimension_numbers<[1], [1], [0], [0], [0, 0, 1, 0], [], []>} : vector<8x16xf32>, vector<8x16xf32>, vector<8x8xf32> -> vector<8x8xf32>
    %cst_81 = arith.constant dense<0xFF800000> : vector<8xf32>
    %173 = vector.multi_reduction <maximumf>, %172, %cst_81 [1] : vector<8x8xf32> to vector<8xf32>
    %174 = vector.shape_cast %173 : vector<8xf32> to vector<8x1xf32>
    %175 = vector.broadcast %174 : vector<8x1xf32> to vector<8x8xf32>
    %176 = arith.subf %172, %175 : vector<8x8xf32>
    %177 = math.exp %176 : vector<8x8xf32>
    %cst_82 = arith.constant dense<0.000000e+00> : vector<8xf32>
    %178 = vector.multi_reduction <add>, %177, %cst_82 [1] : vector<8x8xf32> to vector<8xf32>
    %179 = vector.shape_cast %178 : vector<8xf32> to vector<8x1xf32>
    %180 = tpu.reciprocal %179 {approx = true} : vector<8x1xf32> -> vector<8x1xf32>
    %181 = vector.broadcast %180 : vector<8x1xf32> to vector<8x8xf32>
    %182 = arith.mulf %177, %181 : vector<8x8xf32>
    %183 = vector.extract_strided_slice %169 {offsets = [0, 0], sizes = [8, 16], strides = [1, 1]} : vector<8x128xf32> to vector<8x16xf32>
    %cst_83 = arith.constant dense<0.000000e+00> : vector<8x16xf32>
    %184 = tpu.matmul %182, %183, %cst_83 {dimension_numbers = #tpu.dot_dimension_numbers<[1], [0], [0], [1], [0, 0, 1, 1], [], []>} : vector<8x8xf32>, vector<8x16xf32>, vector<8x16xf32> -> vector<8x16xf32>
    %c8 = arith.constant 8 : index
    %c0_84 = arith.constant 0 : index
    %185 = vector.load %arg19[%c8, %c0_84] : memref<16x128xf32, #tpu.memory_space<vmem>>, vector<8x16xf32>
    tpu.vector_store %arg19[%c8, %c0_84], %184 {strides = array<i32>} : memref<16x128xf32, #tpu.memory_space<vmem>>, vector<8x16xf32>,
    %186 = vector.extract_strided_slice %167 {offsets = [0, 16], sizes = [8, 16], strides = [1, 1]} : vector<8x128xf32> to vector<8x16xf32>
    %187 = vector.extract_strided_slice %168 {offsets = [0, 16], sizes = [8, 16], strides = [1, 1]} : vector<8x128xf32> to vector<8x16xf32>
    %cst_85 = arith.constant dense<0.000000e+00> : vector<8x8xf32>
    %188 = tpu.matmul %186, %187, %cst_85 {dimension_numbers = #tpu.dot_dimension_numbers<[1], [1], [0], [0], [0, 0, 1, 0], [], []>} : vector<8x16xf32>, vector<8x16xf32>, vector<8x8xf32> -> vector<8x8xf32>
    %cst_86 = arith.constant dense<0xFF800000> : vector<8xf32>
    %189 = vector.multi_reduction <maximumf>, %188, %cst_86 [1] : vector<8x8xf32> to vector<8xf32>
    %190 = vector.shape_cast %189 : vector<8xf32> to vector<8x1xf32>
    %191 = vector.broadcast %190 : vector<8x1xf32> to vector<8x8xf32>
    %192 = arith.subf %188, %191 : vector<8x8xf32>
    %193 = math.exp %192 : vector<8x8xf32>
    %cst_87 = arith.constant dense<0.000000e+00> : vector<8xf32>
    %194 = vector.multi_reduction <add>, %193, %cst_87 [1] : vector<8x8xf32> to vector<8xf32>
    %195 = vector.shape_cast %194 : vector<8xf32> to vector<8x1xf32>
    %196 = tpu.reciprocal %195 {approx = true} : vector<8x1xf32> -> vector<8x1xf32>
    %197 = vector.broadcast %196 : vector<8x1xf32> to vector<8x8xf32>
    %198 = arith.mulf %193, %197 : vector<8x8xf32>
    %199 = vector.extract_strided_slice %169 {offsets = [0, 16], sizes = [8, 16], strides = [1, 1]} : vector<8x128xf32> to vector<8x16xf32>
    %cst_88 = arith.constant dense<0.000000e+00> : vector<8x16xf32>
    %200 = tpu.matmul %198, %199, %cst_88 {dimension_numbers = #tpu.dot_dimension_numbers<[1], [0], [0], [1], [0, 0, 1, 1], [], []>} : vector<8x8xf32>, vector<8x16xf32>, vector<8x16xf32> -> vector<8x16xf32>
    %c8_89 = arith.constant 8 : index
    %c16_90 = arith.constant 16 : index
    %201 = vector.load %arg19[%c8_89, %c16_90] : memref<16x128xf32, #tpu.memory_space<vmem>>, vector<8x16xf32>
    tpu.vector_store %arg19[%c8_89, %c16_90], %200 {strides = array<i32>} : memref<16x128xf32, #tpu.memory_space<vmem>>, vector<8x16xf32>,
    %202 = vector.extract_strided_slice %167 {offsets = [0, 32], sizes = [8, 16], strides = [1, 1]} : vector<8x128xf32> to vector<8x16xf32>
    %203 = vector.extract_strided_slice %168 {offsets = [0, 32], sizes = [8, 16], strides = [1, 1]} : vector<8x128xf32> to vector<8x16xf32>
    %cst_91 = arith.constant dense<0.000000e+00> : vector<8x8xf32>
    %204 = tpu.matmul %202, %203, %cst_91 {dimension_numbers = #tpu.dot_dimension_numbers<[1], [1], [0], [0], [0, 0, 1, 0], [], []>} : vector<8x16xf32>, vector<8x16xf32>, vector<8x8xf32> -> vector<8x8xf32>
    %cst_92 = arith.constant dense<0xFF800000> : vector<8xf32>
    %205 = vector.multi_reduction <maximumf>, %204, %cst_92 [1] : vector<8x8xf32> to vector<8xf32>
    %206 = vector.shape_cast %205 : vector<8xf32> to vector<8x1xf32>
    %207 = vector.broadcast %206 : vector<8x1xf32> to vector<8x8xf32>
    %208 = arith.subf %204, %207 : vector<8x8xf32>
    %209 = math.exp %208 : vector<8x8xf32>
    %cst_93 = arith.constant dense<0.000000e+00> : vector<8xf32>
    %210 = vector.multi_reduction <add>, %209, %cst_93 [1] : vector<8x8xf32> to vector<8xf32>
    %211 = vector.shape_cast %210 : vector<8xf32> to vector<8x1xf32>
    %212 = tpu.reciprocal %211 {approx = true} : vector<8x1xf32> -> vector<8x1xf32>
    %213 = vector.broadcast %212 : vector<8x1xf32> to vector<8x8xf32>
    %214 = arith.mulf %209, %213 : vector<8x8xf32>
    %215 = vector.extract_strided_slice %169 {offsets = [0, 32], sizes = [8, 16], strides = [1, 1]} : vector<8x128xf32> to vector<8x16xf32>
    %cst_94 = arith.constant dense<0.000000e+00> : vector<8x16xf32>
    %216 = tpu.matmul %214, %215, %cst_94 {dimension_numbers = #tpu.dot_dimension_numbers<[1], [0], [0], [1], [0, 0, 1, 1], [], []>} : vector<8x8xf32>, vector<8x16xf32>, vector<8x16xf32> -> vector<8x16xf32>
    %c8_95 = arith.constant 8 : index
    %c32_96 = arith.constant 32 : index
    %217 = vector.load %arg19[%c8_95, %c32_96] : memref<16x128xf32, #tpu.memory_space<vmem>>, vector<8x16xf32>
    tpu.vector_store %arg19[%c8_95, %c32_96], %216 {strides = array<i32>} : memref<16x128xf32, #tpu.memory_space<vmem>>, vector<8x16xf32>,
    %218 = vector.extract_strided_slice %167 {offsets = [0, 48], sizes = [8, 16], strides = [1, 1]} : vector<8x128xf32> to vector<8x16xf32>
    %219 = vector.extract_strided_slice %168 {offsets = [0, 48], sizes = [8, 16], strides = [1, 1]} : vector<8x128xf32> to vector<8x16xf32>
    %cst_97 = arith.constant dense<0.000000e+00> : vector<8x8xf32>
    %220 = tpu.matmul %218, %219, %cst_97 {dimension_numbers = #tpu.dot_dimension_numbers<[1], [1], [0], [0], [0, 0, 1, 0], [], []>} : vector<8x16xf32>, vector<8x16xf32>, vector<8x8xf32> -> vector<8x8xf32>
    %cst_98 = arith.constant dense<0xFF800000> : vector<8xf32>
    %221 = vector.multi_reduction <maximumf>, %220, %cst_98 [1] : vector<8x8xf32> to vector<8xf32>
    %222 = vector.shape_cast %221 : vector<8xf32> to vector<8x1xf32>
    %223 = vector.broadcast %222 : vector<8x1xf32> to vector<8x8xf32>
    %224 = arith.subf %220, %223 : vector<8x8xf32>
    %225 = math.exp %224 : vector<8x8xf32>
    %cst_99 = arith.constant dense<0.000000e+00> : vector<8xf32>
    %226 = vector.multi_reduction <add>, %225, %cst_99 [1] : vector<8x8xf32> to vector<8xf32>
    %227 = vector.shape_cast %226 : vector<8xf32> to vector<8x1xf32>
    %228 = tpu.reciprocal %227 {approx = true} : vector<8x1xf32> -> vector<8x1xf32>
    %229 = vector.broadcast %228 : vector<8x1xf32> to vector<8x8xf32>
    %230 = arith.mulf %225, %229 : vector<8x8xf32>
    %231 = vector.extract_strided_slice %169 {offsets = [0, 48], sizes = [8, 16], strides = [1, 1]} : vector<8x128xf32> to vector<8x16xf32>
    %cst_100 = arith.constant dense<0.000000e+00> : vector<8x16xf32>
    %232 = tpu.matmul %230, %231, %cst_100 {dimension_numbers = #tpu.dot_dimension_numbers<[1], [0], [0], [1], [0, 0, 1, 1], [], []>} : vector<8x8xf32>, vector<8x16xf32>, vector<8x16xf32> -> vector<8x16xf32>
    %c8_101 = arith.constant 8 : index
    %c48_102 = arith.constant 48 : index
    %233 = vector.load %arg19[%c8_101, %c48_102] : memref<16x128xf32, #tpu.memory_space<vmem>>, vector<8x16xf32>
    tpu.vector_store %arg19[%c8_101, %c48_102], %232 {strides = array<i32>} : memref<16x128xf32, #tpu.memory_space<vmem>>, vector<8x16xf32>,
    %234 = vector.extract_strided_slice %167 {offsets = [0, 64], sizes = [8, 16], strides = [1, 1]} : vector<8x128xf32> to vector<8x16xf32>
    %235 = vector.extract_strided_slice %168 {offsets = [0, 64], sizes = [8, 16], strides = [1, 1]} : vector<8x128xf32> to vector<8x16xf32>
    %cst_103 = arith.constant dense<0.000000e+00> : vector<8x8xf32>
    %236 = tpu.matmul %234, %235, %cst_103 {dimension_numbers = #tpu.dot_dimension_numbers<[1], [1], [0], [0], [0, 0, 1, 0], [], []>} : vector<8x16xf32>, vector<8x16xf32>, vector<8x8xf32> -> vector<8x8xf32>
    %cst_104 = arith.constant dense<0xFF800000> : vector<8xf32>
    %237 = vector.multi_reduction <maximumf>, %236, %cst_104 [1] : vector<8x8xf32> to vector<8xf32>
    %238 = vector.shape_cast %237 : vector<8xf32> to vector<8x1xf32>
    %239 = vector.broadcast %238 : vector<8x1xf32> to vector<8x8xf32>
    %240 = arith.subf %236, %239 : vector<8x8xf32>
    %241 = math.exp %240 : vector<8x8xf32>
    %cst_105 = arith.constant dense<0.000000e+00> : vector<8xf32>
    %242 = vector.multi_reduction <add>, %241, %cst_105 [1] : vector<8x8xf32> to vector<8xf32>
    %243 = vector.shape_cast %242 : vector<8xf32> to vector<8x1xf32>
    %244 = tpu.reciprocal %243 {approx = true} : vector<8x1xf32> -> vector<8x1xf32>
    %245 = vector.broadcast %244 : vector<8x1xf32> to vector<8x8xf32>
    %246 = arith.mulf %241, %245 : vector<8x8xf32>
    %247 = vector.extract_strided_slice %169 {offsets = [0, 64], sizes = [8, 16], strides = [1, 1]} : vector<8x128xf32> to vector<8x16xf32>
    %cst_106 = arith.constant dense<0.000000e+00> : vector<8x16xf32>
    %248 = tpu.matmul %246, %247, %cst_106 {dimension_numbers = #tpu.dot_dimension_numbers<[1], [0], [0], [1], [0, 0, 1, 1], [], []>} : vector<8x8xf32>, vector<8x16xf32>, vector<8x16xf32> -> vector<8x16xf32>
    %c8_107 = arith.constant 8 : index
    %c64_108 = arith.constant 64 : index
    %249 = vector.load %arg19[%c8_107, %c64_108] : memref<16x128xf32, #tpu.memory_space<vmem>>, vector<8x16xf32>
    tpu.vector_store %arg19[%c8_107, %c64_108], %248 {strides = array<i32>} : memref<16x128xf32, #tpu.memory_space<vmem>>, vector<8x16xf32>,
    %250 = vector.extract_strided_slice %167 {offsets = [0, 80], sizes = [8, 16], strides = [1, 1]} : vector<8x128xf32> to vector<8x16xf32>
    %251 = vector.extract_strided_slice %168 {offsets = [0, 80], sizes = [8, 16], strides = [1, 1]} : vector<8x128xf32> to vector<8x16xf32>
    %cst_109 = arith.constant dense<0.000000e+00> : vector<8x8xf32>
    %252 = tpu.matmul %250, %251, %cst_109 {dimension_numbers = #tpu.dot_dimension_numbers<[1], [1], [0], [0], [0, 0, 1, 0], [], []>} : vector<8x16xf32>, vector<8x16xf32>, vector<8x8xf32> -> vector<8x8xf32>
    %cst_110 = arith.constant dense<0xFF800000> : vector<8xf32>
    %253 = vector.multi_reduction <maximumf>, %252, %cst_110 [1] : vector<8x8xf32> to vector<8xf32>
    %254 = vector.shape_cast %253 : vector<8xf32> to vector<8x1xf32>
    %255 = vector.broadcast %254 : vector<8x1xf32> to vector<8x8xf32>
    %256 = arith.subf %252, %255 : vector<8x8xf32>
    %257 = math.exp %256 : vector<8x8xf32>
    %cst_111 = arith.constant dense<0.000000e+00> : vector<8xf32>
    %258 = vector.multi_reduction <add>, %257, %cst_111 [1] : vector<8x8xf32> to vector<8xf32>
    %259 = vector.shape_cast %258 : vector<8xf32> to vector<8x1xf32>
    %260 = tpu.reciprocal %259 {approx = true} : vector<8x1xf32> -> vector<8x1xf32>
    %261 = vector.broadcast %260 : vector<8x1xf32> to vector<8x8xf32>
    %262 = arith.mulf %257, %261 : vector<8x8xf32>
    %263 = vector.extract_strided_slice %169 {offsets = [0, 80], sizes = [8, 16], strides = [1, 1]} : vector<8x128xf32> to vector<8x16xf32>
    %cst_112 = arith.constant dense<0.000000e+00> : vector<8x16xf32>
    %264 = tpu.matmul %262, %263, %cst_112 {dimension_numbers = #tpu.dot_dimension_numbers<[1], [0], [0], [1], [0, 0, 1, 1], [], []>} : vector<8x8xf32>, vector<8x16xf32>, vector<8x16xf32> -> vector<8x16xf32>
    %c8_113 = arith.constant 8 : index
    %c80_114 = arith.constant 80 : index
    %265 = vector.load %arg19[%c8_113, %c80_114] : memref<16x128xf32, #tpu.memory_space<vmem>>, vector<8x16xf32>
    tpu.vector_store %arg19[%c8_113, %c80_114], %264 {strides = array<i32>} : memref<16x128xf32, #tpu.memory_space<vmem>>, vector<8x16xf32>,
    %266 = vector.extract_strided_slice %167 {offsets = [0, 96], sizes = [8, 16], strides = [1, 1]} : vector<8x128xf32> to vector<8x16xf32>
    %267 = vector.extract_strided_slice %168 {offsets = [0, 96], sizes = [8, 16], strides = [1, 1]} : vector<8x128xf32> to vector<8x16xf32>
    %cst_115 = arith.constant dense<0.000000e+00> : vector<8x8xf32>
    %268 = tpu.matmul %266, %267, %cst_115 {dimension_numbers = #tpu.dot_dimension_numbers<[1], [1], [0], [0], [0, 0, 1, 0], [], []>} : vector<8x16xf32>, vector<8x16xf32>, vector<8x8xf32> -> vector<8x8xf32>
    %cst_116 = arith.constant dense<0xFF800000> : vector<8xf32>
    %269 = vector.multi_reduction <maximumf>, %268, %cst_116 [1] : vector<8x8xf32> to vector<8xf32>
    %270 = vector.shape_cast %269 : vector<8xf32> to vector<8x1xf32>
    %271 = vector.broadcast %270 : vector<8x1xf32> to vector<8x8xf32>
    %272 = arith.subf %268, %271 : vector<8x8xf32>
    %273 = math.exp %272 : vector<8x8xf32>
    %cst_117 = arith.constant dense<0.000000e+00> : vector<8xf32>
    %274 = vector.multi_reduction <add>, %273, %cst_117 [1] : vector<8x8xf32> to vector<8xf32>
    %275 = vector.shape_cast %274 : vector<8xf32> to vector<8x1xf32>
    %276 = tpu.reciprocal %275 {approx = true} : vector<8x1xf32> -> vector<8x1xf32>
    %277 = vector.broadcast %276 : vector<8x1xf32> to vector<8x8xf32>
    %278 = arith.mulf %273, %277 : vector<8x8xf32>
    %279 = vector.extract_strided_slice %169 {offsets = [0, 96], sizes = [8, 16], strides = [1, 1]} : vector<8x128xf32> to vector<8x16xf32>
    %cst_118 = arith.constant dense<0.000000e+00> : vector<8x16xf32>
    %280 = tpu.matmul %278, %279, %cst_118 {dimension_numbers = #tpu.dot_dimension_numbers<[1], [0], [0], [1], [0, 0, 1, 1], [], []>} : vector<8x8xf32>, vector<8x16xf32>, vector<8x16xf32> -> vector<8x16xf32>
    %c8_119 = arith.constant 8 : index
    %c96_120 = arith.constant 96 : index
    %281 = vector.load %arg19[%c8_119, %c96_120] : memref<16x128xf32, #tpu.memory_space<vmem>>, vector<8x16xf32>
    tpu.vector_store %arg19[%c8_119, %c96_120], %280 {strides = array<i32>} : memref<16x128xf32, #tpu.memory_space<vmem>>, vector<8x16xf32>,
    %282 = vector.extract_strided_slice %167 {offsets = [0, 112], sizes = [8, 16], strides = [1, 1]} : vector<8x128xf32> to vector<8x16xf32>
    %283 = vector.extract_strided_slice %168 {offsets = [0, 112], sizes = [8, 16], strides = [1, 1]} : vector<8x128xf32> to vector<8x16xf32>
    %cst_121 = arith.constant dense<0.000000e+00> : vector<8x8xf32>
    %284 = tpu.matmul %282, %283, %cst_121 {dimension_numbers = #tpu.dot_dimension_numbers<[1], [1], [0], [0], [0, 0, 1, 0], [], []>} : vector<8x16xf32>, vector<8x16xf32>, vector<8x8xf32> -> vector<8x8xf32>
    %cst_122 = arith.constant dense<0xFF800000> : vector<8xf32>
    %285 = vector.multi_reduction <maximumf>, %284, %cst_122 [1] : vector<8x8xf32> to vector<8xf32>
    %286 = vector.shape_cast %285 : vector<8xf32> to vector<8x1xf32>
    %287 = vector.broadcast %286 : vector<8x1xf32> to vector<8x8xf32>
    %288 = arith.subf %284, %287 : vector<8x8xf32>
    %289 = math.exp %288 : vector<8x8xf32>
    %cst_123 = arith.constant dense<0.000000e+00> : vector<8xf32>
    %290 = vector.multi_reduction <add>, %289, %cst_123 [1] : vector<8x8xf32> to vector<8xf32>
    %291 = vector.shape_cast %290 : vector<8xf32> to vector<8x1xf32>
    %292 = tpu.reciprocal %291 {approx = true} : vector<8x1xf32> -> vector<8x1xf32>
    %293 = vector.broadcast %292 : vector<8x1xf32> to vector<8x8xf32>
    %294 = arith.mulf %289, %293 : vector<8x8xf32>
    %295 = vector.extract_strided_slice %169 {offsets = [0, 112], sizes = [8, 16], strides = [1, 1]} : vector<8x128xf32> to vector<8x16xf32>
    %cst_124 = arith.constant dense<0.000000e+00> : vector<8x16xf32>
    %296 = tpu.matmul %294, %295, %cst_124 {dimension_numbers = #tpu.dot_dimension_numbers<[1], [0], [0], [1], [0, 0, 1, 1], [], []>} : vector<8x8xf32>, vector<8x16xf32>, vector<8x16xf32> -> vector<8x16xf32>
    %c8_125 = arith.constant 8 : index
    %c112_126 = arith.constant 112 : index
    %297 = vector.load %arg19[%c8_125, %c112_126] : memref<16x128xf32, #tpu.memory_space<vmem>>, vector<8x16xf32>
    tpu.vector_store %arg19[%c8_125, %c112_126], %296 {strides = array<i32>} : memref<16x128xf32, #tpu.memory_space<vmem>>, vector<8x16xf32>,
    %c0_127 = arith.constant 0 : index
    %c0_128 = arith.constant 0 : index
    %298 = vector.load %arg19[%c0_127, %c0_128] : memref<16x128xf32, #tpu.memory_space<vmem>>, vector<16x128xf32>
    %cst_129 = arith.constant dense<0.000000e+00> : vector<16x128xf32>
    %299 = tpu.matmul %298, %9, %cst_129 {dimension_numbers = #tpu.dot_dimension_numbers<[1], [0], [0], [1], [0, 0, 1, 1], [], []>} : vector<16x128xf32>, vector<128x128xf32>, vector<16x128xf32> -> vector<16x128xf32>
    %300 = vector.broadcast %11 : vector<1x128xf32> to vector<16x128xf32>
    %301 = arith.addf %299, %300 : vector<16x128xf32>
    %302 = arith.addf %3, %301 : vector<16x128xf32>
    %cst_130 = arith.constant dense<0.000000e+00> : vector<16xf32>
    %303 = vector.multi_reduction <add>, %302, %cst_130 [1] : vector<16x128xf32> to vector<16xf32>
    %304 = vector.shape_cast %303 : vector<16xf32> to vector<16x1xf32>
    %cst_131 = arith.constant 1.280000e+02 : f32
    %305 = vector.broadcast %cst_131 : f32 to vector<16x1xf32>
    %306 = arith.divf %304, %305 : vector<16x1xf32>
    %307 = arith.mulf %302, %302 : vector<16x128xf32>
    %cst_132 = arith.constant dense<0.000000e+00> : vector<16xf32>
    %308 = vector.multi_reduction <add>, %307, %cst_132 [1] : vector<16x128xf32> to vector<16xf32>
    %309 = vector.shape_cast %308 : vector<16xf32> to vector<16x1xf32>
    %cst_133 = arith.constant 1.280000e+02 : f32
    %310 = vector.broadcast %cst_133 : f32 to vector<16x1xf32>
    %311 = arith.divf %309, %310 : vector<16x1xf32>
    %312 = arith.mulf %306, %306 : vector<16x1xf32>
    %313 = arith.subf %311, %312 : vector<16x1xf32>
    %314 = vector.broadcast %306 : vector<16x1xf32> to vector<16x128xf32>
    %315 = arith.subf %302, %314 : vector<16x128xf32>
    %cst_134 = arith.constant 9.99999974E-6 : f32
    %316 = vector.broadcast %cst_134 : f32 to vector<16x1xf32>
    %317 = arith.addf %313, %316 : vector<16x1xf32>
    %318 = math.rsqrt %317 : vector<16x1xf32>
    %319 = vector.broadcast %318 : vector<16x1xf32> to vector<16x128xf32>
    %320 = arith.mulf %315, %319 : vector<16x128xf32>
    %321 = vector.broadcast %13 : vector<1x128xf32> to vector<16x128xf32>
    %322 = arith.mulf %320, %321 : vector<16x128xf32>
    %323 = vector.broadcast %15 : vector<1x128xf32> to vector<16x128xf32>
    %324 = arith.addf %322, %323 : vector<16x128xf32>
    %cst_135 = arith.constant dense<0.000000e+00> : vector<16x512xf32>
    %325 = tpu.matmul %324, %17, %cst_135 {dimension_numbers = #tpu.dot_dimension_numbers<[1], [0], [0], [1], [0, 0, 1, 1], [], []>} : vector<16x128xf32>, vector<128x512xf32>, vector<16x512xf32> -> vector<16x512xf32>
    %326 = vector.broadcast %19 : vector<1x512xf32> to vector<16x512xf32>
    %327 = arith.addf %325, %326 : vector<16x512xf32>
    %cst_136 = arith.constant 5.000000e-01 : f32
    %328 = vector.broadcast %cst_136 : f32 to vector<16x512xf32>
    %329 = arith.mulf %328, %327 : vector<16x512xf32>
    %cst_137 = arith.constant 0.707106769 : f32
    %330 = vector.broadcast %cst_137 : f32 to vector<16x512xf32>
    %331 = arith.mulf %327, %330 : vector<16x512xf32>
    %332 = math.erf %331 : vector<16x512xf32>
    %cst_138 = arith.constant 1.000000e+00 : f32
    %333 = vector.broadcast %cst_138 : f32 to vector<16x512xf32>
    %334 = arith.addf %333, %332 : vector<16x512xf32>
    %335 = arith.mulf %329, %334 : vector<16x512xf32>
    %cst_139 = arith.constant dense<0.000000e+00> : vector<16x128xf32>
    %336 = tpu.matmul %335, %21, %cst_139 {dimension_numbers = #tpu.dot_dimension_numbers<[1], [0], [0], [1], [0, 0, 1, 1], [], []>} : vector<16x512xf32>, vector<512x128xf32>, vector<16x128xf32> -> vector<16x128xf32>
    %337 = vector.broadcast %23 : vector<1x128xf32> to vector<16x128xf32>
    %338 = arith.addf %336, %337 : vector<16x128xf32>
    %339 = arith.addf %324, %338 : vector<16x128xf32>
    %cst_140 = arith.constant dense<0.000000e+00> : vector<16xf32>
    %340 = vector.multi_reduction <add>, %339, %cst_140 [1] : vector<16x128xf32> to vector<16xf32>
    %341 = vector.shape_cast %340 : vector<16xf32> to vector<16x1xf32>
    %cst_141 = arith.constant 1.280000e+02 : f32
    %342 = vector.broadcast %cst_141 : f32 to vector<16x1xf32>
    %343 = arith.divf %341, %342 : vector<16x1xf32>
    %344 = arith.mulf %339, %339 : vector<16x128xf32>
    %cst_142 = arith.constant dense<0.000000e+00> : vector<16xf32>
    %345 = vector.multi_reduction <add>, %344, %cst_142 [1] : vector<16x128xf32> to vector<16xf32>
    %346 = vector.shape_cast %345 : vector<16xf32> to vector<16x1xf32>
    %cst_143 = arith.constant 1.280000e+02 : f32
    %347 = vector.broadcast %cst_143 : f32 to vector<16x1xf32>
    %348 = arith.divf %346, %347 : vector<16x1xf32>
    %349 = arith.mulf %343, %343 : vector<16x1xf32>
    %350 = arith.subf %348, %349 : vector<16x1xf32>
    %351 = vector.broadcast %343 : vector<16x1xf32> to vector<16x128xf32>
    %352 = arith.subf %339, %351 : vector<16x128xf32>
    %cst_144 = arith.constant 9.99999974E-6 : f32
    %353 = vector.broadcast %cst_144 : f32 to vector<16x1xf32>
    %354 = arith.addf %350, %353 : vector<16x1xf32>
    %355 = math.rsqrt %354 : vector<16x1xf32>
    %356 = vector.broadcast %355 : vector<16x1xf32> to vector<16x128xf32>
    %357 = arith.mulf %352, %356 : vector<16x128xf32>
    %358 = vector.broadcast %25 : vector<1x128xf32> to vector<16x128xf32>
    %359 = arith.mulf %357, %358 : vector<16x128xf32>
    %360 = vector.broadcast %27 : vector<1x128xf32> to vector<16x128xf32>
    %361 = arith.addf %359, %360 : vector<16x128xf32>
    %c0_145 = arith.constant 0 : index
    %c0_146 = arith.constant 0 : index
    %362 = vector.load %arg18[%c0_145, %c0_146] : memref<16x128xf32, #tpu.memory_space<vmem>>, vector<16x128xf32>
    tpu.vector_store %arg18[%c0_145, %c0_146], %361 {strides = array<i32>} : memref<16x128xf32, #tpu.memory_space<vmem>>, vector<16x128xf32>,
    %c2_i32 = arith.constant 2 : i32
    %363 = arith.cmpi eq, %arg0, %c2_i32 : i32
    %364 = arith.extui %363 : i1 to i32
    %c0_i32_147 = arith.constant 0 : i32
    %365 = arith.cmpi ne, %364, %c0_i32_147 : i32
    scf.if %365 {
      %366 = vector.shape_cast %361 : vector<16x128xf32> to vector<2x8x128xf32>
      %c0_148 = arith.constant 0 : index
      %c0_149 = arith.constant 0 : index
      %c0_150 = arith.constant 0 : index
      %367 = vector.load %arg17[%c0_148, %c0_149, %c0_150] : memref<2x8x128xf32, #tpu.memory_space<vmem>>, vector<2x8x128xf32>
      tpu.vector_store %arg17[%c0_148, %c0_149, %c0_150], %366 {strides = array<i32>} : memref<2x8x128xf32, #tpu.memory_space<vmem>>, vector<2x8x128xf32>,
    } else {
    }
    return
  }
  func.func @transform_0(%arg0: i32) -> (i32, i32, i32) {
    %c0_i32 = arith.constant 0 : i32
    %c0_i32_0 = arith.constant 0 : i32
    %c0_i32_1 = arith.constant 0 : i32
    %c0_i32_2 = arith.constant 0 : i32
    return %c0_i32, %c0_i32_0, %c0_i32_1 : i32, i32, i32
  }
  func.func @transform_1(%arg0: i32) -> (i32, i32) {
    %c0_i32 = arith.constant 0 : i32
    %c0_i32_0 = arith.constant 0 : i32
    %c0_i32_1 = arith.constant 0 : i32
    return %c0_i32, %c0_i32_0 : i32, i32
  }
  func.func @transform_2(%arg0: i32) -> (i32, i32) {
    %c0_i32 = arith.constant 0 : i32
    %c0_i32_0 = arith.constant 0 : i32
    %c0_i32_1 = arith.constant 0 : i32
    return %c0_i32, %c0_i32_0 : i32, i32
  }
  func.func @transform_3(%arg0: i32) -> (i32, i32) {
    %c0_i32 = arith.constant 0 : i32
    %c0_i32_0 = arith.constant 0 : i32
    %c0_i32_1 = arith.constant 0 : i32
    return %c0_i32, %c0_i32_0 : i32, i32
  }
  func.func @transform_4(%arg0: i32) -> (i32, i32, i32) {
    %c0_i32 = arith.constant 0 : i32
    %c0_i32_0 = arith.constant 0 : i32
    %c0_i32_1 = arith.constant 0 : i32
    return %arg0, %c0_i32, %c0_i32_0 : i32, i32, i32
  }
  func.func @transform_5(%arg0: i32) -> (i32, i32, i32) {
    %c0_i32 = arith.constant 0 : i32
    %c0_i32_0 = arith.constant 0 : i32
    %c0_i32_1 = arith.constant 0 : i32
    return %arg0, %c0_i32, %c0_i32_0 : i32, i32, i32
  }
  func.func @transform_6(%arg0: i32) -> (i32, i32, i32) {
    %c0_i32 = arith.constant 0 : i32
    %c0_i32_0 = arith.constant 0 : i32
    %c0_i32_1 = arith.constant 0 : i32
    return %arg0, %c0_i32, %c0_i32_0 : i32, i32, i32
  }
  func.func @transform_7(%arg0: i32) -> (i32, i32, i32) {
    %c0_i32 = arith.constant 0 : i32
    %c0_i32_0 = arith.constant 0 : i32
    %c0_i32_1 = arith.constant 0 : i32
    return %arg0, %c0_i32, %c0_i32_0 : i32, i32, i32
  }
  func.func @transform_8(%arg0: i32) -> (i32, i32, i32) {
    %c0_i32 = arith.constant 0 : i32
    %c0_i32_0 = arith.constant 0 : i32
    %c0_i32_1 = arith.constant 0 : i32
    return %arg0, %c0_i32, %c0_i32_0 : i32, i32, i32
  }
  func.func @transform_9(%arg0: i32) -> (i32, i32, i32) {
    %c0_i32 = arith.constant 0 : i32
    %c0_i32_0 = arith.constant 0 : i32
    %c0_i32_1 = arith.constant 0 : i32
    return %arg0, %c0_i32, %c0_i32_0 : i32, i32, i32
  }
  func.func @transform_10(%arg0: i32) -> (i32, i32, i32) {
    %c0_i32 = arith.constant 0 : i32
    %c0_i32_0 = arith.constant 0 : i32
    %c0_i32_1 = arith.constant 0 : i32
    return %arg0, %c0_i32, %c0_i32_0 : i32, i32, i32
  }
  func.func @transform_11(%arg0: i32) -> (i32, i32, i32) {
    %c0_i32 = arith.constant 0 : i32
    %c0_i32_0 = arith.constant 0 : i32
    %c0_i32_1 = arith.constant 0 : i32
    return %arg0, %c0_i32, %c0_i32_0 : i32, i32, i32
  }
  func.func @transform_12(%arg0: i32) -> (i32, i32, i32) {
    %c0_i32 = arith.constant 0 : i32
    %c0_i32_0 = arith.constant 0 : i32
    %c0_i32_1 = arith.constant 0 : i32
    return %arg0, %c0_i32, %c0_i32_0 : i32, i32, i32
  }
  func.func @transform_13(%arg0: i32) -> (i32, i32, i32) {
    %c0_i32 = arith.constant 0 : i32
    %c0_i32_0 = arith.constant 0 : i32
    %c0_i32_1 = arith.constant 0 : i32
    return %arg0, %c0_i32, %c0_i32_0 : i32, i32, i32
  }
  func.func @transform_14(%arg0: i32) -> (i32, i32, i32) {
    %c0_i32 = arith.constant 0 : i32
    %c0_i32_0 = arith.constant 0 : i32
    %c0_i32_1 = arith.constant 0 : i32
    return %arg0, %c0_i32, %c0_i32_0 : i32, i32, i32
  }
  func.func @transform_15(%arg0: i32) -> (i32, i32, i32) {
    %c0_i32 = arith.constant 0 : i32
    %c0_i32_0 = arith.constant 0 : i32
    %c0_i32_1 = arith.constant 0 : i32
    return %arg0, %c0_i32, %c0_i32_0 : i32, i32, i32
  }
  func.func @transform_16(%arg0: i32) -> (i32, i32, i32) {
    %c0_i32 = arith.constant 0 : i32
    %c0_i32_0 = arith.constant 0 : i32
    %c0_i32_1 = arith.constant 0 : i32
    %c0_i32_2 = arith.constant 0 : i32
    return %c0_i32, %c0_i32_0, %c0_i32_1 : i32, i32, i32
  }
}

</mosaic_0001>

<bundles_post_ra>
// kernel: tpu_custom_call.1
= control target key start
LH: loop header
LB: loop body
LE: loop exit
PB: predicated region body
PF: predicated region fallthrough
CT: control target
= control target key end

     0   :  { %s5354_s0 = inlined_call_operand.hbm [shape: f32[2,8,128], index: 0, kind: input, shape index: {}]   ;;  %s5355_s1 = inlined_call_operand.hbm [shape: f32[8,128], index: 1, kind: input, shape index: {}]   ;;  %s5356_s2 = inlined_call_operand.hbm [shape: f32[2,128], index: 2, kind: input, shape index: {}]   ;;  %s5357_s3 = inlined_call_operand.hbm [shape: f32[2,128], index: 3, kind: input, shape index: {}]   ;;  %s5358_s4 = inlined_call_operand.hbm [shape: f32[3,128,384], index: 4, kind: input, shape index: {}]   ;;  %s5359_s5 = inlined_call_operand.hbm [shape: f32[3,1,384], index: 5, kind: input, shape index: {}]   ;;  %s5360_s6 = inlined_call_operand.hbm [shape: f32[3,128,128], index: 6, kind: input, shape index: {}]   ;;  %s5361_s7 = inlined_call_operand.vmem [shape: f32[3,1,128], index: 7, kind: input, shape index: {}]   ;;  %s5362_s8 = inlined_call_operand.vmem [shape: f32[3,1,128], index: 8, kind: input, shape index: {}]   ;;  %s5363_s9 = inlined_call_operand.hbm [shape: f32[3,1,128], index: 9, kind: input, shape index: {}]   ;;  %s5364_s10 = inlined_call_operand.hbm [shape: f32[3,128,512], index: 10, kind: input, shape index: {}]   ;;  %s5365_s11 = inlined_call_operand.hbm [shape: f32[3,1,512], index: 11, kind: input, shape index: {}]   ;;  %s5366_s12 = inlined_call_operand.hbm [shape: f32[3,512,128], index: 12, kind: input, shape index: {}]   ;;  %s5367_s13 = inlined_call_operand.vmem [shape: f32[3,1,128], index: 13, kind: input, shape index: {}]   ;;  %s5368_s14 = inlined_call_operand.vmem [shape: f32[3,1,128], index: 14, kind: input, shape index: {}]   ;;  %s5369_s15 = inlined_call_operand.hbm [shape: f32[3,1,128], index: 15, kind: input, shape index: {}]   ;;  %s5370_s16 = inlined_call_operand.hbm [shape: f32[2,8,128], index: 16, kind: output, shape index: {}]  }
   0x1   :  { %5386 = sst [smem:[#allocation33_spill]] %s5354_s0 }
   0x2   :  { %5387 = sst [smem:[#allocation34_spill]] %s5355_s1 }
   0x3   :  { %5388 = sst [smem:[#allocation35_spill]] %s5356_s2 }
   0x4   :  { %5389 = sst [smem:[#allocation36_spill]] %s5357_s3 }
   0x5   :  { %5390 = sst [smem:[#allocation37_spill]] %s5358_s4 }
   0x6   :  { %5391 = sst [smem:[#allocation38_spill]] %s5359_s5 }
   0x7   :  { %5392 = sst [smem:[#allocation39_spill]] %s5360_s6 }
   0x8   :  { %5393 = sst [smem:[#allocation40_spill]] %s5361_s7 }
   0x9   :  { %5394 = sst [smem:[#allocation41_spill]] %s5362_s8 }
   0xa   :  { %5395 = sst [smem:[#allocation42_spill]] %s5367_s13 }
   0xb   :  { %5396 = sst [smem:[#allocation43_spill]] %s5368_s14 }
   0xc   :  { %5397 = sst [smem:[#allocation44_spill]] %s5369_s15 }
   0xd   :  { %5398 = sst [smem:[#allocation45_spill]] %s5370_s16 }
   0xe   :  { %21 = vsyncpa [#allocation5], 0 }
   0xf   :  { %22 = vsyncpa [#allocation8], 0 }
  0x10   :  { %23 = vsyncpa [#allocation11], 0 }
  0x11   :  { %24 = vsyncpa [#allocation6], 0  ;;  %s4174_s21 = smov 0   ;;  %s4176_s22 = smov 0  }
  0x12   :  { %s4178_s23 = smov 0   ;;  %s4180_s24 = smov 0  }
  0x13 LB: > { %5399 = sst [smem:[#allocation26_spill]] %s4058_s22  ;;  %s4193_s25 = sadd.s32 4294967295, %s4066_s24   ;;  %s4066_s24 = sphi %s4180_s24, %s5440_s24   ;;  %s4062_s23 = sphi %s4178_s23, %s5443_s23   ;;  %s4058_s22 = sphi %s4176_s22, %s5442_s22   ;;  %s4054_s21 = sphi %s4174_s21, %s5441_s21  }
  0x14   : > { %5400 = sst [smem:[#allocation27_spill]] %s4062_s23  ;;  %s4196_s26 = sadd.s32 1, %s4066_s24  }
  0x15   : > { %5401 = sst [smem:[#allocation28_spill]] %s4193_s25  ;;  %s118_s27 = ssub.s32 %s4066_s24, %s4196_s26 }
  0x16   : > { %5402 = sst [smem:[#allocation29_spill]] %s4196_s26  ;;  %s121_s28 = sadd.s32 1, %s4062_s23 }
  0x17   : > { %p119_p0 = scmp.eq.s32.totalorder %s118_s27, 0  ;;  %p128_p1 = scmp.ne.s32.totalorder %s4062_s23, %s4058_s22 }
  0x18   : > { %p129_p2 = scmp.eq.s32.totalorder %s4066_s24, 0  ;;  %p134_p3 = scmp.ne.s32.totalorder %s4058_s22, %s4054_s21 }
  0x19   : > { %s4206_s29 = scalar_select %p119_p0, %s4062_s23, %s121_s28  }
  0x1a   : > { %p4208_p4 = por %p129_p2, %p128_p1  ;;  %p135_p5 = scmp.eq.s32.totalorder %s4193_s25, 0 }
  0x1b   : > { %5403 = sst [smem:[#allocation30_spill]] %s4206_s29  ;;  %p3290_p6 = scmp.ge.s32.totalorder %s4066_s24, 1 }
  0x1c   : > { %p452_p7 = scmp.lt.s32.totalorder %s4066_s24, 4  ;;  %p4217_p8 = por %p135_p5, %p134_p3 }
  0x1d   : > { %s5409_s20 = sld [smem:[#allocation33_spill]]  ;;  %s4068_s27 = smov [#allocation4]  }
  0x1e   : > { %s5405_s0 = scalar_select %p4217_p8, 1, 0 }
  0x1f   : > { %p4222_p10 = pnand %p3290_p6, %p452_p7  ;;  %s465_s28 = sshll.u32 %s4068_s27, 4  ;;  %s466_s28 = int_to_ptr.vmem [resolvable:$true] %s465_s28 }
  0x20   : > { %5406 = sst [smem:[#allocation31_spill]] %s5405_s0  ;;  %p3466_p13 = scmp.lt.s32.totalorder %s4066_s24, 3 }
  0x21   : > { %s5407_s17 = scalar_select %p4222_p10, 1, 0 }
  0x22   : > { %p3424_p11 = pneg %p4222_p10  ;;  %s515_s26 = sand.u32 1, %s4066_s24  }
  0x23   : > { %5408 = sst [smem:[#allocation32_spill]] %s5407_s17  ;;  %s463_s21 = sshll.u32 %s5409_s20, 4  ;;  %s464_s21 = int_to_ptr.hbm [resolvable:$true] %s463_s21 }
  0x24   : > { %p4233_p12 = pnand %p3424_p11, %p135_p5  ;;  %s5378_s16 = smov 128  }
  0x25   : > { %s5380_s14 = smov 8   ;;  %p4246_p0 = pnand %p3466_p13, %p4208_p4 }
  0x26   : > { %3427 = dma.hbm_to_vmem [thread:$0]  (!%p4233_p12), %s464_s21, 256, %s466_s28, [#allocation5], %s5378_s16, %s5378_s16, %s5380_s14  }
  0x27   : > { %s4251_s19 = sand.u32 1, %s4062_s23   ;;  %s3383_s20 = smul.u32 384, %s4066_s24 }
  0x28   : > { %s3382_s27 = smul.u32 384, %s4251_s19  ;;  %s5412_s4 = sld [smem:[#allocation37_spill]] }
  0x29   : > { %s4258_s30 = scalar_lea.sflag [#allocation5], %s515_s26  ;;  %p4262_p2 = pneg %p4246_p0 }
  0x2a   : > { %s519_s22 = scalar_lea.vmem [#allocation12], %s3382_s27 }
  0x2b   : > { %s527_s25 = sshll.u32 %s519_s22, 4  ;;  %s528_s25 = int_to_ptr.vmem [resolvable:$true] %s527_s25 }
  0x2e   : > { %s524_s7 = scalar_lea.hbm %s5412_s4, %s3383_s20  ;;  %s3665_s13 = scalar_lea.hbm %s5412_s4, 1152 }
  0x2f   : > { %s525_s0 = sshll.u32 %s524_s7, 4  ;;  %s526_s0 = int_to_ptr.hbm [resolvable:$true] %s525_s0 }
  0x30   : > { %s3658_s21 = sshra.s32 %s526_s0, 4  ;;  %s3659_s21 = int_to_ptr.hbm [resolvable:$true] %s3658_s21 }
  0x31   : > { %s3660_s28 = scalar_lea.hbm %s3659_s21, 384  ;;  %p3666_p6 = scmp.lt.s32.totalorder %s3659_s21, %s5412_s4 }
  0x32   : > { %p3661_p1 = scmp.ne.s32.totalorder %s3659_s21, %s3660_s28  ;;  %p3667_p7 = scmp.lt.s32.totalorder %s3665_s13, %s3660_s28 }
  0x34   : > { %p3663_p3 = pnand %p4262_p2, %p3661_p1  ;;  %p3668_p11 = por %p3667_p7, %p3666_p6 }
  0x36   : > { %p3664_p4 = pneg %p3663_p3 }
  0x38   : > { %p3669_p13 = pnand %p3668_p11, %p3664_p4 }
  0x3a   : > { %3672 = shalt.err (!%p3669_p13)
}
  0x3b   : > { %s4071_s20 = smov 384   ;;  %s4072_s27 = smov 24  }
  0x3c   : > { %3440 = dma.hbm_to_vmem [thread:$0]  (!%p4246_p0), %s526_s0, 6144, %s528_s25, %s4258_s30, %s4071_s20, %s4071_s20, %s4072_s27  }
  0x3d   : > { %s3384_s7 = smul.u32 3, %s4251_s19  ;;  %s3297_s8 = sshll.u32 %s4251_s19, 7 }
  0x3e   : > { %s3385_s14 = smul.u32 3, %s4066_s24  ;;  %s3379_s22 = sshll.u32 %s4066_s24, 7 }
  0x3f   : > { %s5414_s5 = sld [smem:[#allocation38_spill]]  ;;  %s541_s26 = scalar_lea.vmem [#allocation13], %s3384_s7 }
  0x40   : > { %s549_s4 = sshll.u32 %s541_s26, 4  ;;  %s5415_s6 = sld [smem:[#allocation39_spill]]  ;;  %s550_s4 = int_to_ptr.vmem [resolvable:$true] %s549_s4 }
  0x45   : > { %s545_s13 = scalar_lea.hbm %s5414_s5, %s3385_s14  ;;  %s3695_s14 = scalar_lea.hbm %s5414_s5, 9 }
  0x46   : > { %s547_s23 = sshll.u32 %s545_s13, 4  ;;  %s565_s3 = scalar_lea.hbm %s5415_s6, %s3379_s22  ;;  %s548_s23 = int_to_ptr.hbm [resolvable:$true] %s547_s23 }
  0x47   : > { %s3688_s2 = sshra.s32 %s548_s23, 4  ;;  %s3689_s2 = int_to_ptr.hbm [resolvable:$true] %s3688_s2 }
  0x48   : > { %s3690_s25 = scalar_lea.hbm %s3689_s2, 3  ;;  %p3696_p6 = scmp.lt.s32.totalorder %s3689_s2, %s5414_s5 }
  0x49   : > { %p3691_p1 = scmp.ne.s32.totalorder %s3689_s2, %s3690_s25  ;;  %p3697_p7 = scmp.lt.s32.totalorder %s3695_s14, %s3690_s25 }
  0x4b   : > { %p3693_p3 = pnand %p3691_p1, %p4262_p2  ;;  %p3698_p11 = por %p3697_p7, %p3696_p6 }
  0x4d   : > { %p3694_p4 = pneg %p3693_p3 }
  0x4f   : > { %p3699_p13 = pnand %p3698_p11, %p3694_p4 }
  0x51   : > { %3702 = shalt.err (!%p3699_p13)
}
  0x52   : > { %3443 = dma.hbm_to_vmem [thread:$0]  (!%p4246_p0), %s548_s23, 48, %s550_s4, %s4258_s30  }
  0x53   : > { %s566_s15 = sshll.u32 %s565_s3, 4  ;;  %s560_s17 = scalar_lea.vmem [#allocation14], %s3297_s8  ;;  %s567_s15 = int_to_ptr.hbm [resolvable:$true] %s566_s15 }
  0x54   : > { %s568_s22 = sshll.u32 %s560_s17, 4  ;;  %s3718_s21 = sshra.s32 %s567_s15, 4  ;;  %s569_s22 = int_to_ptr.vmem [resolvable:$true] %s568_s22  ;;  %s3719_s21 = int_to_ptr.hbm [resolvable:$true] %s3718_s21 }
  0x55   : > { %s3720_s28 = scalar_lea.hbm %s3719_s21, 128  ;;  %s3725_s26 = scalar_lea.hbm %s5415_s6, 384 }
  0x56   : > { %p3721_p1 = scmp.ne.s32.totalorder %s3719_s21, %s3720_s28  ;;  %p3726_p4 = scmp.lt.s32.totalorder %s3719_s21, %s5415_s6 }
  0x57   : > { %p3727_p6 = scmp.lt.s32.totalorder %s3725_s26, %s3720_s28 }
  0x58   : > { %p3723_p3 = pnand %p3721_p1, %p4262_p2 }
  0x59   : > { %p3728_p7 = por %p3727_p6, %p3726_p4 }
  0x5a   : > { %p3724_p9 = pneg %p3723_p3 }
  0x5c   : > { %p3729_p11 = pnand %p3728_p7, %p3724_p9 }
  0x5e   : > { %3732 = shalt.err (!%p3729_p11)
}
  0x5f   : > { %s5416_s3 = smov 8   ;;  %s5417_s4 = smov 128  }
  0x60   : > { %3446 = dma.hbm_to_vmem [thread:$0]  (!%p4246_p0), %s567_s15, 2048, %s569_s22, %s4258_s30, %s5417_s4, %s5417_s4, %s5416_s3  }
  0x61   : > { %s596_s20 = scalar_lea.hbm %s5363_s9, %s4066_s24  ;;  %s593_s27 = scalar_lea.vmem [#allocation15], %s4251_s19 }
  0x62   : > { %s598_s14 = sshll.u32 %s596_s20, 4  ;;  %s600_s7 = sshll.u32 %s593_s27, 4  ;;  %s599_s14 = int_to_ptr.hbm [resolvable:$true] %s598_s14  ;;  %s601_s7 = int_to_ptr.vmem [resolvable:$true] %s600_s7 }
  0x63   : > { %s3748_s17 = sshra.s32 %s599_s14, 4  ;;  %s3755_s15 = scalar_lea.hbm %s5363_s9, 3  ;;  %s3749_s17 = int_to_ptr.hbm [resolvable:$true] %s3748_s17 }
  0x64   : > { %s3750_s21 = scalar_lea.hbm %s3749_s17, 1  ;;  %p3756_p3 = scmp.lt.s32.totalorder %s3749_s17, %s5363_s9 }
  0x65   : > { %p3751_p9 = scmp.ne.s32.totalorder %s3749_s17, %s3750_s21  ;;  %p3757_p4 = scmp.lt.s32.totalorder %s3755_s15, %s3750_s21 }
  0x67   : > { %p3753_p13 = pnand %p3751_p9, %p4262_p2  ;;  %p3758_p6 = por %p3757_p4, %p3756_p3 }
  0x69   : > { %p3754_p1 = pneg %p3753_p13 }
  0x6b   : > { %p3759_p7 = pnand %p3758_p6, %p3754_p1 }
  0x6d   : > { %3762 = shalt.err (!%p3759_p7)
}
  0x6e   : > { %3449 = dma.hbm_to_vmem [thread:$0]  (!%p4246_p0), %s599_s14, 16, %s601_s7, %s4258_s30  }
  0x6f   : > { %s5385_s26 = sshll.u32 %s4251_s19, 9  ;;  %s3380_s25 = sshll.u32 %s4066_s24, 9 }
  0x70   : > { %s616_s8 = scalar_lea.hbm %s5364_s10, %s3380_s25  ;;  %s611_s27 = scalar_lea.vmem [#allocation16], %s5385_s26 }
  0x71   : > { %s617_s20 = sshll.u32 %s616_s8, 4  ;;  %s619_s17 = sshll.u32 %s611_s27, 4  ;;  %s618_s20 = int_to_ptr.hbm [resolvable:$true] %s617_s20  ;;  %s620_s17 = int_to_ptr.vmem [resolvable:$true] %s619_s17 }
  0x72   : > { %s3778_s21 = sshra.s32 %s618_s20, 4  ;;  %s3785_s2 = scalar_lea.hbm %s5364_s10, 1536  ;;  %s3779_s21 = int_to_ptr.hbm [resolvable:$true] %s3778_s21 }
  0x73   : > { %s3780_s28 = scalar_lea.hbm %s3779_s21, 512  ;;  %p3786_p1 = scmp.lt.s32.totalorder %s3779_s21, %s5364_s10 }
  0x74   : > { %p3781_p11 = scmp.ne.s32.totalorder %s3779_s21, %s3780_s28  ;;  %p3787_p3 = scmp.lt.s32.totalorder %s3785_s2, %s3780_s28 }
  0x76   : > { %p3783_p9 = pnand %p3781_p11, %p4262_p2  ;;  %p3788_p4 = por %p3787_p3, %p3786_p1 }
  0x78   : > { %p3784_p13 = pneg %p3783_p9 }
  0x7a   : > { %p3789_p6 = pnand %p3788_p4, %p3784_p13 }
  0x7c   : > { %3792 = shalt.err (!%p3789_p6)
}
  0x7d   : > { %s4073_s13 = smov 512   ;;  %s4074_s0 = smov 32  }
  0x7e   : > { %3452 = dma.hbm_to_vmem [thread:$0]  (!%p4246_p0), %s618_s20, 8192, %s620_s17, %s4258_s30, %s4073_s13, %s4073_s13, %s4074_s0  }
  0x7f   : > { %s3303_s23 = sshll.u32 %s4251_s19, 2  ;;  %s3304_s8 = sshll.u32 %s4066_s24, 2 }
  0x80   : > { %s637_s7 = scalar_lea.hbm %s5365_s11, %s3304_s8  ;;  %s633_s28 = scalar_lea.vmem [#allocation17], %s3303_s23 }
  0x81   : > { %s639_s21 = sshll.u32 %s637_s7, 4  ;;  %s641_s2 = sshll.u32 %s633_s28, 4  ;;  %s640_s21 = int_to_ptr.hbm [resolvable:$true] %s639_s21  ;;  %s642_s2 = int_to_ptr.vmem [resolvable:$true] %s641_s2 }
  0x82   : > { %s3808_s15 = sshra.s32 %s640_s21, 4  ;;  %s3815_s17 = scalar_lea.hbm %s5365_s11, 12  ;;  %s3809_s15 = int_to_ptr.hbm [resolvable:$true] %s3808_s15 }
  0x83   : > { %s3810_s22 = scalar_lea.hbm %s3809_s15, 4  ;;  %p3816_p13 = scmp.lt.s32.totalorder %s3809_s15, %s5365_s11 }
  0x84   : > { %p3811_p7 = scmp.ne.s32.totalorder %s3809_s15, %s3810_s22  ;;  %p3817_p1 = scmp.lt.s32.totalorder %s3815_s17, %s3810_s22 }
  0x86   : > { %p3813_p11 = pnand %p3811_p7, %p4262_p2  ;;  %p3818_p3 = por %p3817_p1, %p3816_p13 }
  0x88   : > { %p3814_p9 = pneg %p3813_p11 }
  0x8a   : > { %p3819_p4 = pnand %p3818_p3, %p3814_p9 }
  0x8c   : > { %3822 = shalt.err (!%p3819_p4)
}
  0x8d   : > { %3455 = dma.hbm_to_vmem [thread:$0]  (!%p4246_p0), %s640_s21, 64, %s642_s2, %s4258_s30  }
  0x8e   : > { %s5418_s1 = sld [smem:[#allocation34_spill]]  ;;  %s4075_s27 = smov [#allocation7]  }
  0x8f   : > { %s480_s14 = sshll.u32 %s4075_s27, 4  ;;  %s657_s15 = scalar_lea.hbm %s5366_s12, %s3380_s25  ;;  %s481_s14 = int_to_ptr.vmem [resolvable:$true] %s480_s14 }
  0x90   : > { %s5419_s22 = sshll.u32 %s4251_s19, 9  ;;  %s658_s21 = sshll.u32 %s657_s15, 4  ;;  %s659_s21 = int_to_ptr.hbm [resolvable:$true] %s658_s21 }
  0x91   : > { %s652_s20 = scalar_lea.vmem [#allocation18], %s5419_s22  ;;  %s5420_s0 = sld [smem:[#allocation35_spill]] }
  0x92   : > { %s660_s17 = sshll.u32 %s652_s20, 4  ;;  %s3868_s8 = sshra.s32 %s659_s21, 4  ;;  %s661_s17 = int_to_ptr.vmem [resolvable:$true] %s660_s17  ;;  %s3869_s8 = int_to_ptr.hbm [resolvable:$true] %s3868_s8 }
  0x93   : > { %s3870_s27 = scalar_lea.hbm %s3869_s8, 512  ;;  %s3875_s25 = scalar_lea.hbm %s5366_s12, 1536 }
  0x94   : > { %s478_s26 = sshll.u32 %s5418_s1, 4  ;;  %p3871_p6 = scmp.ne.s32.totalorder %s3869_s8, %s3870_s27  ;;  %s479_s26 = int_to_ptr.hbm [resolvable:$true] %s478_s26 }
  0x95   : > { %3430 = dma.hbm_to_vmem [thread:$0]  (!%p4233_p12), %s479_s26, 128, %s481_s14, [#allocation8]  }
  0x96   : > { %p3873_p7 = pnand %p3871_p6, %p4262_p2  ;;  %p3876_p9 = scmp.lt.s32.totalorder %s3869_s8, %s5366_s12 }
  0x97   : > { %s490_s23 = sshll.u32 %s5420_s0, 4  ;;  %p3877_p13 = scmp.lt.s32.totalorder %s3875_s25, %s3870_s27  ;;  %s491_s23 = int_to_ptr.hbm [resolvable:$true] %s490_s23 }
  0x98   : > { %p3874_p11 = pneg %p3873_p7 }
  0x99   : > { %p3878_p1 = por %p3877_p13, %p3876_p9 }
  0x9b   : > { %p3879_p3 = pnand %p3878_p1, %p3874_p11 }
  0x9d   : > { %3882 = shalt.err (!%p3879_p3)
}
  0x9e   : > { %3458 = dma.hbm_to_vmem [thread:$0]  (!%p4246_p0), %s659_s21, 8192, %s661_s17, %s4258_s30, %s5417_s4, %s5417_s4, %s5416_s3  }
  0x9f   : > { %s4076_s15 = smov [#allocation9]   ;;  %s5421_s13 = sld [smem:[#allocation36_spill]] }
  0xa0   : > { %s492_s22 = sshll.u32 %s4076_s15, 4  ;;  %s4077_s8 = smov [#allocation10]   ;;  %s493_s22 = int_to_ptr.vmem [resolvable:$true] %s492_s22 }
  0xa1   : > { %3433 = dma.hbm_to_vmem [thread:$0]  (!%p4233_p12), %s491_s23, 32, %s493_s22, [#allocation8]  }
  0xa2   : > { %s504_s27 = sshll.u32 %s4077_s8, 4  ;;  %s5422_s25 = sld [smem:[#allocation44_spill]]  ;;  %s505_s27 = int_to_ptr.vmem [resolvable:$true] %s504_s27 }
  0xa3   : > { %s685_s4 = scalar_lea.vmem [#allocation19], %s4251_s19 }
  0xa4   : > { %s692_s17 = sshll.u32 %s685_s4, 4  ;;  %s693_s17 = int_to_ptr.vmem [resolvable:$true] %s692_s17 }
  0xa5   : > { %s502_s0 = sshll.u32 %s5421_s13, 4  ;;  %s503_s0 = int_to_ptr.hbm [resolvable:$true] %s502_s0 }
  0xa6   : > { %3436 = dma.hbm_to_vmem [thread:$0]  (!%p4233_p12), %s503_s0, 32, %s505_s27, [#allocation11]  }
  0xa8   : > { %s688_s7 = scalar_lea.hbm %s5422_s25, %s4066_s24  ;;  %s3965_s22 = scalar_lea.hbm %s5422_s25, 3 }
  0xa9   : > { %s690_s3 = sshll.u32 %s688_s7, 4  ;;  %s691_s3 = int_to_ptr.hbm [resolvable:$true] %s690_s3 }
  0xaa   : > { %s3958_s21 = sshra.s32 %s691_s3, 4  ;;  %s3959_s21 = int_to_ptr.hbm [resolvable:$true] %s3958_s21 }
  0xab   : > { %s3960_s28 = scalar_lea.hbm %s3959_s21, 1  ;;  %p3966_p11 = scmp.lt.s32.totalorder %s3959_s21, %s5422_s25 }
  0xac   : > { %p3961_p4 = scmp.ne.s32.totalorder %s3959_s21, %s3960_s28  ;;  %p3967_p12 = scmp.lt.s32.totalorder %s3965_s22, %s3960_s28 }
  0xae   : > { %p3963_p6 = pnand %p3961_p4, %p4262_p2  ;;  %p3968_p9 = por %p3967_p12, %p3966_p11 }
  0xb0   : > { %p3964_p7 = pneg %p3963_p6 }
  0xb2   : > { %p3969_p13 = pnand %p3968_p9, %p3964_p7 }
  0xb4   : > { %3972 = shalt.err (!%p3969_p13)
}
  0xb5   : > { %3461 = dma.hbm_to_vmem [thread:$0]  (!%p4246_p0), %s691_s3, 16, %s693_s17, %s4258_s30  }
  0xb6   : > { %701 = sbr.rel (%p4222_p10) target bundleno = 3185 (0xc71), region = 84  ;;  %s5424_s16 = sld [smem:[#allocation28_spill]] (!%p4222_p10) }
  0xbb   : > { %4033 = dma.done.wait (%p135_p5), [#allocation5], 256  }
  0xbc   : > { %4035 = vsyncadd (%p135_p5), [#allocation5], 4294967040 }
  0xbd   : > { %4037 = dma.done.wait (%p135_p5), [#allocation8], 160  }
  0xbe   : > { %4039 = vsyncadd (%p135_p5), [#allocation8], 4294967136 }
  0xbf   : > { %4041 = dma.done.wait (%p135_p5), [#allocation11], 32  }
  0xc0   : > { %4043 = vsyncadd (%p135_p5), [#allocation11], 4294967264  ;;  %s5425_s18 = sld [smem:[#allocation26_spill]]  ;;  %s723_s30 = sand.u32 1, %s5424_s16  }
  0xc1   : > { %s724_s0 = scalar_lea.sflag [#allocation5], %s723_s30 }
  0xc6   : > { %s4432_s2 = sand.u32 1, %s5425_s18  }
  0xc7   : > { %s3386_s13 = smul.u32 384, %s4432_s2 }
  0xc9   : > { %s4435_s8 = scalar_lea.vmem [#allocation12], %s3386_s13 }
  0xca   : > { %4045 = dma.done.wait (%p4217_p8), %s724_s0, 24720  }
  0xcb   : > { %4047 = vsyncadd (%p4217_p8), %s724_s0, 4294942576  ;;  %s3387_s27 = smul.u32 3, %s4432_s2  ;;  %s3313_s26 = sshll.u32 %s4432_s2, 7 }
  0xcc   : > { %s3314_s14 = sshll.u32 %s4432_s2, 9  ;;  %s3315_s7 = sshll.u32 %s4432_s2, 2 }
  0xcd   : > { %p885_p5 = scmp.lt.s32.totalorder %s5424_s16, 2  ;;  %s5428_s22 = sld [smem:[#allocation41_spill]] }
  0xce   : > { %s5429_s18 = sld [smem:[#allocation42_spill]]  ;;  %s4465_s5 = scalar_lea.vmem [#allocation13], %s3387_s27 }
  0xcf   : > { %s4447_s3 = scalar_select %p885_p5, %s5424_s16, 2 }
  0xd0   : > { %s5430_s0 = sld [smem:[#allocation43_spill]]  ;;  %s4467_s6 = scalar_lea.vmem [#allocation14], %s3313_s26 }
  0xd1   : > { %s756_s4 = scalar_lea.vmem [#allocation15], %s4432_s2  ;;  %s4470_s17 = scalar_lea.vmem [#allocation16], %s3314_s14 }
  0xd2   : > { %s4472_s21 = scalar_lea.vmem [#allocation17], %s3315_s7  ;;  %s4474_s28 = scalar_lea.vmem [#allocation18], %s3314_s14 }
  0xd3   : > { %s890_s24 = scalar_lea.vmem %s5428_s22, %s4447_s3  ;;  %s795_s23 = scalar_lea.vmem [#allocation19], %s4432_s2 }
  0xd4   : > { %s893_s19 = scalar_lea.vmem %s5429_s18, %s4447_s3  ;;  %p5431_p8 = scmp.ne.s32.totalorder %s5424_s16, 0 }
  0xd6   : > { %s896_s1 = scalar_lea.vmem %s5430_s0, %s4447_s3  ;;  %900 = sbr.rel (%p5431_p8) target bundleno = 229 (0xe5), region = 136 }
  0xdb   : > { %v901_v0 = vld [vmem:[#allocation4] sm:$0xff]  ;;  %v903_v1 = vld [vmem:[#allocation7] sm:$0xff]  ;;  %v906_v2 = vld [vmem:[#allocation9] sm:$0x3] }
  0xdc   : > { %v904_v3 = vadd.f32 %v903_v1, %v901_v0  ;;  %v909_v4 = vperm.slane %v906_v2, 0  ;;  %v915_v5 = vld [vmem:[#allocation10] sm:$0x3]  ;;  %v902_v6 = vld [vmem:[#allocation4 + $0x8] sm:$0xff]  ;;  %v908_v7 = vrot.slane %v906_v2, 1 }
  0xdd   : > { %v918_v8 = vperm.slane %v915_v5, 0  ;;  %v905_v9 = vadd.f32 %v903_v1, %v902_v6  ;;  %v917_v10 = vrot.slane %v915_v5, 1 }
  0xde   : > { %v913_v11 = vadd.f32 %v909_v4, %v904_v3  ;;  %v910_v12 = vperm.slane %v908_v7, 0 }
  0xdf   : > { %v919_v13 = vperm.slane %v917_v10, 0 }
  0xe0   : > { %v922_v14 = vadd.f32 %v918_v8, %v913_v11  ;;  %v914_v15 = vadd.f32 %v910_v12, %v905_v9 }
  0xe2   : > { %924 = vst [vmem:[#allocation2] sm:$0xff] %v922_v14  ;;  %v923_v16 = vadd.f32 %v919_v13, %v914_v15 }
  0xe4   : > { %925 = vst [vmem:[#allocation2 + $0x8] sm:$0xff] %v923_v16 }
  0xe5 PF: > { %v974_v17 = vld [vmem:[%s4435_s8 + $0x170] sm:$0xff]  ;;  %v973_v18 = vld [vmem:[%s4435_s8 + $0x168] sm:$0xff]  ;;  %v971_v19 = vld [vmem:[%s4435_s8 + $0x158] sm:$0xff]  ;;  %vm1206_vm0 = vcmask 130048   ;;  %s4078_s16 = smov 112   ;;  %vm1233_vm1 = vcmask 64512  }
  0xe6   : > { %1158 = vmatpush.msra.mxu1 %v974_v17  ;;  %1135 = vmatpush.msra.mxu0 %v973_v18  ;;  %v970_v20 = vld [vmem:[%s4435_s8 + $0x150] sm:$0xff]  ;;  %v968_v21 = vld [vmem:[%s4435_s8 + $0x140] sm:$0xff]  ;;  %v967_v22 = vld [vmem:[%s4435_s8 + $0x138] sm:$0xff]  ;;  %s4081_s27 = smov 80   ;;  %s4082_s26 = smov 64   ;;  %vm1339_vm2 = vcmask 261248  }
  0xe7   : > { %v965_v23 = vld [vmem:[%s4435_s8 + $0x128] sm:$0xff]  ;;  %v964_v24 = vld [vmem:[%s4435_s8 + $0x120] sm:$0xff]  ;;  %v962_v25 = vld [vmem:[%s4435_s8 + $0x110] sm:$0xff]  ;;  %s4083_s14 = smov 32   ;;  %s4084_s7 = smov 16   ;;  %vm1410_vm3 = vcmask 392448  }
  0xe8   : > { %1159 = vmatpush.msra.mxu1 %v971_v19  ;;  %1136 = vmatpush.msra.mxu0 %v970_v20  ;;  %v961_v26 = vld [vmem:[%s4435_s8 + $0x108] sm:$0xff]  ;;  %v959_v27 = vld [vmem:[%s4435_s8 + $0xf8] sm:$0xff]  ;;  %v958_v28 = vld [vmem:[%s4435_s8 + $0xf0] sm:$0xff]  ;;  %vm1481_vm4 = vcmask 523648   ;;  %vm1552_vm5 = vcmask 654848   ;;  %vm1623_vm6 = vcmask 786048  }
  0xe9   : > { %v956_v29 = vld [vmem:[%s4435_s8 + $0xe0] sm:$0xff]  ;;  %v955_v30 = vld [vmem:[%s4435_s8 + $0xd8] sm:$0xff]  ;;  %v953_v33 = vld [vmem:[%s4435_s8 + $0xc8] sm:$0xff]  ;;  %vm1694_vm7 = vcmask 917248   ;;  %vm1765_vm8 = vcmask 1048448   ;;  %s5432_s22 = sld [smem:[#allocation40_spill]] }
  0xea   : > { %1160 = vmatpush.msra.mxu1 %v968_v21  ;;  %1137 = vmatpush.msra.mxu0 %v967_v22  ;;  %v975_v31 = vld [vmem:[%s4435_s8 + $0x178] sm:$0xff]  ;;  %v972_v32 = vld [vmem:[%s4435_s8 + $0x160] sm:$0xff]  ;;  %v969_v35 = vld [vmem:[%s4435_s8 + $0x148] sm:$0xff] }
  0xeb   : > { %v952_v34 = vld [vmem:[%s4435_s8 + $0xc0] sm:$0xff]  ;;  %1181 = vmatpush.msra.mxu2 %v975_v31  ;;  %v950_v36 = vld [vmem:[%s4435_s8 + $0xb0] sm:$0xff]  ;;  %v949_v37 = vld [vmem:[%s4435_s8 + $0xa8] sm:$0xff] }
  0xec   : > { %1161 = vmatpush.msra.mxu1 %v965_v23  ;;  %1138 = vmatpush.msra.mxu0 %v964_v24  ;;  %v947_v38 = vld [vmem:[%s4435_s8 + $0x98] sm:$0xff]  ;;  %v946_v39 = vld [vmem:[%s4435_s8 + $0x90] sm:$0xff]  ;;  %v944_v41 = vld [vmem:[%s4435_s8 + $0x80] sm:$0xff] }
  0xed   : > { %1182 = vmatpush.msra.mxu2 %v972_v32  ;;  %v966_v40 = vld [vmem:[%s4435_s8 + $0x130] sm:$0xff]  ;;  %v943_v42 = vld [vmem:[%s4435_s8 + $0x78] sm:$0xff]  ;;  %v960_v44 = vld [vmem:[%s4435_s8 + $0x100] sm:$0xff] }
  0xee   : > { %1162 = vmatpush.msra.mxu1 %v962_v25  ;;  %1139 = vmatpush.msra.mxu0 %v961_v26  ;;  %v963_v43 = vld [vmem:[%s4435_s8 + $0x118] sm:$0xff]  ;;  %v941_v45 = vld [vmem:[%s4435_s8 + $0x68] sm:$0xff]  ;;  %v940_v46 = vld [vmem:[%s4435_s8 + $0x60] sm:$0xff] }
  0xef   : > { %1183 = vmatpush.msra.mxu2 %v969_v35  ;;  %v957_v47 = vld [vmem:[%s4435_s8 + $0xe8] sm:$0xff]  ;;  %v938_v48 = vld [vmem:[%s4435_s8 + $0x50] sm:$0xff]  ;;  %v935_v51 = vld [vmem:[%s4435_s8 + $0x38] sm:$0xff]  ;;  %s5433_s20 = scalar_lea.vmem %s5432_s22, %s4447_s3 }
  0xf0   : > { %1163 = vmatpush.msra.mxu1 %v959_v27  ;;  %1140 = vmatpush.msra.mxu0 %v958_v28  ;;  %v937_v49 = vld [vmem:[%s4435_s8 + $0x48] sm:$0xff]  ;;  %v954_v50 = vld [vmem:[%s4435_s8 + $0xd0] sm:$0xff]  ;;  %v951_v53 = vld [vmem:[%s4435_s8 + $0xb8] sm:$0xff] }
  0xf1   : > { %1184 = vmatpush.msra.mxu2 %v966_v40  ;;  %v934_v52 = vld [vmem:[%s4435_s8 + $0x30] sm:$0xff]  ;;  %v932_v54 = vld [vmem:[%s4435_s8 + $0x20] sm:$0xff]  ;;  %v931_v55 = vld [vmem:[%s4435_s8 + $0x18] sm:$0xff] }
  0xf2   : > { %1164 = vmatpush.msra.mxu1 %v956_v29  ;;  %1141 = vmatpush.msra.mxu0 %v955_v30  ;;  %v948_v56 = vld [vmem:[%s4435_s8 + $0xa0] sm:$0xff]  ;;  %v929_v57 = vld [vmem:[%s4435_s8 + $0x8] sm:$0xff]  ;;  %v942_v61 = vld [vmem:[%s4435_s8 + $0x70] sm:$0xff] }
  0xf3   : > { %1185 = vmatpush.msra.mxu2 %v963_v43  ;;  %v928_v58 = vld [vmem:[%s4435_s8] sm:$0xff]  ;;  %v945_v60 = vld [vmem:[%s4435_s8 + $0x88] sm:$0xff]  ;;  %v939_v62 = vld [vmem:[%s4435_s8 + $0x58] sm:$0xff] }
  0xf4   : > { %1165 = vmatpush.msra.mxu1 %v953_v33  ;;  %1142 = vmatpush.msra.mxu0 %v952_v34  ;;  %v926_v59 = vld [vmem:[#allocation2] sm:$0xff]  ;;  %v930_v1 = vld [vmem:[%s4435_s8 + $0x10] sm:$0xff] }
  0xf5   : > { %1186 = vmatpush.msra.mxu2 %v960_v44  ;;  %v936_v63 = vld [vmem:[%s4435_s8 + $0x40] sm:$0xff]  ;;  %v933_v0 = vld [vmem:[%s4435_s8 + $0x28] sm:$0xff]  ;;  %s4080_s8 = smov 48  }
  0xf6   : > { %1166 = vmatpush.msra.mxu1 %v950_v36  ;;  %1143 = vmatpush.msra.mxu0 %v949_v37  ;;  %v4528_v2 = vld [vmem:[%s4465_s5] sm:$0x7]  ;;  %s4079_s5 = smov 96   ;;  %v4558_v16 = vld [vmem:[#allocation2 + $0x8] sm:$0xff] }
  0xf7   : > { %1187 = vmatpush.msra.mxu2 %v957_v47  ;;  %v1130_v3 = vperm.slane %v4528_v2, 1  ;;  %v1129_v4 = vperm.slane %v4528_v2, 0  ;;  %v1131_v10 = vperm.slane %v4528_v2, 2 }
  0xf8   : > { %1167 = vmatpush.msra.mxu1 %v947_v38  ;;  %1144 = vmatpush.msra.mxu0 %v946_v39 }
  0xf9   : > { %1188 = vmatpush.msra.mxu2 %v954_v50 }
  0xfa   : > { %1168 = vmatpush.msra.mxu1 %v944_v41  ;;  %1145 = vmatpush.msra.mxu0 %v943_v42 }
  0xfb   : > { %1189 = vmatpush.msra.mxu2 %v951_v53 }
  0xfc   : > { %1169 = vmatpush.msra.mxu1 %v941_v45  ;;  %1146 = vmatpush.msra.mxu0 %v940_v46 }
  0xfd   : > { %1190 = vmatpush.msra.mxu2 %v948_v56 }
  0xfe   : > { %1170 = vmatpush.msra.mxu1 %v938_v48  ;;  %1147 = vmatpush.msra.mxu0 %v937_v49 }
  0xff   : > { %1191 = vmatpush.msra.mxu2 %v945_v60 }
 0x100   : > { %1171 = vmatpush.msra.mxu1 %v935_v51  ;;  %1148 = vmatpush.msra.mxu0 %v934_v52 }
 0x101   : > { %1192 = vmatpush.msra.mxu2 %v942_v61 }
 0x102   : > { %1172 = vmatpush.msra.mxu1 %v932_v54  ;;  %1149 = vmatpush.msra.mxu0 %v931_v55 }
 0x103   : > { %1193 = vmatpush.msra.mxu2 %v939_v62 }
 0x104   : > { %1173 = vmatpush.msra.mxu1 %v929_v57  ;;  %1150 = vmatpush.msra.mxu0 %v928_v58 }
 0x105   : > { %1174 = vmatmul.f32.vlgmr.msra.gmra.mxu1 %v926_v59  ;;  %1151 = vmatmul.f32.vlgmr.msra.gmra.mxu0 %v926_v59 }
 0x106   : > { %1194 = vmatpush.msra.mxu2 %v936_v63 }
 0x108   : > { %1195 = vmatpush.msra.mxu2 %v933_v0 }
 0x10a   : > { %1196 = vmatpush.msra.mxu2 %v930_v1 }
 0x10b   : > { %1197 = vmatmul.f32.vlgmr.msra.gmra.mxu2 %v926_v59 }
 0x10d   : > { %1177 = vmatmul.f32.gmra.mxu1 %v4558_v16  ;;  %1154 = vmatmul.f32.gmra.mxu0 %v4558_v16 }
 0x113   : > { %1200 = vmatmul.f32.gmra.mxu2 %v4558_v16 }
 0x182   : > { %v1175_v5 = vpop.f32.mrf.mxu1  ;;  %v1152_v6 = vpop.f32.mrf.mxu0 }
 0x183   : > { %v4534_v7 = vadd.f32 %v1175_v5, %v1130_v3  ;;  %v1153_v8 = vadd.f32 %v1152_v6, %v1129_v4 }
 0x185   : > { %v4538_v9 = vmul.f32 0.25, %v1153_v8  ;;  %1271 = vrot.lane.b32.xlu1 %v4534_v7, %s4078_s16  ;;  %3318 = vmatpush.xpose.msk.msra.mxu3 %vm1206_vm0, %v4534_v7 }
 0x188   : > { %3319 = vmatmul.msk.f32.vlgmr.msra.gmra.mxu3 %vm1206_vm0, %v4538_v9 }
 0x18a   : > { %v1178_v44 = vpop.f32.mrf.mxu1  ;;  %v1155_v46 = vpop.f32.mrf.mxu0 }
 0x18b   : > { %v4599_v45 = vadd.f32 %v1178_v44, %v1130_v3  ;;  %v1156_v47 = vadd.f32 %v1155_v46, %v1129_v4 }
 0x18d   : > { %1269 = vrot.lane.b32.xlu1 %v4538_v9, %s4078_s16  ;;  %3342 = vmatpush.xpose.msk.msrb.mxu2 %vm1206_vm0, %v4599_v45  ;;  %v1205_v48 = vmul.f32 0.25, %v1156_v47 }
 0x18e   : > { %v1198_v11 = vpop.f32.mrf.mxu2 }
 0x18f   : > { %v4553_v12 = vadd.f32 %v1198_v11, %v1131_v10 }
 0x190   : > { %3343 = vmatmul.msk.f32.vlgmr.msrb.gmra.mxu2 %vm1206_vm0, %v1205_v48 }
 0x191   : > { %1263 = vmatpush.msrb.mxu3 %v4553_v12 }
 0x195   : > { %1343 = vrot.lane.b32.xlu1 %v4534_v7, %s4079_s5 }
 0x196   : > { %v4644_v0 = vpop.f32.mrf.mxu2 }
 0x1f7   : > { %v1272_v13 = vpop.permute.xlu1 %1271 }
 0x1f8   : > { %3321 = vmatpush.xpose.msk.msra.mxu3 %vm1206_vm0, %v1272_v13 }
 0x1ff   : > { %v1270_v25 = vpop.permute.xlu1 %1269 }
 0x207   : > { %v1344_v27 = vpop.permute.xlu1 %1343 }
 0x20b   : > { %v1230_v14 = vpop.f32.mrf.mxu3 }
 0x20c   : > { %v1234_v15 = vsel %vm1233_vm1, %v1230_v14, -inf }
 0x20d   : > { %1235 = vmax.xlane.f32.xlu0 %v1234_v15 }
 0x213   : > { %v4647_v4 = vpop.f32.mrf.mxu2 }
 0x214   : > { %v1793_v6 = vsel %vm1233_vm1, %v4647_v4, -inf }
 0x280   : > { %v1236_v17 = vpop.xlane.xlu0 %1235 }
 0x281   : > { %v1237_v18 = vsub.f32 %v1230_v14, %v1236_v17 }
 0x283   : > { %v1238_v19 = vmul.f32 1.442695, %v1237_v18 }
 0x285   : > { %3537 = vpow2.f32 %v1238_v19 }
 0x28b   : > { %v3538_v20 = vpop.eup %3537 }
 0x28c   : > { %v1240_v21 = vsel %vm1233_vm1, %v3538_v20, 0.0 }
 0x28d   : > { %1241 = vadd.xlane.f32.xlu0 %v1240_v21 }
 0x2a1   : > { %1309 = vrot.lane.b32.xlu0 %v4553_v12, %s4078_s16 }
 0x2a9   : > { %1554 = vrot.lane.b32.xlu0 %v4538_v9, %s4080_s8 }
 0x2b1   : > { %1901 = vrot.lane.b32.xlu0 %v4599_v45, %s4079_s5 }
 0x300   : > { %v1242_v22 = vpop.xlane.xlu0 %1241 }
 0x301   : > { %3539 = vrcp.f32 %v1242_v22 }
 0x307   : > { %v3540_v23 = vpop.eup %3539 }
 0x308   : > { %v1244_v24 = vmul.f32 %v3540_v23, %v3538_v20 }
 0x30a   : > { %3320 = vmatmul.msk.f32.vlgmr.msrb.gmra.mxu3 %vm1233_vm1, %v1244_v24 }
 0x312   : > { %3322 = vmatmul.msk.f32.vlgmr.msra.gmra.mxu3 %vm1206_vm0, %v1270_v25 }
 0x313   : > { %v1310_v26 = vpop.permute.xlu0 %1309 }
 0x314   : > { %1330 = vmatpush.msrb.mxu3 %v1310_v26 }
 0x316   : > { %3324 = vmatpush.xpose.msk.msra.mxu3 %vm1206_vm0, %v1344_v27 }
 0x31b   : > { %v1555_v50 = vpop.permute.xlu0 %1554 }
 0x323   : > { %v1902_v3 = vpop.permute.xlu0 %1901 }
 0x324   : > { %3348 = vmatpush.xpose.msk.msra.mxu2 %vm1206_vm0, %v1902_v3 }
 0x38d   : > { %v1265_v28 = vpop.f32.mrf.mxu3 }
 0x38e   : > { %1268 = vst.msk [vmem:[#allocation3] sm:$0xff] %vm1206_vm0, %v1265_v28 }
 0x395   : > { %v1294_v29 = vpop.f32.mrf.mxu3 }
 0x396   : > { %v1297_v30 = vsel %vm1233_vm1, %v1294_v29, -inf }
 0x397   : > { %1298 = vmax.xlane.f32.xlu2 %v1297_v30 }
 0x40a   : > { %v1299_v31 = vpop.xlane.xlu2 %1298 }
 0x40b   : > { %v1300_v32 = vsub.f32 %v1294_v29, %v1299_v31 }
 0x40d   : > { %v1301_v33 = vmul.f32 1.442695, %v1300_v32 }
 0x40f   : > { %3541 = vpow2.f32 %v1301_v33 }
 0x415   : > { %v3542_v34 = vpop.eup %3541 }
 0x416   : > { %v1303_v35 = vsel %vm1233_vm1, %v3542_v34, 0.0 }
 0x417   : > { %1304 = vadd.xlane.f32.xlu2 %v1303_v35 }
 0x42f   : > { %1341 = vrot.lane.b32.xlu2 %v4538_v9, %s4079_s5 }
 0x437   : > { %1380 = vrot.lane.b32.xlu2 %v4553_v12, %s4079_s5 }
 0x43f   : > { %1414 = vrot.lane.b32.xlu2 %v4534_v7, %s4081_s27 }
 0x447   : > { %1412 = vrot.lane.b32.xlu2 %v4538_v9, %s4081_s27 }
 0x44f   : > { %1485 = vrot.lane.b32.xlu2 %v4534_v7, %s4082_s26 }
 0x457   : > { %1556 = vrot.lane.b32.xlu2 %v4534_v7, %s4080_s8 }
 0x45f   : > { %1627 = vrot.lane.b32.xlu2 %v4534_v7, %s4083_s14 }
 0x467   : > { %1625 = vrot.lane.b32.xlu2 %v4538_v9, %s4083_s14 }
 0x46f   : > { %1696 = vrot.lane.b32.xlu2 %v4538_v9, %s4084_s7 }
 0x477   : > { %1830 = vrot.lane.b32.xlu2 %v4599_v45, %s4078_s16 }
 0x47f   : > { %2039 = vrot.lane.b32.xlu2 %v1205_v48, %s4082_s26 }
 0x487   : > { %2181 = vrot.lane.b32.xlu2 %v4599_v45, %s4083_s14 }
 0x48a   : > { %v1305_v36 = vpop.xlane.xlu2 %1304 }
 0x48b   : > { %3543 = vrcp.f32 %v1305_v36 }
 0x48f   : > { %2109 = vrot.lane.b32.xlu2 %v1205_v48, %s4080_s8 }
 0x491   : > { %v3544_v37 = vpop.eup %3543 }
 0x492   : > { %v1307_v38 = vmul.f32 %v3544_v37, %v3542_v34  ;;  %v1342_v39 = vpop.permute.xlu2 %1341 }
 0x494   : > { %3323 = vmatmul.msk.f32.vlgmr.msrb.gmra.mxu3 %vm1233_vm1, %v1307_v38 }
 0x49a   : > { %v1381_v40 = vpop.permute.xlu2 %1380 }
 0x49b   : > { %1401 = vmatpush.msrb.mxu3 %v1381_v40 }
 0x49c   : > { %3325 = vmatmul.msk.f32.vlgmr.msra.gmra.mxu3 %vm1206_vm0, %v1342_v39 }
 0x4a2   : > { %v1415_v41 = vpop.permute.xlu2 %1414 }
 0x4a3   : > { %3327 = vmatpush.xpose.msk.msrb.mxu0 %vm1206_vm0, %v1415_v41 }
 0x4aa   : > { %v1413_v42 = vpop.permute.xlu2 %1412 }
 0x4ab   : > { %3328 = vmatmul.msk.f32.vlgmr.msrb.gmra.mxu0 %vm1206_vm0, %v1413_v42 }
 0x4b2   : > { %v1486_v43 = vpop.permute.xlu2 %1485 }
 0x4b3   : > { %3330 = vmatpush.xpose.msk.msra.mxu3 %vm1206_vm0, %v1486_v43 }
 0x4ba   : > { %v1557_v49 = vpop.permute.xlu2 %1556 }
 0x4bb   : > { %3333 = vmatpush.xpose.msk.msra.mxu0 %vm1206_vm0, %v1557_v49 }
 0x4be   : > { %3334 = vmatmul.msk.f32.vlgmr.msra.gmra.mxu0 %vm1206_vm0, %v1555_v50 }
 0x4c2   : > { %v1628_v51 = vpop.permute.xlu2 %1627 }
 0x4c3   : > { %3336 = vmatpush.xpose.msk.msrb.mxu0 %vm1206_vm0, %v1628_v51 }
 0x4ca   : > { %v1626_v52 = vpop.permute.xlu2 %1625 }
 0x4cb   : > { %3337 = vmatmul.msk.f32.vlgmr.msrb.gmra.mxu0 %vm1206_vm0, %v1626_v52 }
 0x4d2   : > { %v1697_v8 = vpop.permute.xlu2 %1696 }
 0x4da   : > { %v1831_v11 = vpop.permute.xlu2 %1830 }
 0x4e2   : > { %v2040_v14 = vpop.permute.xlu2 %2039 }
 0x4ea   : > { %v2182_v18 = vpop.permute.xlu2 %2181 }
 0x4f2   : > { %v2110_v29 = vpop.permute.xlu2 %2109 }
 0x517   : > { %v4618_v53 = vpop.f32.mrf.mxu3 }
 0x51f   : > { %v1366_v54 = vpop.f32.mrf.mxu3 }
 0x520   : > { %v1369_v55 = vsel %vm1233_vm1, %v1366_v54, -inf }
 0x521   : > { %1370 = vmax.xlane.f32.xlu1 %v1369_v55 }
 0x528   : > { %v4621_v56 = vpop.f32.mrf.mxu0 }
 0x529   : > { %v1440_v57 = vsel %vm1233_vm1, %v4621_v56, -inf }
 0x52a   : > { %1441 = vmax.xlane.f32.xlu2 %v1440_v57 }
 0x53a   : > { %1483 = vrot.lane.b32.xlu1 %v4538_v9, %s4082_s26 }
 0x53b   : > { %v4627_v58 = vpop.f32.mrf.mxu0 }
 0x53c   : > { %v1582_v61 = vsel %vm1233_vm1, %v4627_v58, -inf }
 0x542   : > { %1698 = vrot.lane.b32.xlu1 %v4534_v7, %s4084_s7 }
 0x548   : > { %v4631_v59 = vpop.f32.mrf.mxu0 }
 0x549   : > { %v1653_v60 = vsel %vm1233_vm1, %v4631_v59, -inf }
 0x54a   : > { %1899 = vrot.lane.b32.xlu1 %v1205_v48, %s4079_s5  ;;  %1654 = vmax.xlane.f32.xlu2 %v1653_v60 }
 0x552   : > { %2041 = vrot.lane.b32.xlu1 %v4599_v45, %s4082_s26 }
 0x55a   : > { %1969 = vrot.lane.b32.xlu1 %v1205_v48, %s4081_s27 }
 0x562   : > { %2111 = vrot.lane.b32.xlu1 %v4599_v45, %s4080_s8 }
 0x56a   : > { %2249 = vrot.lane.b32.xlu1 %v1205_v48, %s4084_s7 }
 0x594   : > { %v1371_v62 = vpop.xlane.xlu1 %1370  ;;  %1583 = vmax.xlane.f32.xlu1 %v1582_v61 }
 0x595   : > { %v1372_v63 = vsub.f32 %v1366_v54, %v1371_v62 }
 0x597   : > { %v1373_v1 = vmul.f32 1.442695, %v1372_v63 }
 0x599   : > { %3545 = vpow2.f32 %v1373_v1 }
 0x59c   : > { %1794 = vmax.xlane.f32.xlu1 %v1793_v6  ;;  %v4726_v6 = vadd.f32 %v4644_v0, %v1131_v10 }
 0x59d   : > { %v1442_v36 = vpop.xlane.xlu2 %1441 }
 0x59e   : > { %v1443_v39 = vsub.f32 %v4621_v56, %v1442_v36 }
 0x59f   : > { %v3546_v5 = vpop.eup %3545 }
 0x5a0   : > { %v1375_v7 = vsel %vm1233_vm1, %v3546_v5, 0.0  ;;  %v1444_v44 = vmul.f32 1.442695, %v1443_v39 }
 0x5a1   : > { %1376 = vadd.xlane.f32.xlu0 %v1375_v7  ;;  %v3526_v7 = vpack.i.bf16 %v4726_v6, %v4553_v12 }
 0x5ac   : > { %v1484_v9 = vpop.permute.xlu1 %1483 }
 0x5b4   : > { %v1699_v13 = vpop.permute.xlu1 %1698 }
 0x5b5   : > { %1828 = vrot.lane.b32.xlu0 %v1205_v48, %s4078_s16  ;;  %3339 = vmatpush.xpose.msk.msra.mxu0 %vm1206_vm0, %v1699_v13 }
 0x5b8   : > { %3340 = vmatmul.msk.f32.vlgmr.msra.gmra.mxu0 %vm1206_vm0, %v1697_v8 }
 0x5b9   : > { %3345 = vmatpush.xpose.msk.msrb.mxu0 %vm1206_vm0, %v1831_v11 }
 0x5bc   : > { %v1900_v15 = vpop.permute.xlu1 %1899 }
 0x5bd   : > { %1971 = vrot.lane.b32.xlu0 %v4599_v45, %s4081_s27  ;;  %3349 = vmatmul.msk.f32.vlgmr.msra.gmra.mxu2 %vm1206_vm0, %v1900_v15  ;;  %v1655_v40 = vpop.xlane.xlu2 %1654 }
 0x5be   : > { %v1656_v43 = vsub.f32 %v4631_v59, %v1655_v40 }
 0x5c0   : > { %v1657_v46 = vmul.f32 1.442695, %v1656_v43 }
 0x5c4   : > { %v2042_v17 = vpop.permute.xlu1 %2041 }
 0x5c5   : > { %2179 = vrot.lane.b32.xlu0 %v1205_v48, %s4083_s14  ;;  %3354 = vmatpush.xpose.msk.msrb.mxu2 %vm1206_vm0, %v2042_v17 }
 0x5c8   : > { %3355 = vmatmul.msk.f32.vlgmr.msrb.gmra.mxu2 %vm1206_vm0, %v2040_v14 }
 0x5c9   : > { %3360 = vmatpush.xpose.msk.msra.mxu2 %vm1206_vm0, %v2182_v18 }
 0x5cc   : > { %v1970_v22 = vpop.permute.xlu1 %1969 }
 0x5cd   : > { %2251 = vrot.lane.b32.xlu0 %v4599_v45, %s4084_s7 }
 0x5d4   : > { %v2112_v25 = vpop.permute.xlu1 %2111 }
 0x5dc   : > { %v2250_v33 = vpop.permute.xlu1 %2249 }
 0x607   : > { %v1584_v45 = vpop.xlane.xlu1 %1583 }
 0x608   : > { %v1585_v47 = vsub.f32 %v4627_v58, %v1584_v45 }
 0x60a   : > { %v1586_v54 = vmul.f32 1.442695, %v1585_v47 }
 0x60f   : > { %v1795_v8 = vpop.xlane.xlu1 %1794 }
 0x610   : > { %v1796_v2 = vsub.f32 %v4647_v4, %v1795_v8 }
 0x612   : > { %v1797_v10 = vmul.f32 1.442695, %v1796_v2 }
 0x614   : > { %v1377_v19 = vpop.xlane.xlu0 %1376 }
 0x615   : > { %3547 = vrcp.f32 %v1377_v19 }
 0x616   : > { %3549 = vpow2.f32 %v1444_v44 }
 0x617   : > { %3551 = vpow2.f32 %v1657_v46 }
 0x618   : > { %3553 = vpow2.f32 %v1586_v54 }
 0x61b   : > { %v3548_v20 = vpop.eup %3547 }
 0x61c   : > { %v1379_v21 = vmul.f32 %v3548_v20, %v3546_v5  ;;  %v4703_v56 = vpop.eup %3549 }
 0x61d   : > { %v4707_v59 = vpop.eup %3551  ;;  %v1446_v60 = vsel %vm1233_vm1, %v4703_v56, 0.0 }
 0x61e   : > { %3326 = vmatmul.msk.f32.vlgmr.msrb.gmra.mxu3 %vm1233_vm1, %v1379_v21  ;;  %v1659_v62 = vsel %vm1233_vm1, %v4707_v59, 0.0  ;;  %v4715_v63 = vpop.eup %3553 }
 0x61f   : > { %v1588_v3 = vsel %vm1233_vm1, %v4715_v63, 0.0 }
 0x626   : > { %3331 = vmatmul.msk.f32.vlgmr.msra.gmra.mxu3 %vm1206_vm0, %v1484_v9 }
 0x627   : > { %v1829_v23 = vpop.permute.xlu0 %1828 }
 0x628   : > { %3346 = vmatmul.msk.f32.vlgmr.msrb.gmra.mxu0 %vm1206_vm0, %v1829_v23 }
 0x62f   : > { %v1972_v24 = vpop.permute.xlu0 %1971 }
 0x630   : > { %3351 = vmatpush.xpose.msk.msra.mxu0 %vm1206_vm0, %v1972_v24 }
 0x633   : > { %3352 = vmatmul.msk.f32.vlgmr.msra.gmra.mxu0 %vm1206_vm0, %v1970_v22 }
 0x634   : > { %3357 = vmatpush.xpose.msk.msrb.mxu0 %vm1206_vm0, %v2112_v25 }
 0x635   : > { %v1721_v26 = vpop.f32.mrf.mxu0 }
 0x636   : > { %v1724_v27 = vsel %vm1233_vm1, %v1721_v26, -inf }
 0x637   : > { %1725 = vmax.xlane.f32.xlu0 %v1724_v27  ;;  %v2180_v28 = vpop.permute.xlu0 %2179 }
 0x638   : > { %3361 = vmatmul.msk.f32.vlgmr.msra.gmra.mxu2 %vm1206_vm0, %v2180_v28 }
 0x63b   : > { %3358 = vmatmul.msk.f32.vlgmr.msrb.gmra.mxu0 %vm1206_vm0, %v2110_v29 }
 0x63f   : > { %v2252_v30 = vpop.permute.xlu0 %2251 }
 0x640   : > { %v4674_v31 = vpop.f32.mrf.mxu2  ;;  %3363 = vmatpush.xpose.msk.msra.mxu0 %vm1206_vm0, %v2252_v30 }
 0x641   : > { %v1927_v32 = vsel %vm1233_vm1, %v4674_v31, -inf }
 0x642   : > { %1928 = vmax.xlane.f32.xlu0 %v1927_v32 }
 0x643   : > { %3364 = vmatmul.msk.f32.vlgmr.msra.gmra.mxu0 %vm1206_vm0, %v2250_v33 }
 0x64b   : > { %v4684_v37 = vpop.f32.mrf.mxu2 }
 0x64c   : > { %v2067_v38 = vsel %vm1233_vm1, %v4684_v37, -inf }
 0x6a1   : > { %v4756_v27 = vpop.f32.mrf.mxu3 }
 0x6a5   : > { %v4680_v34 = vpop.f32.mrf.mxu0 }
 0x6a6   : > { %v1856_v35 = vsel %vm1233_vm1, %v4680_v34, -inf }
 0x6a7   : > { %1857 = vmax.xlane.f32.xlu2 %v1856_v35 }
 0x6aa   : > { %v1726_v48 = vpop.xlane.xlu0 %1725 }
 0x6ab   : > { %v1727_v51 = vsub.f32 %v1721_v26, %v1726_v48 }
 0x6ad   : > { %v1728_v57 = vmul.f32 1.442695, %v1727_v51 }
 0x6af   : > { %2068 = vmax.xlane.f32.xlu2 %v2067_v38  ;;  %3555 = vpow2.f32 %v1728_v57 }
 0x6b0   : > { %v4689_v41 = vpop.f32.mrf.mxu0  ;;  %3557 = vpow2.f32 %v1797_v10 }
 0x6b1   : > { %v1997_v42 = vsel %vm1233_vm1, %v4689_v41, -inf }
 0x6b2   : > { %1998 = vmax.xlane.f32.xlu1 %v1997_v42 }
 0x6b5   : > { %v4717_v1 = vpop.eup %3555  ;;  %v1929_v11 = vpop.xlane.xlu0 %1928 }
 0x6b6   : > { %v1730_v5 = vsel %vm1233_vm1, %v4717_v1, 0.0  ;;  %v4740_v0 = vpop.eup %3557  ;;  %v1930_v13 = vsub.f32 %v4674_v31, %v1929_v11 }
 0x6b7   : > { %v1799_v9 = vsel %vm1233_vm1, %v4740_v0, 0.0 }
 0x6b8   : > { %v4695_v49 = vpop.f32.mrf.mxu0  ;;  %v1931_v14 = vmul.f32 1.442695, %v1930_v13 }
 0x6b9   : > { %v2137_v50 = vsel %vm1233_vm1, %v4695_v49, -inf }
 0x6ba   : > { %2138 = vmax.xlane.f32.xlu0 %v2137_v50  ;;  %3559 = vpow2.f32 %v1931_v14 }
 0x6bb   : > { %v4699_v52 = vpop.f32.mrf.mxu2 }
 0x6bc   : > { %v2207_v55 = vsel %vm1233_vm1, %v4699_v52, -inf }
 0x6bd   : > { %2208 = vmax.xlane.f32.xlu1 %v2207_v55 }
 0x6c0   : > { %v4705_v58 = vpop.f32.mrf.mxu0  ;;  %v4745_v15 = vpop.eup %3559 }
 0x6c1   : > { %v2277_v61 = vsel %vm1233_vm1, %v4705_v58, -inf  ;;  %v1933_v4 = vsel %vm1233_vm1, %v4745_v15, 0.0 }
 0x6c2   : > { %1447 = vadd.xlane.f32.xlu0 %v1446_v60  ;;  %2278 = vmax.xlane.f32.xlu2 %v2277_v61 }
 0x6c5   : > { %1660 = vadd.xlane.f32.xlu1 %v1659_v62 }
 0x6ca   : > { %1589 = vadd.xlane.f32.xlu2 %v1588_v3 }
 0x6cd   : > { %1731 = vadd.xlane.f32.xlu1 %v1730_v5 }
 0x6d6   : > { %3527 = vrot.lane.b32.xlu0 %v3526_v7, %s4081_s27 }
 0x6e2   : > { %1522 = vrot.lane.b32.xlu2 %v4553_v12, %s4082_s26 }
 0x6e6   : > { %1593 = vrot.lane.b32.xlu1 %v4553_v12, %s4080_s8 }
 0x6ea   : > { %1664 = vrot.lane.b32.xlu2 %v4553_v12, %s4083_s14 }
 0x6ee   : > { %1735 = vrot.lane.b32.xlu1 %v4553_v12, %s4084_s7 }
 0x700   : > { %1800 = vadd.xlane.f32.xlu0 %v1799_v9 }
 0x718   : > { %1934 = vadd.xlane.f32.xlu1 %v1933_v4 }
 0x71a   : > { %v1858_v12 = vpop.xlane.xlu2 %1857 }
 0x71b   : > { %v1859_v17 = vsub.f32 %v4680_v34, %v1858_v12 }
 0x71d   : > { %v1860_v18 = vmul.f32 1.442695, %v1859_v17 }
 0x71f   : > { %3561 = vpow2.f32 %v1860_v18 }
 0x722   : > { %v2069_v19 = vpop.xlane.xlu2 %2068 }
 0x723   : > { %v2070_v20 = vsub.f32 %v4684_v37, %v2069_v19  ;;  %v1508_v37 = vpop.f32.mrf.mxu3 }
 0x724   : > { %v1511_v38 = vsel %vm1233_vm1, %v1508_v37, -inf }
 0x725   : > { %v4751_v21 = vpop.eup %3561  ;;  %v2071_v22 = vmul.f32 1.442695, %v2070_v20  ;;  %v1999_v23 = vpop.xlane.xlu1 %1998 }
 0x726   : > { %v2000_v24 = vsub.f32 %v4689_v41, %v1999_v23  ;;  %v1862_v25 = vsel %vm1233_vm1, %v4751_v21, 0.0 }
 0x727   : > { %3563 = vpow2.f32 %v2071_v22  ;;  %1863 = vadd.xlane.f32.xlu2 %v1862_v25 }
 0x728   : > { %v2001_v26 = vmul.f32 1.442695, %v2000_v24 }
 0x72a   : > { %3565 = vpow2.f32 %v2001_v26 }
 0x72d   : > { %v4758_v28 = vpop.eup %3563  ;;  %v2139_v35 = vpop.xlane.xlu0 %2138 }
 0x72e   : > { %v2073_v29 = vsel %vm1233_vm1, %v4758_v28, 0.0  ;;  %v2140_v3 = vsub.f32 %v4695_v49, %v2139_v35 }
 0x72f   : > { %2074 = vadd.xlane.f32.xlu2 %v2073_v29 }
 0x730   : > { %v4762_v30 = vpop.eup %3565  ;;  %v2209_v31 = vpop.xlane.xlu1 %2208  ;;  %v2141_v5 = vmul.f32 1.442695, %v2140_v3 }
 0x731   : > { %v2210_v32 = vsub.f32 %v4699_v52, %v2209_v31  ;;  %v2003_v33 = vsel %vm1233_vm1, %v4762_v30, 0.0 }
 0x732   : > { %2004 = vadd.xlane.f32.xlu0 %v2003_v33 }
 0x733   : > { %v2211_v34 = vmul.f32 1.442695, %v2210_v32 }
 0x735   : > { %3567 = vpow2.f32 %v2211_v34  ;;  %v2279_v36 = vpop.xlane.xlu2 %2278  ;;  %v1448_v42 = vpop.xlane.xlu0 %1447 }
 0x736   : > { %3569 = vrcp.f32 %v1448_v42 }
 0x738   : > { %v4772_v44 = vpop.xlane.xlu1 %1660 }
 0x73a   : > { %1512 = vmax.xlane.f32.xlu0 %v1511_v38 }
 0x73b   : > { %v4768_v39 = vpop.eup %3567 }
 0x73c   : > { %v2213_v40 = vsel %vm1233_vm1, %v4768_v39, 0.0  ;;  %v3570_v45 = vpop.eup %3569 }
 0x73d   : > { %v1590_v41 = vpop.xlane.xlu2 %1589  ;;  %2214 = vadd.xlane.f32.xlu1 %v2213_v40  ;;  %v1450_v48 = vmul.f32 %v3570_v45, %v4703_v56  ;;  %v2280_v56 = vsub.f32 %v4705_v58, %v2279_v36 }
 0x73e   : > { %3571 = vrcp.f32 %v1590_v41 }
 0x73f   : > { %v2281_v62 = vmul.f32 1.442695, %v2280_v56  ;;  %v990_v56 = vld [vmem:[%s4467_s6 + $0x68] sm:$0xff] }
 0x740   : > { %v1732_v51 = vpop.xlane.xlu1 %1731 }
 0x741   : > { %3573 = vrcp.f32 %v1732_v51 }
 0x742   : > { %3575 = vpow2.f32 %v2281_v62 }
 0x743   : > { %3577 = vpow2.f32 %v2141_v5  ;;  %v987_v5 = vld [vmem:[%s4467_s6 + $0x50] sm:$0xff] }
 0x744   : > { %v3572_v52 = vpop.eup %3571 }
 0x745   : > { %v1523_v43 = vpop.permute.xlu2 %1522  ;;  %v1592_v54 = vmul.f32 %v3572_v52, %v4715_v63 }
 0x746   : > { %1543 = vmatpush.msrb.mxu3 %v1523_v43 }
 0x747   : > { %1938 = vrot.lane.b32.xlu2 %v4726_v6, %s4079_s5  ;;  %v3574_v57 = vpop.eup %3573 }
 0x748   : > { %v3528_v46 = vpop.permute.xlu0 %3527  ;;  %v1734_v60 = vmul.f32 %v3574_v57, %v4717_v1  ;;  %v4786_v7 = vpop.eup %3575  ;;  %v991_v57 = vld [vmem:[%s4467_s6 + $0x70] sm:$0xff] }
 0x749   : > { %v3529_v47 = vunpack.i.l.bf16 %v3528_v46  ;;  %v2283_v63 = vsel %vm1233_vm1, %v4786_v7, 0.0  ;;  %v4790_v8 = vpop.eup %3577  ;;  %v3530_v18 = vunpack.i.h.bf16 %v3528_v46 }
 0x74a   : > { %v2143_v58 = vsel %vm1233_vm1, %v4790_v8, 0.0 }
 0x74b   : > { %1472 = vmatpush.msrb.mxu1 %v3529_v47 }
 0x74c   : > { %3329 = vmatmul.msk.f32.vlgmr.msrb.gmra.mxu1 %vm1233_vm1, %v1450_v48 }
 0x74d   : > { %v1665_v50 = vpop.permute.xlu2 %1664 }
 0x74e   : > { %1868 = vrot.lane.b32.xlu0 %v4726_v6, %s4078_s16  ;;  %1685 = vmatpush.msra.mxu3 %v1665_v50 }
 0x758   : > { %v1594_v55 = vpop.permute.xlu1 %1593 }
 0x759   : > { %1614 = vmatpush.msra.mxu1 %v1594_v55  ;;  %v992_v55 = vld [vmem:[%s4467_s6 + $0x78] sm:$0xff] }
 0x75a   : > { %3335 = vmatmul.msk.f32.vlgmr.msra.gmra.mxu1 %vm1233_vm1, %v1592_v54  ;;  %2324 = vmatpush.msrb.mxu2 %v992_v55  ;;  %v1042_v55 = vld [vmem:[%s4470_s17 + $0x170] sm:$0xff] }
 0x75c   : > { %2325 = vmatpush.msrb.mxu2 %v991_v57 }
 0x75e   : > { %2326 = vmatpush.msrb.mxu2 %v990_v56  ;;  %v1043_v56 = vld [vmem:[%s4470_s17 + $0x178] sm:$0xff] }
 0x760   : > { %v1736_v61 = vpop.permute.xlu1 %1735 }
 0x761   : > { %1756 = vmatpush.msrb.mxu1 %v1736_v61  ;;  %v988_v61 = vld [vmem:[%s4467_s6 + $0x58] sm:$0xff] }
 0x762   : > { %3341 = vmatmul.msk.f32.vlgmr.msrb.gmra.mxu1 %vm1233_vm1, %v1734_v60  ;;  %v989_v60 = vld [vmem:[%s4467_s6 + $0x60] sm:$0xff] }
 0x763   : > { %2327 = vmatpush.msrb.mxu2 %v989_v60  ;;  %v1036_v60 = vld [vmem:[%s4470_s17 + $0x140] sm:$0xff] }
 0x765   : > { %2328 = vmatpush.msrb.mxu2 %v988_v61  ;;  %v1037_v61 = vld [vmem:[%s4470_s17 + $0x148] sm:$0xff] }
 0x767   : > { %2329 = vmatpush.msrb.mxu2 %v987_v5 }
 0x770   : > { %2284 = vadd.xlane.f32.xlu2 %v2283_v63 }
 0x773   : > { %v1801_v1 = vpop.xlane.xlu0 %1800 }
 0x778   : > { %2144 = vadd.xlane.f32.xlu0 %v2143_v58 }
 0x78b   : > { %v1935_v24 = vpop.xlane.xlu1 %1934 }
 0x78c   : > { %2218 = vrot.lane.b32.xlu0 %v4726_v6, %s4083_s14 }
 0x79a   : > { %v1864_v11 = vpop.xlane.xlu2 %1863 }
 0x7a5   : > { %v2005_v49 = vpop.xlane.xlu0 %2004 }
 0x7ad   : > { %v1513_v2 = vpop.xlane.xlu0 %1512 }
 0x7ae   : > { %v1514_v10 = vsub.f32 %v1508_v37, %v1513_v2  ;;  %v985_v2 = vld [vmem:[%s4467_s6 + $0x40] sm:$0xff] }
 0x7b0   : > { %v1515_v9 = vmul.f32 1.442695, %v1514_v10  ;;  %v2215_v25 = vpop.xlane.xlu1 %2214  ;;  %v984_v10 = vld [vmem:[%s4467_s6 + $0x38] sm:$0xff] }
 0x7b2   : > { %3579 = vpow2.f32 %v1515_v9  ;;  %v983_v9 = vld [vmem:[%s4467_s6 + $0x30] sm:$0xff] }
 0x7b3   : > { %3581 = vrcp.f32 %v1864_v11  ;;  %v982_v11 = vld [vmem:[%s4467_s6 + $0x28] sm:$0xff] }
 0x7b4   : > { %3583 = vrcp.f32 %v2005_v49 }
 0x7b8   : > { %v3580_v13 = vpop.eup %3579 }
 0x7b9   : > { %v1517_v14 = vsel %vm1233_vm1, %v3580_v13, 0.0  ;;  %v3582_v4 = vpop.eup %3581 }
 0x7ba   : > { %1518 = vadd.xlane.f32.xlu1 %v1517_v14  ;;  %v1866_v12 = vmul.f32 %v3582_v4, %v4751_v21  ;;  %v3584_v19 = vpop.eup %3583  ;;  %v980_v14 = vld [vmem:[%s4467_s6 + $0x18] sm:$0xff]  ;;  %v979_v4 = vld [vmem:[%s4467_s6 + $0x10] sm:$0xff] }
 0x7bb   : > { %v2007_v20 = vmul.f32 %v3584_v19, %v4762_v30  ;;  %v2075_v30 = vpop.xlane.xlu2 %2074 }
 0x7c0   : > { %v1869_v17 = vpop.permute.xlu0 %1868 }
 0x7c1   : > { %1889 = vmatpush.msra.mxu1 %v1869_v17  ;;  %v977_v17 = vld [vmem:[%s4467_s6] sm:$0xff] }
 0x7c2   : > { %3347 = vmatmul.msk.f32.vlgmr.msra.gmra.mxu1 %vm1233_vm1, %v1866_v12  ;;  %v978_v12 = vld [vmem:[%s4467_s6 + $0x8] sm:$0xff] }
 0x7c3   : > { %2029 = vmatpush.msrb.mxu1 %v3530_v18  ;;  %v1939_v32 = vpop.permute.xlu2 %1938 }
 0x7c9   : > { %v1474_v22 = vpop.f32.mrf.mxu1 }
 0x7ca   : > { %3353 = vmatmul.msk.f32.vlgmr.msrb.gmra.mxu1 %vm1233_vm1, %v2007_v20  ;;  %1478 = vrot.lane.b32.xlu2 %v1474_v22, %s4080_s8 }
 0x7d3   : > { %2078 = vrot.lane.b32.xlu1 %v4726_v6, %s4082_s26 }
 0x7d7   : > { %v1616_v21 = vpop.f32.mrf.mxu1 }
 0x7db   : > { %2148 = vrot.lane.b32.xlu1 %v4726_v6, %s4080_s8 }
 0x7df   : > { %v1758_v23 = vpop.f32.mrf.mxu1 }
 0x7e3   : > { %2288 = vrot.lane.b32.xlu1 %v4726_v6, %s4084_s7  ;;  %v2285_v38 = vpop.xlane.xlu2 %2284 }
 0x7eb   : > { %1336 = vrot.lane.b32.xlu1 %v4618_v53, %s4084_s7  ;;  %v2145_v34 = vpop.xlane.xlu0 %2144 }
 0x7f3   : > { %1407 = vrot.lane.b32.xlu1 %v4756_v27, %s4083_s14 }
 0x7fb   : > { %1620 = vrot.lane.b32.xlu1 %v1616_v21, %s4081_s27 }
 0x803   : > { %1762 = vrot.lane.b32.xlu1 %v1758_v23, %s4078_s16 }
 0x824   : > { %v1479_v52 = vpop.permute.xlu2 %1478 }
 0x82d   : > { %v1519_v26 = vpop.xlane.xlu1 %1518 }
 0x82e   : > { %3585 = vrcp.f32 %v1519_v26 }
 0x82f   : > { %3587 = vrcp.f32 %v4772_v44  ;;  %v2219_v44 = vpop.permute.xlu0 %2218 }
 0x830   : > { %3589 = vrcp.f32 %v1801_v1 }
 0x831   : > { %3591 = vrcp.f32 %v1935_v24 }
 0x832   : > { %3593 = vrcp.f32 %v2145_v34 }
 0x833   : > { %3595 = vrcp.f32 %v2075_v30 }
 0x834   : > { %v3586_v29 = vpop.eup %3585  ;;  %3597 = vrcp.f32 %v2285_v38  ;;  %v1056_v38 = vld [vmem:[%s4470_s17 + $0x1e0] sm:$0xff] }
 0x835   : > { %v1521_v31 = vmul.f32 %v3586_v29, %v3580_v13  ;;  %v3588_v53 = vpop.eup %3587  ;;  %3599 = vrcp.f32 %v2215_v25  ;;  %v981_v13 = vld [vmem:[%s4467_s6 + $0x20] sm:$0xff] }
 0x836   : > { %v1663_v27 = vmul.f32 %v3588_v53, %v4707_v59  ;;  %v3590_v35 = vpop.eup %3589  ;;  %v3531_v53 = vld [vmem:[%s5433_s20] ss:$0 sm:$0xff] }
 0x837   : > { %3332 = vmatmul.msk.f32.vlgmr.msrb.gmra.mxu3 %vm1233_vm1, %v1521_v31  ;;  %v1803_v36 = vmul.f32 %v3590_v35, %v4740_v0  ;;  %v3592_v59 = vpop.eup %3591 }
 0x838   : > { %1822 = vmatpush.msrb.mxu3 %v4726_v6  ;;  %v3594_v40 = vpop.eup %3593  ;;  %v1937_v41 = vmul.f32 %v3592_v59, %v4745_v15 }
 0x839   : > { %v2147_v42 = vmul.f32 %v3594_v40, %v4790_v8  ;;  %v3596_v0 = vpop.eup %3595  ;;  %v1057_v40 = vld [vmem:[%s4470_s17 + $0x1e8] sm:$0xff] }
 0x83a   : > { %v3598_v45 = vpop.eup %3597  ;;  %v2077_v46 = vmul.f32 %v3596_v0, %v4758_v28  ;;  %2442 = vmatpush.msrb.mxu0 %v1057_v40  ;;  %v4085_v0 = vmov 128.0   ;;  %v1001_v40 = vld [vmem:[%s4470_s17 + $0x28] sm:$0xff] }
 0x83b   : > { %v2287_v47 = vmul.f32 %v3598_v45, %v4786_v7  ;;  %v3600_v15 = vpop.eup %3599  ;;  %v986_v7 = vld [vmem:[%s4467_s6 + $0x48] sm:$0xff]  ;;  %3601 = vrcp.f32 %v4085_v0  ;;  %v1055_v45 = vld [vmem:[%s4470_s17 + $0x1d8] sm:$0xff] }
 0x83c   : > { %v2217_v50 = vmul.f32 %v3600_v15, %v4768_v39  ;;  %2330 = vmatpush.msrb.mxu2 %v986_v7  ;;  %v1051_v15 = vld [vmem:[%s4470_s17 + $0x1b8] sm:$0xff]  ;;  %v1032_v7 = vld [vmem:[%s4470_s17 + $0x120] sm:$0xff]  ;;  %v997_v0 = vld [vmem:[%s4470_s17 + $0x8] sm:$0xff] }
 0x83e   : > { %2331 = vmatpush.msrb.mxu2 %v985_v2  ;;  %v1030_v2 = vld [vmem:[%s4470_s17 + $0x110] sm:$0xff] }
 0x83f   : > { %3338 = vmatmul.msk.f32.vlgmr.msra.gmra.mxu3 %vm1233_vm1, %v1663_v27  ;;  %v1891_v33 = vpop.f32.mrf.mxu1 }
 0x840   : > { %1959 = vmatpush.msra.mxu3 %v1939_v32  ;;  %1895 = vrot.lane.b32.xlu0 %v1891_v33, %s4084_s7  ;;  %v3627_v33 = vld [vmem:[#allocation2] sm:$0xff] }
 0x841   : > { %2332 = vmatpush.msrb.mxu2 %v984_v10  ;;  %v4906_v57 = vpop.eup %3601  ;;  %v1031_v10 = vld [vmem:[%s4470_s17 + $0x118] sm:$0xff] }
 0x842   : > { %v2354_v5 = vmul.f32 128.0, %v4906_v57  ;;  %vm2358_vm9 = vweird.f32 %v4906_v57 }
 0x843   : > { %2333 = vmatpush.msrb.mxu2 %v983_v9 }
 0x844   : > { %v2355_v9 = vsub.f32 1.0, %v2354_v5  ;;  %v3533_v5 = vld [vmem:[%s756_s4] ss:$0 sm:$0xff] }
 0x845   : > { %v2079_v37 = vpop.permute.xlu1 %2078  ;;  %2334 = vmatpush.msrb.mxu2 %v982_v11  ;;  %v1024_v11 = vld [vmem:[%s4470_s17 + $0xe0] sm:$0xff] }
 0x847   : > { %3344 = vmatmul.msk.f32.vlgmr.msrb.gmra.mxu3 %vm1233_vm1, %v1803_v36  ;;  %v2031_v6 = vpop.f32.mrf.mxu1  ;;  %2335 = vmatpush.msrb.mxu2 %v981_v13  ;;  %v1025_v13 = vld [vmem:[%s4470_s17 + $0xe8] sm:$0xff] }
 0x848   : > { %2099 = vmatpush.msrb.mxu3 %v2079_v37  ;;  %2035 = vrot.lane.b32.xlu2 %v2031_v6, %s4080_s8 }
 0x849   : > { %2336 = vmatpush.msrb.mxu2 %v980_v14  ;;  %v1026_v14 = vld [vmem:[%s4470_s17 + $0xf0] sm:$0xff] }
 0x84b   : > { %2337 = vmatpush.msrb.mxu2 %v979_v4  ;;  %v1027_v4 = vld [vmem:[%s4470_s17 + $0xf8] sm:$0xff] }
 0x84d   : > { %v2149_v43 = vpop.permute.xlu1 %2148  ;;  %2338 = vmatpush.msrb.mxu2 %v978_v12  ;;  %v1020_v12 = vld [vmem:[%s4470_s17 + $0xc0] sm:$0xff] }
 0x84e   : > { %2169 = vmatpush.msra.mxu1 %v2149_v43  ;;  %v1053_v43 = vld [vmem:[%s4470_s17 + $0x1c8] sm:$0xff] }
 0x84f   : > { %3350 = vmatmul.msk.f32.vlgmr.msra.gmra.mxu3 %vm1233_vm1, %v1937_v41  ;;  %3359 = vmatmul.msk.f32.vlgmr.msra.gmra.mxu1 %vm1233_vm1, %v2147_v42  ;;  %v1058_v41 = vld [vmem:[%s4470_s17 + $0x1f0] sm:$0xff]  ;;  %v1059_v42 = vld [vmem:[%s4470_s17 + $0x1f8] sm:$0xff] }
 0x850   : > { %2239 = vmatpush.msra.mxu3 %v2219_v44  ;;  %2339 = vmatpush.msrb.mxu2 %v977_v17  ;;  %v1054_v44 = vld [vmem:[%s4470_s17 + $0x1d0] sm:$0xff]  ;;  %v1021_v17 = vld [vmem:[%s4470_s17 + $0xc8] sm:$0xff] }
 0x851   : > { %2443 = vmatpush.msrb.mxu0 %v1053_v43 }
 0x852   : > { %2488 = vmatpush.msra.mxu2 %v1059_v42  ;;  %v1002_v42 = vld [vmem:[%s4470_s17 + $0x30] sm:$0xff] }
 0x854   : > { %2489 = vmatpush.msra.mxu2 %v1055_v45  ;;  %v998_v45 = vld [vmem:[%s4470_s17 + $0x10] sm:$0xff] }
 0x855   : > { %v2289_v48 = vpop.permute.xlu1 %2288 }
 0x856   : > { %2309 = vmatpush.msrb.mxu1 %v2289_v48  ;;  %v1050_v48 = vld [vmem:[%s4470_s17 + $0x1b0] sm:$0xff]  ;;  %2490 = vmatpush.msra.mxu2 %v1051_v15 }
 0x857   : > { %3356 = vmatmul.msk.f32.vlgmr.msrb.gmra.mxu3 %vm1233_vm1, %v2077_v46  ;;  %3365 = vmatmul.msk.f32.vlgmr.msrb.gmra.mxu1 %vm1233_vm1, %v2287_v47  ;;  %v1048_v46 = vld [vmem:[%s4470_s17 + $0x1a0] sm:$0xff]  ;;  %v1049_v47 = vld [vmem:[%s4470_s17 + $0x1a8] sm:$0xff] }
 0x858   : > { %2419 = vmatpush.msrb.mxu3 %v1056_v38  ;;  %2465 = vmatpush.msra.mxu1 %v1058_v41  ;;  %v1000_v38 = vld [vmem:[%s4470_s17 + $0x20] sm:$0xff] }
 0x859   : > { %2444 = vmatpush.msrb.mxu0 %v1049_v47  ;;  %v999_v47 = vld [vmem:[%s4470_s17 + $0x18] sm:$0xff] }
 0x85a   : > { %2466 = vmatpush.msra.mxu1 %v1054_v44  ;;  %v996_v44 = vld [vmem:[%s4470_s17] sm:$0xff] }
 0x85c   : > { %2467 = vmatpush.msra.mxu1 %v1050_v48 }
 0x85d   : > { %v1337_v51 = vpop.permute.xlu1 %1336 }
 0x85e   : > { %1340 = vst.msk [vmem:[#allocation3] sm:$0xff] %vm1339_vm2, %v1337_v51  ;;  %v1045_v51 = vld [vmem:[%s4470_s17 + $0x188] sm:$0xff] }
 0x85f   : > { %3362 = vmatmul.msk.f32.vlgmr.msra.gmra.mxu3 %vm1233_vm1, %v2217_v50  ;;  %v1044_v50 = vld [vmem:[%s4470_s17 + $0x180] sm:$0xff]  ;;  %2445 = vmatpush.msrb.mxu0 %v1045_v51 }
 0x865   : > { %v1408_v28 = vpop.permute.xlu1 %1407 }
 0x866   : > { %1411 = vst.msk [vmem:[#allocation3] sm:$0xff] %vm1410_vm3, %v1408_v28  ;;  %v1046_v28 = vld [vmem:[%s4470_s17 + $0x190] sm:$0xff] }
 0x867   : > { %1482 = vst.msk [vmem:[#allocation3] sm:$0xff] %vm1481_vm4, %v1479_v52  ;;  %v1047_v52 = vld [vmem:[%s4470_s17 + $0x198] sm:$0xff]  ;;  %2468 = vmatpush.msra.mxu1 %v1046_v28 }
 0x868   : > { %2491 = vmatpush.msra.mxu2 %v1047_v52 }
 0x869   : > { %2469 = vmatpush.msra.mxu1 %v1042_v55 }
 0x86a   : > { %2492 = vmatpush.msra.mxu2 %v1043_v56 }
 0x86d   : > { %v1621_v18 = vpop.permute.xlu1 %1620 }
 0x875   : > { %v1763_v22 = vpop.permute.xlu1 %1762 }
 0x8a2   : > { %v2036_v24 = vpop.permute.xlu2 %2035 }
 0x8b2   : > { %v1896_v3 = vpop.permute.xlu0 %1895 }
 0x8ba   : > { %v1545_v54 = vpop.f32.mrf.mxu3 }
 0x8bb   : > { %1549 = vrot.lane.b32.xlu0 %v1545_v54, %s4082_s26  ;;  %v1040_v54 = vld [vmem:[%s4470_s17 + $0x160] sm:$0xff] }
 0x8c2   : > { %v1687_v39 = vpop.f32.mrf.mxu3 }
 0x8c3   : > { %1691 = vrot.lane.b32.xlu0 %v1687_v39, %s4079_s5  ;;  %v1041_v39 = vld [vmem:[%s4470_s17 + $0x168] sm:$0xff] }
 0x8c4   : > { %2446 = vmatpush.msrb.mxu0 %v1041_v39 }
 0x8c6   : > { %2447 = vmatpush.msrb.mxu0 %v1037_v61  ;;  %v3532_v61 = vld [vmem:[%s890_s24] ss:$0 sm:$0xff] }
 0x8ca   : > { %v1824_v62 = vpop.f32.mrf.mxu3 }
 0x8cb   : > { %1827 = vst.msk [vmem:[#allocation3 + $0x8] sm:$0xff] %vm1206_vm0, %v1824_v62  ;;  %v1038_v62 = vld [vmem:[%s4470_s17 + $0x150] sm:$0xff] }
 0x8cc   : > { %1898 = vst.msk [vmem:[#allocation3 + $0x8] sm:$0xff] %vm1339_vm2, %v1896_v3  ;;  %v2171_v8 = vpop.f32.mrf.mxu1  ;;  %v1039_v3 = vld [vmem:[%s4470_s17 + $0x158] sm:$0xff]  ;;  %2470 = vmatpush.msra.mxu1 %v1038_v62 }
 0x8cd   : > { %2493 = vmatpush.msra.mxu2 %v1039_v3 }
 0x8d2   : > { %v1961_v63 = vpop.f32.mrf.mxu3 }
 0x8d3   : > { %1965 = vrot.lane.b32.xlu1 %v1961_v63, %s4083_s14  ;;  %v1033_v63 = vld [vmem:[%s4470_s17 + $0x128] sm:$0xff] }
 0x8d4   : > { %v2311_v1 = vpop.f32.mrf.mxu1  ;;  %2448 = vmatpush.msrb.mxu0 %v1033_v63 }
 0x8da   : > { %v2101_v58 = vpop.f32.mrf.mxu3 }
 0x8db   : > { %2105 = vrot.lane.b32.xlu0 %v2101_v58, %s4082_s26  ;;  %2175 = vrot.lane.b32.xlu1 %v2171_v8, %s4081_s27  ;;  %v1034_v8 = vld [vmem:[%s4470_s17 + $0x130] sm:$0xff]  ;;  %v1035_v58 = vld [vmem:[%s4470_s17 + $0x138] sm:$0xff] }
 0x8dc   : > { %2471 = vmatpush.msra.mxu1 %v1034_v8  ;;  %2494 = vmatpush.msra.mxu2 %v1035_v58 }
 0x8de   : > { %2472 = vmatpush.msra.mxu1 %v1030_v2  ;;  %2495 = vmatpush.msra.mxu2 %v1031_v10 }
 0x8e0   : > { %2473 = vmatpush.msra.mxu1 %v1026_v14  ;;  %2496 = vmatpush.msra.mxu2 %v1027_v4 }
 0x8e2   : > { %v2241_v49 = vpop.f32.mrf.mxu3 }
 0x8e3   : > { %2245 = vrot.lane.b32.xlu2 %v2241_v49, %s4079_s5  ;;  %2315 = vrot.lane.b32.xlu0 %v2311_v1, %s4078_s16  ;;  %v1028_v1 = vld [vmem:[%s4470_s17 + $0x100] sm:$0xff]  ;;  %v1029_v49 = vld [vmem:[%s4470_s17 + $0x108] sm:$0xff] }
 0x8e4   : > { %2449 = vmatpush.msrb.mxu0 %v1029_v49 }
 0x8e6   : > { %2450 = vmatpush.msrb.mxu0 %v1025_v13 }
 0x8e8   : > { %2451 = vmatpush.msrb.mxu0 %v1021_v17 }
 0x92d   : > { %v1550_v19 = vpop.permute.xlu0 %1549 }
 0x92e   : > { %1553 = vst.msk [vmem:[#allocation3] sm:$0xff] %vm1552_vm5, %v1550_v19  ;;  %v1023_v19 = vld [vmem:[%s4470_s17 + $0xd8] sm:$0xff] }
 0x92f   : > { %1624 = vst.msk [vmem:[#allocation3] sm:$0xff] %vm1623_vm6, %v1621_v18  ;;  %v1022_v18 = vld [vmem:[%s4470_s17 + $0xd0] sm:$0xff]  ;;  %2497 = vmatpush.msra.mxu2 %v1023_v19 }
 0x930   : > { %2474 = vmatpush.msra.mxu1 %v1022_v18 }
 0x935   : > { %v1692_v20 = vpop.permute.xlu0 %1691 }
 0x936   : > { %1695 = vst.msk [vmem:[#allocation3] sm:$0xff] %vm1694_vm7, %v1692_v20  ;;  %v2356_v20 = vmul.f32 %v4906_v57, %v2355_v9 }
 0x937   : > { %1766 = vst.msk [vmem:[#allocation3] sm:$0xff] %vm1765_vm8, %v1763_v22  ;;  %v1016_v22 = vld [vmem:[%s4470_s17 + $0xa0] sm:$0xff] }
 0x93d   : > { %v2246_v29 = vpop.permute.xlu2 %2245 }
 0x93e   : > { %v2319_v21 = vld [vmem:[#allocation3] sm:$0xff] }
 0x93f   : > { %2340 = vmatmul.f32.vlgmr.msrb.gmra.mxu2 %v2319_v21  ;;  %v1017_v21 = vld [vmem:[%s4470_s17 + $0xa8] sm:$0xff] }
 0x940   : > { %2452 = vmatpush.msrb.mxu0 %v1017_v21  ;;  %v4986_v21 = vld [vmem:[%s4472_s21] sm:$0xf] }
 0x945   : > { %v1966_v23 = vpop.permute.xlu1 %1965 }
 0x946   : > { %1968 = vst.msk [vmem:[#allocation3 + $0x8] sm:$0xff] %vm1410_vm3, %v1966_v23  ;;  %v1018_v23 = vld [vmem:[%s4470_s17 + $0xb0] sm:$0xff] }
 0x947   : > { %2038 = vst.msk [vmem:[#allocation3 + $0x8] sm:$0xff] %vm1481_vm4, %v2036_v24  ;;  %v1019_v24 = vld [vmem:[%s4470_s17 + $0xb8] sm:$0xff]  ;;  %2475 = vmatpush.msra.mxu1 %v1018_v23  ;;  %v2413_v23 = vperm.slane %v4986_v21, 2 }
 0x948   : > { %2498 = vmatpush.msra.mxu2 %v1019_v24 }
 0x94d   : > { %v2106_v25 = vpop.permute.xlu0 %2105  ;;  %v2176_v26 = vpop.permute.xlu1 %2175 }
 0x94e   : > { %2108 = vst.msk [vmem:[#allocation3 + $0x8] sm:$0xff] %vm1552_vm5, %v2106_v25  ;;  %v1012_v25 = vld [vmem:[%s4470_s17 + $0x80] sm:$0xff] }
 0x94f   : > { %2178 = vst.msk [vmem:[#allocation3 + $0x8] sm:$0xff] %vm1623_vm6, %v2176_v26  ;;  %v1013_v26 = vld [vmem:[%s4470_s17 + $0x88] sm:$0xff] }
 0x950   : > { %2248 = vst.msk [vmem:[#allocation3 + $0x8] sm:$0xff] %vm1694_vm7, %v2246_v29  ;;  %v1014_v29 = vld [vmem:[%s4470_s17 + $0x90] sm:$0xff]  ;;  %2453 = vmatpush.msrb.mxu0 %v1013_v26 }
 0x951   : > { %2476 = vmatpush.msra.mxu1 %v1014_v29 }
 0x955   : > { %v2316_v30 = vpop.permute.xlu0 %2315 }
 0x956   : > { %2318 = vst.msk [vmem:[#allocation3 + $0x8] sm:$0xff] %vm1765_vm8, %v2316_v30  ;;  %v1015_v30 = vld [vmem:[%s4470_s17 + $0x98] sm:$0xff] }
 0x957   : > { %2499 = vmatpush.msra.mxu2 %v1015_v30 }
 0x95d   : > { %v2320_v31 = vld [vmem:[#allocation3 + $0x8] sm:$0xff] }
 0x95e   : > { %2343 = vmatmul.f32.gmra.mxu2 %v2320_v31  ;;  %v2357_v31 = vadd.f32 %v4906_v57, %v2356_v20 }
 0x960   : > { %v4952_v41 = vsel %vm2358_vm9, %v4906_v57, %v2357_v31  ;;  %v2411_v31 = vperm.slane %v4986_v21, 0 }
 0x9c2   : > { %v2341_v27 = vpop.f32.mrf.mxu2 }
 0x9c3   : > { %v2342_v32 = vadd.f32 %v3531_v53, %v2341_v27  ;;  %v1009_v27 = vld [vmem:[%s4470_s17 + $0x68] sm:$0xff] }
 0x9c4   : > { %2454 = vmatpush.msrb.mxu0 %v1009_v27  ;;  %v1108_v27 = vld [vmem:[%s4474_s28 + $0x178] sm:$0xff] }
 0x9c5   : > { %v4876_v34 = vadd.f32 %v3627_v33, %v2342_v32  ;;  %v1010_v32 = vld [vmem:[%s4470_s17 + $0x70] sm:$0xff]  ;;  %v1011_v33 = vld [vmem:[%s4470_s17 + $0x78] sm:$0xff] }
 0x9c6   : > { %2477 = vmatpush.msra.mxu1 %v1010_v32  ;;  %2500 = vmatpush.msra.mxu2 %v1011_v33  ;;  %v2414_v33 = vperm.slane %v4986_v21, 3 }
 0x9c7   : > { %2349 = vadd.xlane.f32.xlu1 %v4876_v34  ;;  %v2362_v35 = vmul.f32 %v4876_v34, %v4876_v34 }
 0x9c9   : > { %2364 = vadd.xlane.f32.xlu2 %v2362_v35  ;;  %v1004_v35 = vld [vmem:[%s4470_s17 + $0x40] sm:$0xff] }
 0x9e1   : > { %v2344_v36 = vpop.f32.mrf.mxu2 }
 0x9e2   : > { %v2345_v37 = vadd.f32 %v3531_v53, %v2344_v36  ;;  %v1008_v53 = vld [vmem:[%s4470_s17 + $0x60] sm:$0xff]  ;;  %v1005_v36 = vld [vmem:[%s4470_s17 + $0x48] sm:$0xff] }
 0x9e3   : > { %2455 = vmatpush.msrb.mxu0 %v1005_v36  ;;  %v1091_v36 = vld [vmem:[%s4474_s28 + $0xf0] sm:$0xff] }
 0x9e4   : > { %v4882_v6 = vadd.f32 %v2345_v37, %v4558_v16  ;;  %v1052_v16 = vld [vmem:[%s4470_s17 + $0x1c0] sm:$0xff]  ;;  %v1006_v37 = vld [vmem:[%s4470_s17 + $0x50] sm:$0xff] }
 0x9e5   : > { %2420 = vmatpush.msrb.mxu3 %v1052_v16  ;;  %2478 = vmatpush.msra.mxu1 %v1006_v37  ;;  %v1003_v16 = vld [vmem:[%s4470_s17 + $0x38] sm:$0xff] }
 0x9e6   : > { %2351 = vadd.xlane.f32.xlu0 %v4882_v6  ;;  %v2363_v59 = vmul.f32 %v4882_v6, %v4882_v6  ;;  %2456 = vmatpush.msrb.mxu0 %v1001_v40  ;;  %v1107_v37 = vld [vmem:[%s4474_s28 + $0x170] sm:$0xff] }
 0x9e7   : > { %2421 = vmatpush.msrb.mxu3 %v1048_v46  ;;  %2479 = vmatpush.msra.mxu1 %v1002_v42 }
 0x9e8   : > { %2366 = vadd.xlane.f32.xlu1 %v2363_v59  ;;  %v1007_v59 = vld [vmem:[%s4470_s17 + $0x58] sm:$0xff]  ;;  %2457 = vmatpush.msrb.mxu0 %v997_v0 }
 0x9e9   : > { %2422 = vmatpush.msrb.mxu3 %v1044_v50  ;;  %2501 = vmatpush.msra.mxu2 %v1007_v59 }
 0x9ea   : > { %2480 = vmatpush.msra.mxu1 %v998_v45 }
 0x9eb   : > { %2423 = vmatpush.msrb.mxu3 %v1040_v54  ;;  %2502 = vmatpush.msra.mxu2 %v1003_v16 }
 0x9ec   : > { %2912 = vmatpush.msrb.mxu1 %v1108_v27 }
 0x9ed   : > { %2424 = vmatpush.msrb.mxu3 %v1036_v60  ;;  %2503 = vmatpush.msra.mxu2 %v999_v47 }
 0x9ee   : > { %2913 = vmatpush.msrb.mxu1 %v1107_v37  ;;  %v1086_v37 = vld [vmem:[%s4474_s28 + $0xc8] sm:$0xff] }
 0x9ef   : > { %2425 = vmatpush.msrb.mxu3 %v1032_v7 }
 0x9f1   : > { %2426 = vmatpush.msrb.mxu3 %v1028_v1 }
 0x9f3   : > { %2427 = vmatpush.msrb.mxu3 %v1024_v11 }
 0x9f5   : > { %2428 = vmatpush.msrb.mxu3 %v1020_v12 }
 0x9f7   : > { %2429 = vmatpush.msrb.mxu3 %v1016_v22 }
 0x9f9   : > { %2430 = vmatpush.msrb.mxu3 %v1012_v25 }
 0x9fb   : > { %2431 = vmatpush.msrb.mxu3 %v1008_v53  ;;  %v1092_v53 = vld [vmem:[%s4474_s28 + $0xf8] sm:$0xff] }
 0x9fc   : > { %2889 = vmatpush.msra.mxu0 %v1092_v53  ;;  %v1073_v53 = vld [vmem:[%s4474_s28 + $0x60] sm:$0xff] }
 0x9fd   : > { %2432 = vmatpush.msrb.mxu3 %v1004_v35 }
 0x9fe   : > { %2890 = vmatpush.msra.mxu0 %v1091_v36 }
 0x9ff   : > { %2433 = vmatpush.msrb.mxu3 %v1000_v38 }
 0xa01   : > { %2434 = vmatpush.msrb.mxu3 %v996_v44  ;;  %v1106_v44 = vld [vmem:[%s4474_s28 + $0x168] sm:$0xff] }
 0xa02   : > { %2914 = vmatpush.msrb.mxu1 %v1106_v44 }
 0xa3a   : > { %v2350_v43 = vpop.xlane.xlu1 %2349 }
 0xa3b   : > { %v2360_v46 = vmul.f32 %v4952_v41, %v2350_v43  ;;  %v1090_v43 = vld [vmem:[%s4474_s28 + $0xe8] sm:$0xff] }
 0xa3c   : > { %v2365_v48 = vpop.xlane.xlu2 %2364  ;;  %2891 = vmatpush.msra.mxu0 %v1090_v43 }
 0xa3d   : > { %v2370_v15 = vmul.f32 %v2360_v46, %v2360_v46  ;;  %v2368_v50 = vmul.f32 %v2365_v48, %v4952_v41  ;;  %v2374_v60 = vsub.f32 %v4876_v34, %v2360_v46  ;;  %v1076_v48 = vld [vmem:[%s4474_s28 + $0x78] sm:$0xff] }
 0xa3e   : > { %2866 = vmatpush.msra.mxu3 %v1076_v48 }
 0xa3f   : > { %v2372_v51 = vsub.f32 %v2368_v50, %v2370_v15 }
 0xa41   : > { %v2376_v28 = vadd.f32 1e-05, %v2372_v51 }
 0xa43   : > { %3603 = vrsqrt.f32 %v2376_v28  ;;  %vm2384_vm11 = vweird.f32 %v2376_v28 }
 0xa49   : > { %v3604_v52 = vpop.eup %3603 }
 0xa4a   : > { %v2379_v54 = vmul.f32 %v3604_v52, %v2376_v28  ;;  %vm2385_vm10 = vweird.f32 %v3604_v52 }
 0xa4b   : > { %vm2386_vm12 = vmor %vm2384_vm11, %vm2385_vm10 }
 0xa4c   : > { %v2380_v39 = vmul.f32 %v3604_v52, %v2379_v54  ;;  %v1089_v54 = vld [vmem:[%s4474_s28 + $0xe0] sm:$0xff] }
 0xa4d   : > { %2892 = vmatpush.msra.mxu0 %v1089_v54 }
 0xa4e   : > { %v2381_v55 = vmul.f32 0.5, %v2380_v39 }
 0xa50   : > { %v2382_v57 = vsub.f32 1.5, %v2381_v55 }
 0xa52   : > { %v2383_v56 = vmul.f32 %v3604_v52, %v2382_v57 }
 0xa54   : > { %v2387_v62 = vsel %vm2386_vm12, %v3604_v52, %v2383_v56 }
 0xa55   : > { %v2398_v3 = vmul.f32 %v2387_v62, %v2374_v60  ;;  %v1105_v62 = vld [vmem:[%s4474_s28 + $0x160] sm:$0xff] }
 0xa56   : > { %2915 = vmatpush.msrb.mxu1 %v1105_v62 }
 0xa57   : > { %v2403_v7 = vmul.f32 %v3532_v61, %v2398_v3  ;;  %v1124_v3 = vld [vmem:[%s4474_s28 + $0x1f8] sm:$0xff] }
 0xa58   : > { %2935 = vmatpush.msrb.mxu2 %v1124_v3 }
 0xa59   : > { %v2352_v63 = vpop.xlane.xlu0 %2351  ;;  %v4970_v8 = vadd.f32 %v3533_v5, %v2403_v7 }
 0xa5a   : > { %v2361_v58 = vmul.f32 %v4952_v41, %v2352_v63 }
 0xa5b   : > { %2435 = vmatmul.f32.vlgmr.msrb.gmra.mxu3 %v4970_v8  ;;  %2458 = vmatmul.f32.vlgmr.msrb.gmra.mxu0 %v4970_v8  ;;  %v2367_v34 = vpop.xlane.xlu1 %2366 }
 0xa5c   : > { %v2371_v1 = vmul.f32 %v2361_v58, %v2361_v58  ;;  %2481 = vmatmul.f32.vlgmr.msra.gmra.mxu1 %v4970_v8  ;;  %2504 = vmatmul.f32.vlgmr.msra.gmra.mxu2 %v4970_v8  ;;  %v2369_v49 = vmul.f32 %v2367_v34, %v4952_v41  ;;  %v2375_v17 = vsub.f32 %v4882_v6, %v2361_v58  ;;  %v2412_v6 = vperm.slane %v4986_v21, 1 }
 0xa5e   : > { %v2373_v2 = vsub.f32 %v2369_v49, %v2371_v1  ;;  %v1088_v1 = vld [vmem:[%s4474_s28 + $0xd8] sm:$0xff] }
 0xa5f   : > { %v1104_v49 = vld [vmem:[%s4474_s28 + $0x158] sm:$0xff]  ;;  %2893 = vmatpush.msra.mxu0 %v1088_v1 }
 0xa60   : > { %v2377_v10 = vadd.f32 1e-05, %v2373_v2  ;;  %v1123_v2 = vld [vmem:[%s4474_s28 + $0x1f0] sm:$0xff]  ;;  %2916 = vmatpush.msrb.mxu1 %v1104_v49 }
 0xa61   : > { %2936 = vmatpush.msrb.mxu2 %v1123_v2 }
 0xa62   : > { %3605 = vrsqrt.f32 %v2377_v10  ;;  %vm2394_vm14 = vweird.f32 %v2377_v10 }
 0xa68   : > { %v3606_v9 = vpop.eup %3605 }
 0xa69   : > { %v2389_v11 = vmul.f32 %v3606_v9, %v2377_v10  ;;  %vm2395_vm13 = vweird.f32 %v3606_v9 }
 0xa6a   : > { %vm2396_vm15 = vmor %vm2394_vm14, %vm2395_vm13 }
 0xa6b   : > { %v2390_v13 = vmul.f32 %v3606_v9, %v2389_v11  ;;  %v1074_v11 = vld [vmem:[%s4474_s28 + $0x68] sm:$0xff] }
 0xa6d   : > { %v2391_v14 = vmul.f32 0.5, %v2390_v13  ;;  %v1087_v13 = vld [vmem:[%s4474_s28 + $0xd0] sm:$0xff] }
 0xa6e   : > { %2894 = vmatpush.msra.mxu0 %v1087_v13 }
 0xa6f   : > { %v2392_v4 = vsub.f32 1.5, %v2391_v14 }
 0xa70   : > { %2895 = vmatpush.msra.mxu0 %v1086_v37  ;;  %v1069_v37 = vld [vmem:[%s4474_s28 + $0x40] sm:$0xff] }
 0xa71   : > { %v2393_v12 = vmul.f32 %v3606_v9, %v2392_v4 }
 0xa73   : > { %v2397_v18 = vsel %vm2396_vm15, %v3606_v9, %v2393_v12 }
 0xa74   : > { %v2399_v19 = vmul.f32 %v2397_v18, %v2375_v17 }
 0xa76   : > { %v2404_v20 = vmul.f32 %v3532_v61, %v2399_v19 }
 0xa78   : > { %v4979_v22 = vadd.f32 %v3533_v5, %v2404_v20  ;;  %v1075_v5 = vld [vmem:[%s4474_s28 + $0x70] sm:$0xff] }
 0xa79   : > { %2867 = vmatpush.msra.mxu3 %v1075_v5  ;;  %v1120_v5 = vld [vmem:[%s4474_s28 + $0x1d8] sm:$0xff] }
 0xa7a   : > { %2438 = vmatmul.f32.gmra.mxu3 %v4979_v22  ;;  %2461 = vmatmul.f32.gmra.mxu0 %v4979_v22 }
 0xa7b   : > { %2484 = vmatmul.f32.gmra.mxu1 %v4979_v22  ;;  %2507 = vmatmul.f32.gmra.mxu2 %v4979_v22 }
 0xa7c   : > { %2868 = vmatpush.msra.mxu3 %v1074_v11  ;;  %v1100_v11 = vld [vmem:[%s4474_s28 + $0x138] sm:$0xff] }
 0xa7e   : > { %2869 = vmatpush.msra.mxu3 %v1073_v53  ;;  %v1118_v53 = vld [vmem:[%s4474_s28 + $0x1c8] sm:$0xff] }
 0xad8   : > { %v2459_v24 = vpop.f32.mrf.mxu0 }
 0xad9   : > { %v4992_v25 = vadd.f32 %v2459_v24, %v2412_v6  ;;  %v2482_v26 = vpop.f32.mrf.mxu1  ;;  %v1103_v24 = vld [vmem:[%s4474_s28 + $0x150] sm:$0xff] }
 0xada   : > { %v4996_v29 = vadd.f32 %v2482_v26, %v2413_v23  ;;  %v1122_v26 = vld [vmem:[%s4474_s28 + $0x1e8] sm:$0xff]  ;;  %2917 = vmatpush.msrb.mxu1 %v1103_v24 }
 0xadb   : > { %v4999_v30 = vmul.f32 0.70710677, %v4992_v25  ;;  %2937 = vmatpush.msrb.mxu2 %v1122_v26  ;;  %v1099_v26 = vld [vmem:[%s4474_s28 + $0x130] sm:$0xff] }
 0xadc   : > { %v5005_v32 = vmul.f32 0.70710677, %v4996_v29 }
 0xadd   : > { %v2567_v35 = vmul.f32 %v4999_v30, %v4999_v30 }
 0xade   : > { %v2607_v59 = vmul.f32 %v5005_v32, %v5005_v32  ;;  %v2436_v38 = vpop.f32.mrf.mxu3 }
 0xadf   : > { %v5014_v40 = vmin.f32 %v2567_v35, 16.0  ;;  %v5018_v42 = vadd.f32 %v2436_v38, %v2411_v31  ;;  %v2505_v16 = vpop.f32.mrf.mxu2  ;;  %v1121_v38 = vld [vmem:[%s4474_s28 + $0x1e0] sm:$0xff] }
 0xae0   : > { %v5022_v0 = vmin.f32 %v2607_v59, 16.0  ;;  %v5026_v45 = vadd.f32 %v2505_v16, %v2414_v33  ;;  %v1102_v59 = vld [vmem:[%s4474_s28 + $0x148] sm:$0xff]  ;;  %2938 = vmatpush.msrb.mxu2 %v1121_v38 }
 0xae1   : > { %v2569_v46 = vmul.f32 2.1237322e-06, %v5014_v40  ;;  %v2580_v47 = vmul.f32 3.8918573e-05, %v5014_v40  ;;  %v5034_v51 = vmul.f32 0.70710677, %v5018_v42  ;;  %2918 = vmatpush.msrb.mxu1 %v1102_v59 }
 0xae2   : > { %v2609_v15 = vmul.f32 2.1237322e-06, %v5022_v0  ;;  %v2620_v50 = vmul.f32 3.8918573e-05, %v5022_v0  ;;  %v5040_v56 = vmul.f32 0.70710677, %v5026_v45  ;;  %2939 = vmatpush.msrb.mxu2 %v1120_v5 }
 0xae3   : > { %v2570_v28 = vadd.f32 0.00028619796, %v2569_v46  ;;  %v2581_v52 = vadd.f32 0.001143296, %v2580_v47  ;;  %v2527_v57 = vmul.f32 %v5034_v51, %v5034_v51 }
 0xae4   : > { %v2610_v39 = vadd.f32 0.00028619796, %v2609_v15  ;;  %v2621_v55 = vadd.f32 0.001143296, %v2620_v50  ;;  %v2647_v34 = vmul.f32 %v5040_v56, %v5040_v56 }
 0xae5   : > { %v2571_v60 = vmul.f32 %v2570_v28, %v5014_v40  ;;  %v2582_v61 = vmul.f32 %v2581_v52, %v5014_v40  ;;  %v5049_v58 = vmin.f32 %v2527_v57, 16.0  ;;  %v1101_v57 = vld [vmem:[%s4474_s28 + $0x140] sm:$0xff] }
 0xae6   : > { %v2611_v7 = vmul.f32 %v2610_v39, %v5022_v0  ;;  %v2622_v63 = vmul.f32 %v2621_v55, %v5022_v0  ;;  %v5062_v20 = vmin.f32 %v2647_v34, 16.0  ;;  %v1072_v39 = vld [vmem:[%s4474_s28 + $0x58] sm:$0xff]  ;;  %v1085_v55 = vld [vmem:[%s4474_s28 + $0xc0] sm:$0xff]  ;;  %2919 = vmatpush.msrb.mxu1 %v1101_v57 }
 0xae7   : > { %v2572_v10 = vadd.f32 0.0036580483, %v2571_v60  ;;  %v2583_v9 = vadd.f32 0.014752088, %v2582_v61  ;;  %v2529_v12 = vmul.f32 2.1237322e-06, %v5049_v58  ;;  %2870 = vmatpush.msra.mxu3 %v1072_v39  ;;  %2896 = vmatpush.msra.mxu0 %v1085_v55 }
 0xae8   : > { %v2612_v14 = vadd.f32 0.0036580483, %v2611_v7  ;;  %v2623_v4 = vadd.f32 0.014752088, %v2622_v63  ;;  %v2540_v19 = vmul.f32 3.8918573e-05, %v5049_v58  ;;  %2920 = vmatpush.msrb.mxu1 %v1100_v11 }
 0xae9   : > { %v2573_v17 = vmul.f32 %v2572_v10, %v5014_v40  ;;  %v2584_v18 = vmul.f32 %v2583_v9, %v5014_v40  ;;  %v2530_v36 = vadd.f32 0.00028619796, %v2529_v12  ;;  %v2649_v15 = vmul.f32 2.1237322e-06, %v5062_v20  ;;  %v1071_v7 = vld [vmem:[%s4474_s28 + $0x50] sm:$0xff]  ;;  %v1084_v9 = vld [vmem:[%s4474_s28 + $0xb8] sm:$0xff] }
 0xaea   : > { %v2613_v27 = vmul.f32 %v2612_v14, %v5022_v0  ;;  %v2624_v35 = vmul.f32 %v2623_v4, %v5022_v0  ;;  %v2541_v44 = vadd.f32 0.001143296, %v2540_v19  ;;  %v2660_v54 = vmul.f32 3.8918573e-05, %v5062_v20  ;;  %2871 = vmatpush.msra.mxu3 %v1071_v7  ;;  %2897 = vmatpush.msra.mxu0 %v1084_v9  ;;  %v1119_v12 = vld [vmem:[%s4474_s28 + $0x1d0] sm:$0xff]  ;;  %v1114_v11 = vld [vmem:[%s4474_s28 + $0x1a8] sm:$0xff] }
 0xaeb   : > { %v2574_v16 = vadd.f32 0.05243302, %v2573_v17  ;;  %v2585_v43 = vadd.f32 0.112945676, %v2584_v18  ;;  %v2531_v48 = vmul.f32 %v2530_v36, %v5049_v58  ;;  %v2650_v3 = vadd.f32 0.00028619796, %v2649_v15  ;;  %2940 = vmatpush.msrb.mxu2 %v1119_v12  ;;  %2921 = vmatpush.msrb.mxu1 %v1099_v26 }
 0xaec   : > { %v2614_v46 = vadd.f32 0.05243302, %v2613_v27  ;;  %v2625_v47 = vadd.f32 0.112945676, %v2624_v35  ;;  %v2542_v52 = vmul.f32 %v2541_v44, %v5049_v58  ;;  %v2661_v4 = vadd.f32 0.001143296, %v2660_v54 }
 0xaed   : > { %v2575_v50 = vmul.f32 %v2574_v16, %v5014_v40  ;;  %v2586_v28 = vmul.f32 %v2585_v43, %v5014_v40  ;;  %v2532_v62 = vadd.f32 0.0036580483, %v2531_v48  ;;  %v2651_v10 = vmul.f32 %v2650_v3, %v5062_v20  ;;  %v1070_v17 = vld [vmem:[%s4474_s28 + $0x48] sm:$0xff]  ;;  %v1083_v18 = vld [vmem:[%s4474_s28 + $0xb0] sm:$0xff]  ;;  %2941 = vmatpush.msrb.mxu2 %v1118_v53  ;;  %v1117_v44 = vld [vmem:[%s4474_s28 + $0x1c0] sm:$0xff] }
 0xaee   : > { %v2615_v60 = vmul.f32 %v2614_v46, %v5022_v0  ;;  %v2626_v61 = vmul.f32 %v2625_v47, %v5022_v0  ;;  %v2543_v1 = vadd.f32 0.014752088, %v2542_v52  ;;  %2872 = vmatpush.msra.mxu3 %v1070_v17  ;;  %2898 = vmatpush.msra.mxu0 %v1083_v18  ;;  %v2662_v16 = vmul.f32 %v2661_v4, %v5062_v20  ;;  %v1082_v43 = vld [vmem:[%s4474_s28 + $0xa8] sm:$0xff]  ;;  %v1068_v47 = vld [vmem:[%s4474_s28 + $0x38] sm:$0xff]  ;;  %v1081_v48 = vld [vmem:[%s4474_s28 + $0xa0] sm:$0xff] }
 0xaef   : > { %v2576_v63 = vadd.f32 0.18741608, %v2575_v50  ;;  %v2587_v34 = vadd.f32 0.4994258, %v2586_v28  ;;  %v2533_v24 = vmul.f32 %v2532_v62, %v5049_v58  ;;  %v2652_v36 = vadd.f32 0.0036580483, %v2651_v10  ;;  %2942 = vmatpush.msrb.mxu2 %v1117_v44 }
 0xaf0   : > { %v2616_v49 = vadd.f32 0.18741608, %v2615_v60  ;;  %v2627_v2 = vadd.f32 0.4994258, %v2626_v61  ;;  %v2544_v14 = vmul.f32 %v2543_v1, %v5049_v58  ;;  %2873 = vmatpush.msra.mxu3 %v1069_v37  ;;  %2899 = vmatpush.msra.mxu0 %v1082_v43  ;;  %v1097_v15 = vld [vmem:[%s4474_s28 + $0x120] sm:$0xff]  ;;  %v1116_v28 = vld [vmem:[%s4474_s28 + $0x1b8] sm:$0xff] }
 0xaf1   : > { %v2588_v13 = vmul.f32 %v2587_v34, %v5014_v40  ;;  %v2577_v27 = vmul.f32 %v2576_v63, %v5014_v40  ;;  %v1098_v40 = vld [vmem:[%s4474_s28 + $0x128] sm:$0xff]  ;;  %v2534_v50 = vadd.f32 0.05243302, %v2533_v24  ;;  %v1067_v52 = vld [vmem:[%s4474_s28 + $0x30] sm:$0xff]  ;;  %v1080_v54 = vld [vmem:[%s4474_s28 + $0x98] sm:$0xff]  ;;  %v2653_v57 = vmul.f32 %v2652_v36, %v5062_v20  ;;  %2943 = vmatpush.msrb.mxu2 %v1116_v28 }
 0xaf2   : > { %v2628_v19 = vmul.f32 %v2627_v2, %v5022_v0  ;;  %v2545_v38 = vadd.f32 0.112945676, %v2544_v14  ;;  %v2617_v46 = vmul.f32 %v2616_v49, %v5022_v0  ;;  %2922 = vmatpush.msrb.mxu1 %v1098_v40  ;;  %2874 = vmatpush.msra.mxu3 %v1068_v47  ;;  %v2663_v60 = vadd.f32 0.014752088, %v2662_v16  ;;  %v1096_v62 = vld [vmem:[%s4474_s28 + $0x118] sm:$0xff]  ;;  %v1115_v63 = vld [vmem:[%s4474_s28 + $0x1b0] sm:$0xff] }
 0xaf3   : > { %v5098_v35 = vadd.f32 1.0, %v2588_v13  ;;  %v2578_v39 = vadd.f32 1.1283791, %v2577_v27  ;;  %2900 = vmatpush.msra.mxu0 %v1081_v48  ;;  %v5120_v3 = vmul.f32 0.5, %v4992_v25  ;;  %v1066_v34 = vld [vmem:[%s4474_s28 + $0x28] sm:$0xff]  ;;  %v1079_v1 = vld [vmem:[%s4474_s28 + $0x90] sm:$0xff]  ;;  %v2535_v2 = vmul.f32 %v2534_v50, %v5049_v58  ;;  %2944 = vmatpush.msrb.mxu2 %v1115_v63 }
 0xaf4   : > { %v5101_v59 = vadd.f32 1.0, %v2628_v19  ;;  %2923 = vmatpush.msrb.mxu1 %v1097_v15  ;;  %v2546_v0 = vmul.f32 %v2545_v38, %v5049_v58  ;;  %2875 = vmatpush.msra.mxu3 %v1067_v52  ;;  %v2618_v5 = vadd.f32 1.1283791, %v2617_v46  ;;  %v5130_v49 = vmul.f32 0.5, %v4996_v29  ;;  %v1095_v9 = vld [vmem:[%s4474_s28 + $0x110] sm:$0xff]  ;;  %v1078_v17 = vld [vmem:[%s4474_s28 + $0x88] sm:$0xff] }
 0xaf5   : > { %3607 = vrcp.f32 %v5098_v35  ;;  %2901 = vmatpush.msra.mxu0 %v1080_v54  ;;  %v2664_v25 = vmul.f32 %v2663_v60, %v5062_v20  ;;  %v5140_v14 = vmul.f32 %v2578_v39, %v4999_v30  ;;  %v2599_v29 = vand.u32 2147483647, %v5098_v35  ;;  %2945 = vmatpush.msrb.mxu2 %v1114_v11  ;;  %v1094_v53 = vld [vmem:[%s4474_s28 + $0x108] sm:$0xff]  ;;  %v1064_v27 = vld [vmem:[%s4474_s28 + $0x18] sm:$0xff]  ;;  %v1077_v16 = vld [vmem:[%s4474_s28 + $0x80] sm:$0xff] }
 0xaf6   : > { %3609 = vrcp.f32 %v5101_v59  ;;  %2924 = vmatpush.msrb.mxu1 %v1096_v62  ;;  %v2547_v10 = vadd.f32 0.4994258, %v2546_v0  ;;  %2876 = vmatpush.msra.mxu3 %v1066_v34  ;;  %v2639_v4 = vand.u32 2147483647, %v5101_v59  ;;  %v2601_v30 = vand.u32 2147483648, %v5098_v35  ;;  %v1093_v43 = vld [vmem:[%s4474_s28 + $0x100] sm:$0xff] }
 0xaf7   : > { %v2462_v55 = vpop.f32.mrf.mxu0  ;;  %2902 = vmatpush.msra.mxu0 %v1079_v1  ;;  %v2654_v26 = vadd.f32 0.05243302, %v2653_v57  ;;  %vm2595_vm0 = vweird.f32 %v5098_v35  ;;  %v2665_v37 = vadd.f32 0.112945676, %v2664_v25  ;;  %v2619_v44 = vmul.f32 %v2618_v5, %v5005_v32  ;;  %v1112_v48 = vld [vmem:[%s4474_s28 + $0x198] sm:$0xff]  ;;  %v1063_v15 = vld [vmem:[%s4474_s28 + $0x10] sm:$0xff] }
 0xaf8   : > { %v2485_v61 = vpop.f32.mrf.mxu1  ;;  %v5124_v7 = vadd.f32 %v2462_v55, %v2412_v6  ;;  %v1065_v6 = vld [vmem:[%s4474_s28 + $0x20] sm:$0xff]  ;;  %2925 = vmatpush.msrb.mxu1 %v1095_v9  ;;  %v2548_v24 = vmul.f32 %v2547_v10, %v5049_v58  ;;  %v2536_v46 = vadd.f32 0.18741608, %v2535_v2  ;;  %v2641_v28 = vand.u32 2147483648, %v5101_v59  ;;  %v1111_v32 = vld [vmem:[%s4474_s28 + $0x190] sm:$0xff]  ;;  %v1062_v39 = vld [vmem:[%s4474_s28 + $0x8] sm:$0xff] }
 0xaf9   : > { %v5146_v12 = vadd.f32 %v2485_v61, %v2413_v23  ;;  %2877 = vmatpush.msra.mxu3 %v1065_v6  ;;  %v1113_v23 = vld [vmem:[%s4474_s28 + $0x1a0] sm:$0xff]  ;;  %2903 = vmatpush.msra.mxu0 %v1078_v17  ;;  %v2666_v52 = vmul.f32 %v2665_v37, %v5062_v20  ;;  %v2655_v0 = vmul.f32 %v2654_v26, %v5062_v20  ;;  %v1110_v62 = vld [vmem:[%s4474_s28 + $0x188] sm:$0xff]  ;;  %vm2635_vm3 = vweird.f32 %v5101_v59 }
 0xafa   : > { %v5162_v38 = vmul.f32 0.70710677, %v5124_v7  ;;  %2926 = vmatpush.msrb.mxu1 %v1094_v53  ;;  %v5167_v47 = vadd.f32 1.0, %v2548_v24  ;;  %2946 = vmatpush.msrb.mxu2 %v1113_v23  ;;  %v1061_v5 = vld [vmem:[%s4474_s28] sm:$0xff]  ;;  %v2537_v34 = vmul.f32 %v2536_v46, %v5049_v58  ;;  %vm2600_vm5 = vcmp.eq.f32.partialorder %v2599_v29, 8.507059e+37 }
 0xafb   : > { %v5137_v13 = vpop.eup %3607  ;;  %2878 = vmatpush.msra.mxu3 %v1064_v27  ;;  %v5174_v54 = vmul.f32 0.70710677, %v5146_v12  ;;  %2904 = vmatpush.msra.mxu0 %v1077_v16  ;;  %v2667_v60 = vadd.f32 0.4994258, %v2666_v52  ;;  %v2602_v2 = vor.u32 1.1754944e-38, %v2601_v30  ;;  %v1109_v9 = vld [vmem:[%s4474_s28 + $0x180] sm:$0xff] }
 0xafc   : > { %v5149_v18 = vpop.eup %3609  ;;  %v2591_v19 = vmul.f32 %v5137_v13, %v5098_v35  ;;  %2927 = vmatpush.msrb.mxu1 %v1093_v43  ;;  %vm2596_vm1 = vweird.f32 %v5137_v13  ;;  %3611 = vrcp.f32 %v5167_v47  ;;  %2947 = vmatpush.msrb.mxu2 %v1112_v48  ;;  %v2727_v61 = vmul.f32 %v5162_v38, %v5162_v38 }
 0xafd   : > { %v2631_v36 = vmul.f32 %v5149_v18, %v5101_v59  ;;  %2879 = vmatpush.msra.mxu3 %v1063_v15  ;;  %vm2636_vm2 = vweird.f32 %v5149_v18  ;;  %v2767_v1 = vmul.f32 %v5174_v54, %v5174_v54  ;;  %vm2597_vm4 = vmor %vm2595_vm0, %vm2596_vm1  ;;  %v2668_v25 = vmul.f32 %v2667_v60, %v5062_v20  ;;  %v2439_v30 = vpop.f32.mrf.mxu3 }
 0xafe   : > { %v2592_v40 = vsub.f32 1.0, %v2591_v19  ;;  %2948 = vmatpush.msrb.mxu2 %v1111_v32  ;;  %vm2637_vm6 = vmor %vm2635_vm3, %vm2636_vm2  ;;  %vm2640_vm7 = vcmp.eq.f32.partialorder %v2639_v4, 8.507059e+37  ;;  %v2642_v58 = vor.u32 1.1754944e-38, %v2641_v28  ;;  %v2656_v6 = vadd.f32 0.18741608, %v2655_v0  ;;  %v2508_v24 = vpop.f32.mrf.mxu2 }
 0xaff   : > { %v2632_v50 = vsub.f32 1.0, %v2631_v36  ;;  %2880 = vmatpush.msra.mxu3 %v1062_v39  ;;  %v5206_v17 = vadd.f32 1.0, %v2668_v25  ;;  %v5208_v19 = vmin.f32 %v2727_v61, 16.0  ;;  %v2538_v23 = vadd.f32 1.1283791, %v2537_v34 }
 0xb00   : > { %v2593_v55 = vmul.f32 %v5137_v13, %v2592_v40  ;;  %2949 = vmatpush.msrb.mxu2 %v1110_v62  ;;  %v5211_v59 = vmin.f32 %v2767_v1, 16.0  ;;  %v5214_v27 = vmul.f32 0.5, %v5018_v42  ;;  %v2657_v37 = vmul.f32 %v2656_v6, %v5062_v20 }
 0xb01   : > { %v2633_v57 = vmul.f32 %v5149_v18, %v2632_v50  ;;  %2881 = vmatpush.msra.mxu3 %v1061_v5  ;;  %3613 = vrcp.f32 %v5206_v17  ;;  %v5221_v16 = vadd.f32 %v2439_v30, %v2411_v31  ;;  %v2561_v42 = vand.u32 2147483648, %v5167_v47 }
 0xb02   : > { %v2594_v63 = vadd.f32 %v5137_v13, %v2593_v55  ;;  %2950 = vmatpush.msrb.mxu2 %v1109_v9  ;;  %v2539_v48 = vmul.f32 %v2538_v23, %v5034_v51  ;;  %vm2555_vm8 = vweird.f32 %v5167_v47  ;;  %v2769_v20 = vmul.f32 2.1237322e-06, %v5211_v59 }
 0xb03   : > { %v2634_v10 = vadd.f32 %v5149_v18, %v2633_v57  ;;  %v2559_v21 = vand.u32 2147483647, %v5167_v47  ;;  %v2658_v50 = vadd.f32 1.1283791, %v2657_v37  ;;  %v5235_v28 = vmul.f32 0.70710677, %v5221_v16 }
 0xb04   : > { %v2598_v11 = vsel %vm2597_vm4, %v5137_v13, %v2594_v63  ;;  %v3612_v13 = vpop.eup %3611  ;;  %v2562_v55 = vor.u32 1.1754944e-38, %v2561_v42  ;;  %v2770_v60 = vadd.f32 0.00028619796, %v2769_v20  ;;  %v2740_v5 = vmul.f32 3.8918573e-05, %v5208_v19 }
 0xb05   : > { %v2603_v35 = vsel %vm2600_vm5, %v2602_v2, %v2598_v11  ;;  %v2638_v29 = vsel %vm2637_vm6, %v5149_v18, %v2634_v10  ;;  %v2551_v18 = vmul.f32 %v3612_v13, %v5167_v47  ;;  %vm2556_vm9 = vweird.f32 %v3612_v13 }
 0xb06   : > { %v2604_v26 = vmul.f32 %v2603_v35, %v5140_v14  ;;  %v2643_v53 = vsel %vm2640_vm7, %v2642_v58, %v2638_v29  ;;  %v5225_v14 = vadd.f32 %v2508_v24, %v2414_v33  ;;  %vm2557_vm10 = vmor %vm2555_vm8, %vm2556_vm9  ;;  %vm2560_vm11 = vcmp.eq.f32.partialorder %v2559_v21, 8.507059e+37 }
 0xb07   : > { %v2644_v4 = vmul.f32 %v2643_v53, %v2619_v44  ;;  %v2552_v40 = vsub.f32 1.0, %v2551_v18  ;;  %v2729_v44 = vmul.f32 2.1237322e-06, %v5208_v19  ;;  %v3614_v32 = vpop.eup %3613  ;;  %v2681_v10 = vand.u32 2147483648, %v5206_v17 }
 0xb08   : > { %v3367_v36 = vclamps-f32 %v2604_v26, 1.0  ;;  %v5238_v52 = vmul.f32 0.70710677, %v5225_v14  ;;  %v2671_v57 = vmul.f32 %v3614_v32, %v5206_v17  ;;  %v2741_v9 = vadd.f32 0.001143296, %v2740_v5 }
 0xb09   : > { %v3368_v43 = vclamps-f32 %v2644_v4, 1.0  ;;  %v2553_v31 = vmul.f32 %v3612_v13, %v2552_v40  ;;  %v2730_v0 = vadd.f32 0.00028619796, %v2729_v44  ;;  %vm2676_vm12 = vweird.f32 %v3614_v32 }
 0xb0a   : > { %v2848_v46 = vadd.f32 1.0, %v3367_v36  ;;  %v2807_v61 = vmul.f32 %v5238_v52, %v5238_v52  ;;  %v2672_v47 = vsub.f32 1.0, %v2671_v57  ;;  %v2771_v58 = vmul.f32 %v2770_v60, %v5211_v59 }
 0xb0b   : > { %v2849_v15 = vadd.f32 1.0, %v3368_v43  ;;  %v2554_v39 = vadd.f32 %v3612_v13, %v2553_v31  ;;  %v2731_v25 = vmul.f32 %v2730_v0, %v5208_v19  ;;  %v2780_v6 = vmul.f32 3.8918573e-05, %v5211_v59 }
 0xb0c   : > { %v2856_v33 = vmul.f32 %v2848_v46, %v5120_v3  ;;  %v2687_v3 = vmul.f32 %v5235_v28, %v5235_v28  ;;  %v5252_v1 = vmin.f32 %v2807_v61, 16.0  ;;  %v2673_v11 = vmul.f32 %v3614_v32, %v2672_v47 }
 0xb0d   : > { %v2857_v51 = vmul.f32 %v2849_v15, %v5130_v49  ;;  %v2558_v62 = vsel %vm2557_vm10, %v3612_v13, %v2554_v39  ;;  %v2679_v49 = vand.u32 2147483647, %v5206_v17  ;;  %v2659_v29 = vmul.f32 %v2658_v50, %v5040_v56 }
 0xb0e   : > { %2905 = vmatmul.f32.vlgmr.msra.gmra.mxu0 %v2856_v33  ;;  %v2563_v63 = vsel %vm2560_vm11, %v2562_v55, %v2558_v62  ;;  %v5250_v34 = vmin.f32 %v2687_v3, 16.0  ;;  %vm2675_vm13 = vweird.f32 %v5206_v17  ;;  %v2742_v30 = vmul.f32 %v2741_v9, %v5208_v19 }
 0xb0f   : > { %2928 = vmatmul.f32.vlgmr.msrb.gmra.mxu1 %v2857_v51  ;;  %v2564_v2 = vmul.f32 %v2563_v63, %v2539_v48  ;;  %v2674_v24 = vadd.f32 %v3614_v32, %v2673_v11  ;;  %v2809_v26 = vmul.f32 2.1237322e-06, %v5252_v1  ;;  %v2781_v53 = vadd.f32 0.001143296, %v2780_v6  ;;  %vm2677_vm14 = vmor %vm2675_vm13, %vm2676_vm12 }
 0xb10   : > { %v2689_v13 = vmul.f32 2.1237322e-06, %v5250_v34  ;;  %v2682_v4 = vor.u32 1.1754944e-38, %v2681_v10  ;;  %v2732_v18 = vadd.f32 0.0036580483, %v2731_v25  ;;  %vm2680_vm15 = vcmp.eq.f32.partialorder %v2679_v49, 8.507059e+37 }
 0xb11   : > { %v3366_v35 = vclamps-f32 %v2564_v2, 1.0  ;;  %v2743_v36 = vadd.f32 0.014752088, %v2742_v30  ;;  %v2678_v37 = vsel %vm2677_vm14, %v3614_v32, %v2674_v24  ;;  %v2772_v43 = vadd.f32 0.0036580483, %v2771_v58 }
 0xb12   : > { %v2782_v56 = vmul.f32 %v2781_v53, %v5211_v59  ;;  %v2683_v40 = vsel %vm2680_vm15, %v2682_v4, %v2678_v37  ;;  %v2690_v44 = vadd.f32 0.00028619796, %v2689_v13  ;;  %v2810_v46 = vadd.f32 0.00028619796, %v2809_v26 }
 0xb13   : > { %v2847_v23 = vadd.f32 1.0, %v3366_v35  ;;  %v2684_v42 = vmul.f32 %v2683_v40, %v2659_v29  ;;  %v2744_v48 = vmul.f32 %v2743_v36, %v5208_v19  ;;  %v2733_v20 = vmul.f32 %v2732_v18, %v5208_v19 }
 0xb14   : > { %v2783_v15 = vadd.f32 0.014752088, %v2782_v56  ;;  %v2700_v31 = vmul.f32 3.8918573e-05, %v5250_v34  ;;  %v2773_v33 = vmul.f32 %v2772_v43, %v5211_v59  ;;  %v2514_v32 = vmul.f32 0.5, %v5026_v45 }
 0xb15   : > { %v2855_v17 = vmul.f32 %v2847_v23, %v5214_v27  ;;  %v3369_v21 = vclamps-f32 %v2684_v42, 1.0  ;;  %v2745_v50 = vadd.f32 0.112945676, %v2744_v48  ;;  %v2820_v39 = vmul.f32 3.8918573e-05, %v5252_v1 }
 0xb16   : > { %v2784_v27 = vmul.f32 %v2783_v15, %v5211_v59  ;;  %v2701_v51 = vadd.f32 0.001143296, %v2700_v31  ;;  %v2691_v0 = vmul.f32 %v2690_v44, %v5250_v34  ;;  %v2811_v57 = vmul.f32 %v2810_v46, %v5252_v1 }
 0xb17   : > { %2882 = vmatmul.f32.vlgmr.msra.gmra.mxu3 %v2855_v17  ;;  %v2850_v55 = vadd.f32 1.0, %v3369_v21  ;;  %v2746_v60 = vmul.f32 %v2745_v50, %v5208_v19  ;;  %v2734_v3 = vadd.f32 0.05243302, %v2733_v20  ;;  %v2821_v49 = vadd.f32 0.001143296, %v2820_v39 }
 0xb18   : > { %v2785_v61 = vadd.f32 0.112945676, %v2784_v27  ;;  %v2702_v62 = vmul.f32 %v2701_v51, %v5250_v34  ;;  %v2774_v63 = vadd.f32 0.05243302, %v2773_v33  ;;  %v2692_v25 = vadd.f32 0.0036580483, %v2691_v0 }
 0xb19   : > { %v2858_v5 = vmul.f32 %v2850_v55, %v2514_v32  ;;  %v2747_v45 = vadd.f32 0.4994258, %v2746_v60  ;;  %v2822_v10 = vmul.f32 %v2821_v49, %v5252_v1  ;;  %v2812_v9 = vadd.f32 0.0036580483, %v2811_v57 }
 0xb1a   : > { %v2786_v47 = vmul.f32 %v2785_v61, %v5211_v59  ;;  %v2703_v2 = vadd.f32 0.014752088, %v2702_v62  ;;  %v2735_v58 = vmul.f32 %v2734_v3, %v5208_v19  ;;  %v2775_v30 = vmul.f32 %v2774_v63, %v5211_v59 }
 0xb1b   : > { %2951 = vmatmul.f32.vlgmr.msrb.gmra.mxu2 %v2858_v5  ;;  %v2748_v11 = vmul.f32 %v2747_v45, %v5208_v19  ;;  %v2823_v29 = vadd.f32 0.014752088, %v2822_v10  ;;  %v2693_v23 = vmul.f32 %v2692_v25, %v5250_v34  ;;  %v2813_v4 = vmul.f32 %v2812_v9, %v5252_v1 }
 0xb1c   : > { %v2787_v6 = vadd.f32 0.4994258, %v2786_v47  ;;  %v2704_v35 = vmul.f32 %v2703_v2, %v5250_v34  ;;  %v2736_v18 = vadd.f32 0.18741608, %v2735_v58  ;;  %v2776_v43 = vadd.f32 0.18741608, %v2775_v30 }
 0xb1d   : > { %v2749_v24 = vadd.f32 1.0, %v2748_v11  ;;  %v2824_v53 = vmul.f32 %v2823_v29, %v5252_v1  ;;  %v2694_v17 = vadd.f32 0.05243302, %v2693_v23  ;;  %v2814_v40 = vadd.f32 0.05243302, %v2813_v4 }
 0xb1e   : > { %v2788_v13 = vmul.f32 %v2787_v6, %v5211_v59  ;;  %v2705_v26 = vadd.f32 0.112945676, %v2704_v35  ;;  %v2737_v46 = vmul.f32 %v2736_v18, %v5208_v19  ;;  %v2777_v20 = vmul.f32 %v2776_v43, %v5211_v59 }
 0xb1f   : > { %3615 = vrcp.f32 %v2749_v24  ;;  %v2825_v56 = vadd.f32 0.112945676, %v2824_v53  ;;  %v2695_v33 = vmul.f32 %v2694_v17, %v5250_v34  ;;  %v2815_v50 = vmul.f32 %v2814_v40, %v5252_v1 }
 0xb20   : > { %v2789_v36 = vadd.f32 1.0, %v2788_v13  ;;  %v2706_v37 = vmul.f32 %v2705_v26, %v5250_v34  ;;  %v2738_v39 = vadd.f32 1.1283791, %v2737_v46  ;;  %v2778_v0 = vadd.f32 1.1283791, %v2777_v20 }
 0xb21   : > { %v2826_v44 = vmul.f32 %v2825_v56, %v5252_v1  ;;  %v2761_v19 = vand.u32 2147483648, %v2749_v24  ;;  %v2759_v60 = vand.u32 2147483647, %v2749_v24  ;;  %v2696_v61 = vadd.f32 0.18741608, %v2695_v33 }
 0xb22   : > { %3617 = vrcp.f32 %v2789_v36  ;;  %v2707_v42 = vadd.f32 0.4994258, %v2706_v37  ;;  %v2816_v62 = vadd.f32 0.18741608, %v2815_v50  ;;  %vm2755_vm1 = vweird.f32 %v2749_v24 }
 0xb23   : > { %v2827_v31 = vadd.f32 0.4994258, %v2826_v44  ;;  %v2801_v63 = vand.u32 2147483648, %v2789_v36  ;;  %v2762_v45 = vor.u32 1.1754944e-38, %v2761_v19  ;;  %v2799_v2 = vand.u32 2147483647, %v2789_v36 }
 0xb24   : > { %v2708_v15 = vmul.f32 %v2707_v42, %v5250_v34  ;;  %v2739_v10 = vmul.f32 %v2738_v39, %v5162_v38  ;;  %vm2760_vm4 = vcmp.eq.f32.partialorder %v2759_v60, 8.507059e+37  ;;  %v2697_v11 = vmul.f32 %v2696_v61, %v5250_v34 }
 0xb25   : > { %v3616_v48 = vpop.eup %3615  ;;  %v2828_v27 = vmul.f32 %v2827_v31, %v5252_v1  ;;  %vm2795_vm5 = vweird.f32 %v2789_v36  ;;  %v2516_v35 = vmul.f32 0.5, %v5124_v7  ;;  %v2802_v30 = vor.u32 1.1754944e-38, %v2801_v63 }
 0xb26   : > { %v2751_v21 = vmul.f32 %v3616_v48, %v2749_v24  ;;  %v5293_v32 = vadd.f32 1.0, %v2708_v15  ;;  %vm2756_vm0 = vweird.f32 %v3616_v48  ;;  %v2779_v13 = vmul.f32 %v2778_v0, %v5174_v54 }
 0xb27   : > { %v5297_v3 = vadd.f32 1.0, %v2828_v27  ;;  %vm2757_vm2 = vmor %vm2755_vm1, %vm2756_vm0  ;;  %v2817_v26 = vmul.f32 %v2816_v62, %v5252_v1  ;;  %vm2800_vm7 = vcmp.eq.f32.partialorder %v2799_v2, 8.507059e+37  ;;  %v2698_v7 = vadd.f32 1.1283791, %v2697_v11 }
 0xb28   : > { %v3618_v51 = vpop.eup %3617  ;;  %v2752_v55 = vsub.f32 1.0, %v2751_v21  ;;  %3619 = vrcp.f32 %v5293_v32  ;;  %v2721_v18 = vand.u32 2147483648, %v5293_v32  ;;  %v2719_v54 = vand.u32 2147483647, %v5293_v32 }
 0xb29   : > { %v2791_v57 = vmul.f32 %v3618_v51, %v2789_v36  ;;  %3621 = vrcp.f32 %v5297_v3  ;;  %vm2796_vm3 = vweird.f32 %v3618_v51  ;;  %v2517_v36 = vmul.f32 0.5, %v5146_v12 }
 0xb2a   : > { %v2753_v59 = vmul.f32 %v3616_v48, %v2752_v55  ;;  %vm2797_vm6 = vmor %vm2795_vm5, %vm2796_vm3  ;;  %v2818_v1 = vadd.f32 1.1283791, %v2817_v26  ;;  %vm2715_vm9 = vweird.f32 %v5293_v32  ;;  %v2841_v20 = vand.u32 2147483648, %v5297_v3 }
 0xb2b   : > { %v2792_v49 = vsub.f32 1.0, %v2791_v57  ;;  %v2839_v31 = vand.u32 2147483647, %v5297_v3  ;;  %v2699_v21 = vmul.f32 %v2698_v7, %v5235_v28  ;;  %vm2720_vm12 = vcmp.eq.f32.partialorder %v2719_v54, 8.507059e+37 }
 0xb2c   : > { %v2754_v5 = vadd.f32 %v3616_v48, %v2753_v59  ;;  %vm2835_vm13 = vweird.f32 %v5297_v3  ;;  %v2842_v39 = vor.u32 1.1754944e-38, %v2841_v20  ;;  %v2819_v55 = vmul.f32 %v2818_v1, %v5238_v52  ;;  %v3534_v52 = vld [vmem:[%s893_s19] ss:$0 sm:$0xff] }
 0xb2d   : > { %v2793_v47 = vmul.f32 %v3618_v51, %v2792_v49  ;;  %vm2840_vm15 = vcmp.eq.f32.partialorder %v2839_v31, 8.507059e+37  ;;  %v2515_v59 = vmul.f32 0.5, %v5221_v16  ;;  %v2518_v49 = vmul.f32 0.5, %v5225_v14 }
 0xb2e   : > { %v2758_v25 = vsel %vm2757_vm2, %v3616_v48, %v2754_v5  ;;  %v3620_v9 = vpop.eup %3619  ;;  %v2722_v48 = vor.u32 1.1754944e-38, %v2721_v18 }
 0xb2f   : > { %v2763_v58 = vsel %vm2760_vm4, %v2762_v45, %v2758_v25  ;;  %v2794_v6 = vadd.f32 %v3618_v51, %v2793_v47  ;;  %v2711_v24 = vmul.f32 %v3620_v9, %v5293_v32  ;;  %v3622_v53 = vpop.eup %3621  ;;  %vm2716_vm8 = vweird.f32 %v3620_v9 }
 0xb30   : > { %v2764_v29 = vmul.f32 %v2763_v58, %v2739_v10  ;;  %v2831_v43 = vmul.f32 %v3622_v53, %v5297_v3  ;;  %vm2717_vm10 = vmor %vm2715_vm9, %vm2716_vm8  ;;  %vm2836_vm11 = vweird.f32 %v3622_v53 }
 0xb31   : > { %v2798_v38 = vsel %vm2797_vm6, %v3618_v51, %v2794_v6  ;;  %v2712_v34 = vsub.f32 1.0, %v2711_v24  ;;  %vm2837_vm14 = vmor %vm2835_vm13, %vm2836_vm11 }
 0xb32   : > { %v3371_v23 = vclamps-f32 %v2764_v29, 1.0  ;;  %v2803_v4 = vsel %vm2800_vm7, %v2802_v30, %v2798_v38  ;;  %v2832_v42 = vsub.f32 1.0, %v2831_v43 }
 0xb33   : > { %v2804_v37 = vmul.f32 %v2803_v4, %v2779_v13  ;;  %v2713_v17 = vmul.f32 %v3620_v9, %v2712_v34 }
 0xb34   : > { %v2852_v56 = vadd.f32 1.0, %v3371_v23  ;;  %v2833_v15 = vmul.f32 %v3622_v53, %v2832_v42 }
 0xb35   : > { %v3372_v40 = vclamps-f32 %v2804_v37, 1.0  ;;  %v2714_v46 = vadd.f32 %v3620_v9, %v2713_v17 }
 0xb36   : > { %v2860_v44 = vmul.f32 %v2852_v56, %v2516_v35  ;;  %v2834_v32 = vadd.f32 %v3622_v53, %v2833_v15 }
 0xb37   : > { %v2853_v12 = vadd.f32 1.0, %v3372_v40  ;;  %v2718_v33 = vsel %vm2717_vm10, %v3620_v9, %v2714_v46  ;;  %v3535_v40 = vld [vmem:[%s896_s1] ss:$0 sm:$0xff]  ;;  %s5437_s1 = sld [smem:[#allocation28_spill]] }
 0xb38   : > { %2908 = vmatmul.f32.gmra.mxu0 %v2860_v44  ;;  %v2723_v27 = vsel %vm2720_vm12, %v2722_v48, %v2718_v33  ;;  %v2838_v0 = vsel %vm2837_vm14, %v3622_v53, %v2834_v32  ;;  %v3536_v44 = vld [vmem:[%s795_s23] ss:$0 sm:$0xff] }
 0xb39   : > { %v2861_v50 = vmul.f32 %v2853_v12, %v2517_v36  ;;  %v2724_v51 = vmul.f32 %v2723_v27, %v2699_v21  ;;  %v2843_v57 = vsel %vm2840_vm15, %v2842_v39, %v2838_v0 }
 0xb3a   : > { %v2844_v28 = vmul.f32 %v2843_v57, %v2819_v55 }
 0xb3b   : > { %2931 = vmatmul.f32.gmra.mxu1 %v2861_v50  ;;  %v3370_v19 = vclamps-f32 %v2724_v51, 1.0 }
 0xb3c   : > { %v3373_v61 = vclamps-f32 %v2844_v28, 1.0 }
 0xb3d   : > { %v2851_v60 = vadd.f32 1.0, %v3370_v19  ;;  %p3374_p10 = scmp.ne.s32.totalorder %s5437_s1, 2 }
 0xb3e   : > { %v2854_v3 = vadd.f32 1.0, %v3373_v61 }
 0xb3f   : > { %v2859_v62 = vmul.f32 %v2851_v60, %v2515_v59 }
 0xb40   : > { %v2862_v5 = vmul.f32 %v2854_v3, %v2518_v49 }
 0xb41   : > { %2885 = vmatmul.f32.gmra.mxu3 %v2859_v62 }
 0xb42   : > { %2954 = vmatmul.f32.gmra.mxu2 %v2862_v5 }
 0xb8b   : > { %v2906_v47 = vpop.f32.mrf.mxu0 }
 0xb8c   : > { %v2929_v10 = vpop.f32.mrf.mxu1 }
 0xb9a   : > { %v2883_v63 = vpop.f32.mrf.mxu3 }
 0xb9b   : > { %v2884_v45 = vadd.f32 %v3534_v52, %v2883_v63 }
 0xb9d   : > { %v2907_v2 = vadd.f32 %v2906_v47, %v2884_v45 }
 0xb9e   : > { %v2952_v25 = vpop.f32.mrf.mxu2 }
 0xb9f   : > { %v2930_v16 = vadd.f32 %v2929_v10, %v2907_v2 }
 0xba1   : > { %v2953_v9 = vadd.f32 %v2952_v25, %v2930_v16 }
 0xba3   : > { %v2958_v11 = vadd.f32 %v2953_v9, %v4970_v8 }
 0xba5   : > { %2960 = vadd.xlane.f32.xlu2 %v2958_v11  ;;  %v2966_v14 = vmul.f32 %v2958_v11, %v2958_v11 }
 0xba7   : > { %2968 = vadd.xlane.f32.xlu1 %v2966_v14 }
 0xbb5   : > { %v2909_v35 = vpop.f32.mrf.mxu0 }
 0xbb8   : > { %v2932_v30 = vpop.f32.mrf.mxu1 }
 0xbc4   : > { %v2886_v58 = vpop.f32.mrf.mxu3 }
 0xbc5   : > { %v2887_v6 = vadd.f32 %v3534_v52, %v2886_v58  ;;  %v2955_v13 = vpop.f32.mrf.mxu2 }
 0xbc7   : > { %v2910_v29 = vadd.f32 %v2909_v35, %v2887_v6 }
 0xbc9   : > { %v2933_v24 = vadd.f32 %v2932_v30, %v2910_v29 }
 0xbcb   : > { %v2956_v26 = vadd.f32 %v2955_v13, %v2933_v24 }
 0xbcd   : > { %v2959_v38 = vadd.f32 %v2956_v26, %v4979_v22 }
 0xbcf   : > { %2962 = vadd.xlane.f32.xlu0 %v2959_v38  ;;  %v2967_v53 = vmul.f32 %v2959_v38, %v2959_v38 }
 0xbd1   : > { %2970 = vadd.xlane.f32.xlu2 %v2967_v53 }
 0xc18   : > { %v2961_v23 = vpop.xlane.xlu2 %2960 }
 0xc19   : > { %v2964_v4 = vmul.f32 %v2961_v23, %v4952_v41 }
 0xc1a   : > { %v2969_v8 = vpop.xlane.xlu1 %2968 }
 0xc1b   : > { %v2974_v34 = vmul.f32 %v2964_v4, %v2964_v4  ;;  %v2972_v18 = vmul.f32 %v2969_v8, %v4952_v41  ;;  %v2978_v1 = vsub.f32 %v2958_v11, %v2964_v4 }
 0xc1d   : > { %v2976_v36 = vsub.f32 %v2972_v18, %v2974_v34 }
 0xc1f   : > { %v2980_v7 = vadd.f32 1e-05, %v2976_v36 }
 0xc21   : > { %3623 = vrsqrt.f32 %v2980_v7  ;;  %vm2988_vm1 = vweird.f32 %v2980_v7 }
 0xc27   : > { %v3624_v37 = vpop.eup %3623 }
 0xc28   : > { %v2983_v43 = vmul.f32 %v3624_v37, %v2980_v7  ;;  %vm2989_vm0 = vweird.f32 %v3624_v37 }
 0xc29   : > { %vm2990_vm2 = vmor %vm2988_vm1, %vm2989_vm0 }
 0xc2a   : > { %v2984_v56 = vmul.f32 %v3624_v37, %v2983_v43 }
 0xc2c   : > { %v2985_v17 = vmul.f32 0.5, %v2984_v56 }
 0xc2e   : > { %v2986_v22 = vsub.f32 1.5, %v2985_v17 }
 0xc30   : > { %v2987_v54 = vmul.f32 %v3624_v37, %v2986_v22 }
 0xc32   : > { %v2991_v42 = vsel %vm2990_vm2, %v3624_v37, %v2987_v54 }
 0xc33   : > { %v3002_v46 = vmul.f32 %v2991_v42, %v2978_v1 }
 0xc35   : > { %v3007_v48 = vmul.f32 %v3535_v40, %v3002_v46 }
 0xc37   : > { %v3012_v20 = vadd.f32 %v3536_v44, %v3007_v48 }
 0xc39   : > { %3014 = vst [vmem:[#allocation2] sm:$0xff] %v3012_v20 }
 0xc42   : > { %v2963_v12 = vpop.xlane.xlu0 %2962 }
 0xc43   : > { %v2965_v15 = vmul.f32 %v2963_v12, %v4952_v41 }
 0xc44   : > { %v2971_v31 = vpop.xlane.xlu2 %2970 }
 0xc45   : > { %v2975_v21 = vmul.f32 %v2965_v15, %v2965_v15  ;;  %v2973_v33 = vmul.f32 %v2971_v31, %v4952_v41  ;;  %v2979_v57 = vsub.f32 %v2959_v38, %v2965_v15 }
 0xc47   : > { %v2977_v50 = vsub.f32 %v2973_v33, %v2975_v21 }
 0xc49   : > { %v2981_v27 = vadd.f32 1e-05, %v2977_v50 }
 0xc4b   : > { %3625 = vrsqrt.f32 %v2981_v27  ;;  %vm2998_vm4 = vweird.f32 %v2981_v27 }
 0xc51   : > { %v3626_v32 = vpop.eup %3625 }
 0xc52   : > { %v2993_v51 = vmul.f32 %v3626_v32, %v2981_v27  ;;  %vm2999_vm3 = vweird.f32 %v3626_v32 }
 0xc53   : > { %vm3000_vm5 = vmor %vm2998_vm4, %vm2999_vm3 }
 0xc54   : > { %v2994_v39 = vmul.f32 %v3626_v32, %v2993_v51 }
 0xc56   : > { %v2995_v55 = vmul.f32 0.5, %v2994_v39 }
 0xc58   : > { %v2996_v0 = vsub.f32 1.5, %v2995_v55 }
 0xc5a   : > { %v2997_v19 = vmul.f32 %v3626_v32, %v2996_v0 }
 0xc5c   : > { %v3001_v28 = vsel %vm3000_vm5, %v3626_v32, %v2997_v19 }
 0xc5d   : > { %v3003_v59 = vmul.f32 %v3001_v28, %v2979_v57 }
 0xc5f   : > { %v3008_v60 = vmul.f32 %v3535_v40, %v3003_v59  ;;  %3019 = sbr.rel (%p3374_p10) target bundleno = 3174 (0xc66), region = 140 }
 0xc61   : > { %v3013_v61 = vadd.f32 %v3536_v44, %v3008_v60 }
 0xc63   : > { %3015 = vst [vmem:[#allocation2 + $0x8] sm:$0xff] %v3013_v61 }
 0xc64   : > { %3020 = vst [vmem:[#allocation20] sm:$0xff] %v3012_v20 }
 0xc65   : > { %3021 = vst [vmem:[#allocation20 + $0x8] sm:$0xff] %v3013_v61 }
 0xc66 PF: > { %s5438_s2 = sld [smem:[#allocation28_spill]]  ;;  %s4086_s3 = smov [#allocation20]  }
 0xc67   : > { %s3027_s17 = sshll.u32 %s4086_s3, 4  ;;  %s5439_s16 = sld [smem:[#allocation45_spill]]  ;;  %s3028_s17 = int_to_ptr.vmem [resolvable:$true] %s3027_s17 }
 0xc68   : > { %s4087_s8 = smov 128   ;;  %s4088_s27 = smov 8  }
 0xc6c   : > { %p3471_p0 = scmp.eq.s32.totalorder %s5438_s2, 2 }
 0xc6d   : > { %s3029_s5 = sshll.u32 %s5439_s16, 4  ;;  %s3030_s5 = int_to_ptr.hbm [resolvable:$true] %s3029_s5 }
 0xc6e   : > { %3421 = dma.vmem_to_hbm [thread:$0]  (%p3471_p0), %s3028_s17, 256, %s3030_s5, [#allocation6], %s4087_s8, %s4087_s8, %s4088_s27  }
 0xc6f   : > { %4049 = dma.done.wait (%p3471_p0), [#allocation6], 256  }
 0xc70   : > { %4051 = vsyncadd (%p3471_p0), [#allocation6], 4294967040 }
 0xc71 PF: > { %s5440_s24 = sld [smem:[#allocation29_spill]] }
 0xc72   : > { %s5441_s21 = sld [smem:[#allocation26_spill]] }
 0xc73   : > { %s5442_s22 = sld [smem:[#allocation27_spill]] }
 0xc74   : > { %s5443_s23 = sld [smem:[#allocation30_spill]] }
 0xc77   : > { %p27_p2 = scmp.ge.s32.totalorder %s5440_s24, 5  }
 0xc79   :  { %29 = sbr.rel (!%p27_p2) target bundleno = 19 (0x13), region = 233 }
 0xc7e   :  { %3046 = vsyncpa [#allocation5], 1 }
 0xc7f   :  { %3048 = vsyncpa [#allocation5 + $0x1], 1 }
 0xc80   :  { %3049 = vsyncpa [#allocation8], 1 }
 0xc81   :  { %3050 = vsyncpa [#allocation11], 1 }
 0xc82   :  { %3051 = vsyncpa [#allocation6], 1 }
 0xc83   :  { %3053 = vsyncpa [#allocation6 + $0x1], 1 }

</bundles_post_ra>
